<compile_context>
chip_gen: v6e
topology: v6e:2x2x1
jax: 0.10.0
libtpu: 0.0.40
codegen_flags: <defaults>
</compile_context>

<pallas_src>
import functools

import jax
import jax.numpy as jnp
from jax.experimental import pallas as pl
from jax.experimental.pallas import tpu as pltpu


def _round_up(x, m):
    return (x + m - 1) // m * m


def _conv_bn_relu_kernel(x_ref, w_ref, scale_ref, shift_ref, o_ref, *,
                         kh, kw, stride, tho, wo):
    """One (batch, output-row-block, C_out-block) grid step.

    x_ref:     (1, Hp, Wp, C_in)   whole padded NHWC image for this batch
                                   (block index constant across inner axes,
                                   so it stays resident in VMEM)
    w_ref:     (kh*kw, C_in, TN)   per-tap weight slabs for this C_out block
    scale_ref: (1, TN)             gamma / sqrt(running_var + eps)
    shift_ref: (1, TN)             beta - running_mean * scale
    o_ref:     (tho*wo, TN)        flattened (rows, channels) output block
    """
    c_in = x_ref.shape[3]
    tn = o_ref.shape[1]
    row0 = pl.program_id(1) * (tho * stride)   # first padded-input row of block

    acc = jnp.zeros((tho * wo, tn), jnp.float32)
    for t in range(kh * kw):                   # unrolled; kh*kw is small (e.g. 9)
        di, dj = t // kw, t % kw               # static tap offsets
        if stride == 1:
            win = x_ref[0, pl.ds(row0 + di, tho), pl.ds(dj, wo), :]
        else:
            win = x_ref[0, pl.ds(row0 + di, tho, stride=stride),
                        pl.ds(dj, wo, stride=stride), :]
        lhs = win.reshape(tho * wo, c_in)      # layout-preserving flatten
        acc += jnp.dot(lhs, w_ref[t], preferred_element_type=jnp.float32)

    y = acc * scale_ref[...] + shift_ref[...]  # f32 epilogue (v5e-safe)
    o_ref[...] = jnp.maximum(y, 0.0).astype(o_ref.dtype)


def basic_conv2d_nhwc(x_nhwc, weight, gamma, beta, running_mean, running_var,
                      *, stride=1, padding=1, eps=1e-3,
                      mxu_dtype=jnp.bfloat16, target_rows=512):
    """Fused conv+BN+ReLU on NHWC input; returns NHWC output (no transposes)."""
    n, h, w, c_in = x_nhwc.shape
    c_out, c_in_w, kh, kw = weight.shape
    assert c_in_w == c_in, (c_in_w, c_in)

    ho = (h + 2 * padding - kh) // stride + 1
    wo = (w + 2 * padding - kw) // stride + 1

    # ---- tiling choices ----------------------------------------------------
    cp = _round_up(c_out, 128)                 # lane-dense output channels
    tile_n = 128
    for cand in (512, 256):
        if cp % cand == 0:
            tile_n = cand
            break
    n_co = cp // tile_n

    # tho output image rows per grid step (~target_rows GEMM rows). Keep the
    # in-kernel (tho, wo, C) -> (tho*wo, C) flatten layout-preserving by
    # requiring wo to be a whole number of sublane tiles.
    sublane = 16 if mxu_dtype == jnp.bfloat16 else 8
    if wo % sublane == 0:
        tho_target = max(1, target_rows // wo)
        tho = next(c for c in range(min(ho, tho_target), 0, -1) if ho % c == 0)
    else:
        tho = 1  # TODO(synk): M-pad the 2-D output for wo not a sublane multiple.
    n_oh = ho // tho

    # ---- operand prep (no im2col materialization) --------------------------
    xp = jnp.pad(x_nhwc.astype(mxu_dtype),
                 ((0, 0), (padding, padding), (padding, padding), (0, 0)))
    hp, wp = h + 2 * padding, w + 2 * padding

    # (C_out, C_in, kh, kw) -> (kh*kw, C_in, Cp), zero-padded along C_out.
    w_taps = jnp.transpose(weight, (2, 3, 1, 0)).reshape(kh * kw, c_in, c_out)
    w_taps = jnp.pad(w_taps, ((0, 0), (0, 0), (0, cp - c_out))).astype(mxu_dtype)

    scale = gamma / jnp.sqrt(running_var + eps)
    shift = beta - running_mean * scale
    scale = jnp.pad(scale, (0, cp - c_out)).reshape(1, cp).astype(jnp.float32)
    shift = jnp.pad(shift, (0, cp - c_out)).reshape(1, cp).astype(jnp.float32)

    kernel = functools.partial(_conv_bn_relu_kernel,
                               kh=kh, kw=kw, stride=stride, tho=tho, wo=wo)

    out2d = pl.pallas_call(
        kernel,
        out_shape=jax.ShapeDtypeStruct((n * ho * wo, cp), x_nhwc.dtype),
        grid_spec=pltpu.PrefetchScalarGridSpec(
            num_scalar_prefetch=0,
            grid=(n, n_oh, n_co),
            in_specs=[
                # Whole padded image for batch b; constant across (oh, co) so
                # it is DMA'd once per batch element.
                pl.BlockSpec((1, hp, wp, c_in), lambda b, oh, co: (b, 0, 0, 0)),
                pl.BlockSpec((kh * kw, c_in, tile_n), lambda b, oh, co: (0, 0, co)),
                pl.BlockSpec((1, tile_n), lambda b, oh, co: (0, co)),
                pl.BlockSpec((1, tile_n), lambda b, oh, co: (0, co)),
            ],
            out_specs=pl.BlockSpec((tho * wo, tile_n),
                                   lambda b, oh, co: (b * n_oh + oh, co)),
        ),
        compiler_params=pltpu.CompilerParams(
            dimension_semantics=("parallel", "parallel", "parallel")),
    )(xp, w_taps, scale, shift)

    # Drop channel padding; rows already in (n, ho, wo) order.
    return out2d.reshape(n, ho, wo, cp)[..., :c_out]


@functools.partial(jax.jit, static_argnames=("stride", "padding"))
def basic_conv2d(x, weight, gamma, beta, running_mean, running_var,
                 *, stride=1, padding=1, eps=1e-3):
    """NCHW in / NCHW out (PyTorch convention).

    The NCHW<->NHWC transposes are layout glue outside the fused kernel; in a
    stack of BasicConv2d blocks call basic_conv2d_nhwc directly to skip them.
    """
    x_nhwc = jnp.transpose(x, (0, 2, 3, 1))
    out_nhwc = basic_conv2d_nhwc(x_nhwc, weight, gamma, beta, running_mean,
                                 running_var, stride=stride, padding=padding,
                                 eps=eps)
    return jnp.transpose(out_nhwc, (0, 3, 1, 2))


if __name__ == "__main__":
    # Module config: BasicConv2d(in_channels=4, out_channels=8,
    #                            kernel_size=3, padding=1)
    N, C_IN, H, W = 2, 4, 16, 16
    C_OUT, KH, KW = 8, 3, 3

    key = jax.random.PRNGKey(0)
    kx, kw_ = jax.random.split(key)

    x = jax.random.normal(kx, (N, C_IN, H, W), dtype=jnp.float32)
    weight = jax.random.normal(kw_, (C_OUT, C_IN, KH, KW), dtype=jnp.float32) * 0.1

    # BatchNorm2d default-initialized parameters / running stats (eval mode).
    gamma = jnp.ones((C_OUT,), jnp.float32)
    beta = jnp.zeros((C_OUT,), jnp.float32)
    running_mean = jnp.zeros((C_OUT,), jnp.float32)
    running_var = jnp.ones((C_OUT,), jnp.float32)

    out = basic_conv2d(x, weight, gamma, beta, running_mean, running_var,
                       stride=1, padding=1)
    jax.block_until_ready(out)

    assert out.shape == (N, C_OUT, H, W), out.shape
    assert bool(jnp.all(out >= 0.0))  # ReLU

    # Sanity check against plain-JAX reference (bf16 MXU operands -> loose tol).
    ref = jax.lax.conv_general_dilated(
        x, weight, window_strides=(1, 1), padding=((1, 1), (1, 1)),
        dimension_numbers=("NCHW", "OIHW", "NCHW"))
    s = (gamma / jnp.sqrt(running_var + 1e-3)).reshape(1, -1, 1, 1)
    b = (beta - running_mean * gamma / jnp.sqrt(running_var + 1e-3)).reshape(1, -1, 1, 1)
    ref = jnp.maximum(ref * s + b, 0.0)
    err = float(jnp.max(jnp.abs(out - ref)))
    assert jnp.allclose(out, ref, atol=1e-1, rtol=1e-1), err

    print("KERNEL_OK")
</pallas_src>

<mosaic_0001>
module attributes {stable_mosaic.version = 11 : i64} {
  func.func @_conv_bn_relu_kernel(%arg0: i32, %arg1: i32, %arg2: i32, %arg3: memref<1x18x18x4xbf16, #tpu.memory_space<vmem>>, %arg4: memref<9x4x128xbf16, #tpu.memory_space<vmem>>, %arg5: memref<1x128xf32, #tpu.memory_space<vmem>>, %arg6: memref<1x128xf32, #tpu.memory_space<vmem>>, %arg7: memref<256x128xf32, #tpu.memory_space<vmem>>) attributes {dimension_semantics = [#tpu.dimension_semantics<parallel>, #tpu.dimension_semantics<parallel>, #tpu.dimension_semantics<parallel>], iteration_bounds = array<i64: 2, 1, 1>, scalar_prefetch = 0 : i64, scratch_operands = 0 : i64, tpu.core_type = #tpu.core_type<tc>, window_params = [{transform_indices = @transform_0, window_bounds = array<i64: 1, 18, 18, 4>}, {transform_indices = @transform_1, window_bounds = array<i64: 9, 4, 128>}, {transform_indices = @transform_2, window_bounds = array<i64: 1, 128>}, {transform_indices = @transform_3, window_bounds = array<i64: 1, 128>}, {transform_indices = @transform_4, window_bounds = array<i64: 256, 128>}]} {
    %c16_i32 = arith.constant 16 : i32
    %0 = arith.muli %arg1, %c16_i32 : i32
    %cst = arith.constant 0.000000e+00 : f32
    %1 = vector.broadcast %cst : f32 to vector<256x128xf32>
    %c0_i32 = arith.constant 0 : i32
    %2 = arith.addi %0, %c0_i32 : i32
    %c0 = arith.constant 0 : index
    %3 = arith.index_cast %2 : i32 to index
    %c0_0 = arith.constant 0 : index
    %c0_1 = arith.constant 0 : index
    %4 = vector.load %arg3[%c0, %3, %c0_0, %c0_1] : memref<1x18x18x4xbf16, #tpu.memory_space<vmem>>, vector<1x16x16x4xbf16>
    %5 = vector.shape_cast %4 : vector<1x16x16x4xbf16> to vector<16x16x4xbf16>
    %6 = vector.shape_cast %5 : vector<16x16x4xbf16> to vector<256x4xbf16>
    %c0_2 = arith.constant 0 : index
    %c0_3 = arith.constant 0 : index
    %c0_4 = arith.constant 0 : index
    %7 = vector.load %arg4[%c0_2, %c0_3, %c0_4] : memref<9x4x128xbf16, #tpu.memory_space<vmem>>, vector<1x4x128xbf16>
    %8 = vector.shape_cast %7 : vector<1x4x128xbf16> to vector<4x128xbf16>
    %cst_5 = arith.constant dense<0.000000e+00> : vector<256x128xf32>
    %9 = tpu.matmul %6, %8, %cst_5 {dimension_numbers = #tpu.dot_dimension_numbers<[1], [0], [0], [1], [0, 0, 1, 1], [], []>} : vector<256x4xbf16>, vector<4x128xbf16>, vector<256x128xf32> -> vector<256x128xf32>
    %10 = arith.addf %1, %9 : vector<256x128xf32>
    %c0_i32_6 = arith.constant 0 : i32
    %11 = arith.addi %0, %c0_i32_6 : i32
    %c0_7 = arith.constant 0 : index
    %12 = arith.index_cast %11 : i32 to index
    %c1 = arith.constant 1 : index
    %c0_8 = arith.constant 0 : index
    %13 = vector.load %arg3[%c0_7, %12, %c1, %c0_8] : memref<1x18x18x4xbf16, #tpu.memory_space<vmem>>, vector<1x16x16x4xbf16>
    %14 = vector.shape_cast %13 : vector<1x16x16x4xbf16> to vector<16x16x4xbf16>
    %15 = vector.shape_cast %14 : vector<16x16x4xbf16> to vector<256x4xbf16>
    %c1_9 = arith.constant 1 : index
    %c0_10 = arith.constant 0 : index
    %c0_11 = arith.constant 0 : index
    %16 = vector.load %arg4[%c1_9, %c0_10, %c0_11] : memref<9x4x128xbf16, #tpu.memory_space<vmem>>, vector<1x4x128xbf16>
    %17 = vector.shape_cast %16 : vector<1x4x128xbf16> to vector<4x128xbf16>
    %cst_12 = arith.constant dense<0.000000e+00> : vector<256x128xf32>
    %18 = tpu.matmul %15, %17, %cst_12 {dimension_numbers = #tpu.dot_dimension_numbers<[1], [0], [0], [1], [0, 0, 1, 1], [], []>} : vector<256x4xbf16>, vector<4x128xbf16>, vector<256x128xf32> -> vector<256x128xf32>
    %19 = arith.addf %10, %18 : vector<256x128xf32>
    %c0_i32_13 = arith.constant 0 : i32
    %20 = arith.addi %0, %c0_i32_13 : i32
    %c0_14 = arith.constant 0 : index
    %21 = arith.index_cast %20 : i32 to index
    %c2 = arith.constant 2 : index
    %c0_15 = arith.constant 0 : index
    %22 = vector.load %arg3[%c0_14, %21, %c2, %c0_15] : memref<1x18x18x4xbf16, #tpu.memory_space<vmem>>, vector<1x16x16x4xbf16>
    %23 = vector.shape_cast %22 : vector<1x16x16x4xbf16> to vector<16x16x4xbf16>
    %24 = vector.shape_cast %23 : vector<16x16x4xbf16> to vector<256x4xbf16>
    %c2_16 = arith.constant 2 : index
    %c0_17 = arith.constant 0 : index
    %c0_18 = arith.constant 0 : index
    %25 = vector.load %arg4[%c2_16, %c0_17, %c0_18] : memref<9x4x128xbf16, #tpu.memory_space<vmem>>, vector<1x4x128xbf16>
    %26 = vector.shape_cast %25 : vector<1x4x128xbf16> to vector<4x128xbf16>
    %cst_19 = arith.constant dense<0.000000e+00> : vector<256x128xf32>
    %27 = tpu.matmul %24, %26, %cst_19 {dimension_numbers = #tpu.dot_dimension_numbers<[1], [0], [0], [1], [0, 0, 1, 1], [], []>} : vector<256x4xbf16>, vector<4x128xbf16>, vector<256x128xf32> -> vector<256x128xf32>
    %28 = arith.addf %19, %27 : vector<256x128xf32>
    %c1_i32 = arith.constant 1 : i32
    %29 = arith.addi %0, %c1_i32 : i32
    %c0_20 = arith.constant 0 : index
    %30 = arith.index_cast %29 : i32 to index
    %c0_21 = arith.constant 0 : index
    %c0_22 = arith.constant 0 : index
    %31 = vector.load %arg3[%c0_20, %30, %c0_21, %c0_22] : memref<1x18x18x4xbf16, #tpu.memory_space<vmem>>, vector<1x16x16x4xbf16>
    %32 = vector.shape_cast %31 : vector<1x16x16x4xbf16> to vector<16x16x4xbf16>
    %33 = vector.shape_cast %32 : vector<16x16x4xbf16> to vector<256x4xbf16>
    %c3 = arith.constant 3 : index
    %c0_23 = arith.constant 0 : index
    %c0_24 = arith.constant 0 : index
    %34 = vector.load %arg4[%c3, %c0_23, %c0_24] : memref<9x4x128xbf16, #tpu.memory_space<vmem>>, vector<1x4x128xbf16>
    %35 = vector.shape_cast %34 : vector<1x4x128xbf16> to vector<4x128xbf16>
    %cst_25 = arith.constant dense<0.000000e+00> : vector<256x128xf32>
    %36 = tpu.matmul %33, %35, %cst_25 {dimension_numbers = #tpu.dot_dimension_numbers<[1], [0], [0], [1], [0, 0, 1, 1], [], []>} : vector<256x4xbf16>, vector<4x128xbf16>, vector<256x128xf32> -> vector<256x128xf32>
    %37 = arith.addf %28, %36 : vector<256x128xf32>
    %c1_i32_26 = arith.constant 1 : i32
    %38 = arith.addi %0, %c1_i32_26 : i32
    %c0_27 = arith.constant 0 : index
    %39 = arith.index_cast %38 : i32 to index
    %c1_28 = arith.constant 1 : index
    %c0_29 = arith.constant 0 : index
    %40 = vector.load %arg3[%c0_27, %39, %c1_28, %c0_29] : memref<1x18x18x4xbf16, #tpu.memory_space<vmem>>, vector<1x16x16x4xbf16>
    %41 = vector.shape_cast %40 : vector<1x16x16x4xbf16> to vector<16x16x4xbf16>
    %42 = vector.shape_cast %41 : vector<16x16x4xbf16> to vector<256x4xbf16>
    %c4 = arith.constant 4 : index
    %c0_30 = arith.constant 0 : index
    %c0_31 = arith.constant 0 : index
    %43 = vector.load %arg4[%c4, %c0_30, %c0_31] : memref<9x4x128xbf16, #tpu.memory_space<vmem>>, vector<1x4x128xbf16>
    %44 = vector.shape_cast %43 : vector<1x4x128xbf16> to vector<4x128xbf16>
    %cst_32 = arith.constant dense<0.000000e+00> : vector<256x128xf32>
    %45 = tpu.matmul %42, %44, %cst_32 {dimension_numbers = #tpu.dot_dimension_numbers<[1], [0], [0], [1], [0, 0, 1, 1], [], []>} : vector<256x4xbf16>, vector<4x128xbf16>, vector<256x128xf32> -> vector<256x128xf32>
    %46 = arith.addf %37, %45 : vector<256x128xf32>
    %c1_i32_33 = arith.constant 1 : i32
    %47 = arith.addi %0, %c1_i32_33 : i32
    %c0_34 = arith.constant 0 : index
    %48 = arith.index_cast %47 : i32 to index
    %c2_35 = arith.constant 2 : index
    %c0_36 = arith.constant 0 : index
    %49 = vector.load %arg3[%c0_34, %48, %c2_35, %c0_36] : memref<1x18x18x4xbf16, #tpu.memory_space<vmem>>, vector<1x16x16x4xbf16>
    %50 = vector.shape_cast %49 : vector<1x16x16x4xbf16> to vector<16x16x4xbf16>
    %51 = vector.shape_cast %50 : vector<16x16x4xbf16> to vector<256x4xbf16>
    %c5 = arith.constant 5 : index
    %c0_37 = arith.constant 0 : index
    %c0_38 = arith.constant 0 : index
    %52 = vector.load %arg4[%c5, %c0_37, %c0_38] : memref<9x4x128xbf16, #tpu.memory_space<vmem>>, vector<1x4x128xbf16>
    %53 = vector.shape_cast %52 : vector<1x4x128xbf16> to vector<4x128xbf16>
    %cst_39 = arith.constant dense<0.000000e+00> : vector<256x128xf32>
    %54 = tpu.matmul %51, %53, %cst_39 {dimension_numbers = #tpu.dot_dimension_numbers<[1], [0], [0], [1], [0, 0, 1, 1], [], []>} : vector<256x4xbf16>, vector<4x128xbf16>, vector<256x128xf32> -> vector<256x128xf32>
    %55 = arith.addf %46, %54 : vector<256x128xf32>
    %c2_i32 = arith.constant 2 : i32
    %56 = arith.addi %0, %c2_i32 : i32
    %c0_40 = arith.constant 0 : index
    %57 = arith.index_cast %56 : i32 to index
    %c0_41 = arith.constant 0 : index
    %c0_42 = arith.constant 0 : index
    %58 = vector.load %arg3[%c0_40, %57, %c0_41, %c0_42] : memref<1x18x18x4xbf16, #tpu.memory_space<vmem>>, vector<1x16x16x4xbf16>
    %59 = vector.shape_cast %58 : vector<1x16x16x4xbf16> to vector<16x16x4xbf16>
    %60 = vector.shape_cast %59 : vector<16x16x4xbf16> to vector<256x4xbf16>
    %c6 = arith.constant 6 : index
    %c0_43 = arith.constant 0 : index
    %c0_44 = arith.constant 0 : index
    %61 = vector.load %arg4[%c6, %c0_43, %c0_44] : memref<9x4x128xbf16, #tpu.memory_space<vmem>>, vector<1x4x128xbf16>
    %62 = vector.shape_cast %61 : vector<1x4x128xbf16> to vector<4x128xbf16>
    %cst_45 = arith.constant dense<0.000000e+00> : vector<256x128xf32>
    %63 = tpu.matmul %60, %62, %cst_45 {dimension_numbers = #tpu.dot_dimension_numbers<[1], [0], [0], [1], [0, 0, 1, 1], [], []>} : vector<256x4xbf16>, vector<4x128xbf16>, vector<256x128xf32> -> vector<256x128xf32>
    %64 = arith.addf %55, %63 : vector<256x128xf32>
    %c2_i32_46 = arith.constant 2 : i32
    %65 = arith.addi %0, %c2_i32_46 : i32
    %c0_47 = arith.constant 0 : index
    %66 = arith.index_cast %65 : i32 to index
    %c1_48 = arith.constant 1 : index
    %c0_49 = arith.constant 0 : index
    %67 = vector.load %arg3[%c0_47, %66, %c1_48, %c0_49] : memref<1x18x18x4xbf16, #tpu.memory_space<vmem>>, vector<1x16x16x4xbf16>
    %68 = vector.shape_cast %67 : vector<1x16x16x4xbf16> to vector<16x16x4xbf16>
    %69 = vector.shape_cast %68 : vector<16x16x4xbf16> to vector<256x4xbf16>
    %c7 = arith.constant 7 : index
    %c0_50 = arith.constant 0 : index
    %c0_51 = arith.constant 0 : index
    %70 = vector.load %arg4[%c7, %c0_50, %c0_51] : memref<9x4x128xbf16, #tpu.memory_space<vmem>>, vector<1x4x128xbf16>
    %71 = vector.shape_cast %70 : vector<1x4x128xbf16> to vector<4x128xbf16>
    %cst_52 = arith.constant dense<0.000000e+00> : vector<256x128xf32>
    %72 = tpu.matmul %69, %71, %cst_52 {dimension_numbers = #tpu.dot_dimension_numbers<[1], [0], [0], [1], [0, 0, 1, 1], [], []>} : vector<256x4xbf16>, vector<4x128xbf16>, vector<256x128xf32> -> vector<256x128xf32>
    %73 = arith.addf %64, %72 : vector<256x128xf32>
    %c2_i32_53 = arith.constant 2 : i32
    %74 = arith.addi %0, %c2_i32_53 : i32
    %c0_54 = arith.constant 0 : index
    %75 = arith.index_cast %74 : i32 to index
    %c2_55 = arith.constant 2 : index
    %c0_56 = arith.constant 0 : index
    %76 = vector.load %arg3[%c0_54, %75, %c2_55, %c0_56] : memref<1x18x18x4xbf16, #tpu.memory_space<vmem>>, vector<1x16x16x4xbf16>
    %77 = vector.shape_cast %76 : vector<1x16x16x4xbf16> to vector<16x16x4xbf16>
    %78 = vector.shape_cast %77 : vector<16x16x4xbf16> to vector<256x4xbf16>
    %c8 = arith.constant 8 : index
    %c0_57 = arith.constant 0 : index
    %c0_58 = arith.constant 0 : index
    %79 = vector.load %arg4[%c8, %c0_57, %c0_58] : memref<9x4x128xbf16, #tpu.memory_space<vmem>>, vector<1x4x128xbf16>
    %80 = vector.shape_cast %79 : vector<1x4x128xbf16> to vector<4x128xbf16>
    %cst_59 = arith.constant dense<0.000000e+00> : vector<256x128xf32>
    %81 = tpu.matmul %78, %80, %cst_59 {dimension_numbers = #tpu.dot_dimension_numbers<[1], [0], [0], [1], [0, 0, 1, 1], [], []>} : vector<256x4xbf16>, vector<4x128xbf16>, vector<256x128xf32> -> vector<256x128xf32>
    %82 = arith.addf %73, %81 : vector<256x128xf32>
    %c0_60 = arith.constant 0 : index
    %c0_61 = arith.constant 0 : index
    %83 = vector.load %arg5[%c0_60, %c0_61] : memref<1x128xf32, #tpu.memory_space<vmem>>, vector<1x128xf32>
    %84 = vector.broadcast %83 : vector<1x128xf32> to vector<256x128xf32>
    %85 = arith.mulf %82, %84 : vector<256x128xf32>
    %c0_62 = arith.constant 0 : index
    %c0_63 = arith.constant 0 : index
    %86 = vector.load %arg6[%c0_62, %c0_63] : memref<1x128xf32, #tpu.memory_space<vmem>>, vector<1x128xf32>
    %87 = vector.broadcast %86 : vector<1x128xf32> to vector<256x128xf32>
    %88 = arith.addf %85, %87 : vector<256x128xf32>
    %cst_64 = arith.constant 0.000000e+00 : f32
    %89 = vector.broadcast %cst_64 : f32 to vector<256x128xf32>
    %90 = arith.maximumf %88, %89 : vector<256x128xf32>
    %c0_65 = arith.constant 0 : index
    %c0_66 = arith.constant 0 : index
    %91 = vector.load %arg7[%c0_65, %c0_66] : memref<256x128xf32, #tpu.memory_space<vmem>>, vector<256x128xf32>
    tpu.vector_store %arg7[%c0_65, %c0_66], %90 {strides = array<i32>} : memref<256x128xf32, #tpu.memory_space<vmem>>, vector<256x128xf32>,
    return
  }
  func.func @transform_0(%arg0: i32, %arg1: i32, %arg2: i32) -> (i32, i32, i32, i32) {
    %c0_i32 = arith.constant 0 : i32
    %c0_i32_0 = arith.constant 0 : i32
    %c0_i32_1 = arith.constant 0 : i32
    %c0_i32_2 = arith.constant 0 : i32
    return %arg0, %c0_i32, %c0_i32_0, %c0_i32_1 : i32, i32, i32, i32
  }
  func.func @transform_1(%arg0: i32, %arg1: i32, %arg2: i32) -> (i32, i32, i32) {
    %c0_i32 = arith.constant 0 : i32
    %c0_i32_0 = arith.constant 0 : i32
    %c0_i32_1 = arith.constant 0 : i32
    return %c0_i32, %c0_i32_0, %arg2 : i32, i32, i32
  }
  func.func @transform_2(%arg0: i32, %arg1: i32, %arg2: i32) -> (i32, i32) {
    %c0_i32 = arith.constant 0 : i32
    %c0_i32_0 = arith.constant 0 : i32
    return %c0_i32, %arg2 : i32, i32
  }
  func.func @transform_3(%arg0: i32, %arg1: i32, %arg2: i32) -> (i32, i32) {
    %c0_i32 = arith.constant 0 : i32
    %c0_i32_0 = arith.constant 0 : i32
    return %c0_i32, %arg2 : i32, i32
  }
  func.func @transform_4(%arg0: i32, %arg1: i32, %arg2: i32) -> (i32, i32) {
    %c1_i32 = arith.constant 1 : i32
    %0 = arith.muli %arg0, %c1_i32 : i32
    %1 = arith.addi %0, %arg1 : i32
    %c0_i32 = arith.constant 0 : i32
    return %1, %arg2 : i32, i32
  }
}

</mosaic_0001>

<bundles_post_ra>
// kernel: basic_conv2d.1
= control target key start
LH: loop header
LB: loop body
LE: loop exit
PB: predicated region body
PF: predicated region fallthrough
CT: control target
= control target key end

     0   :  { %s6264_s15 = smov 0   ;;  %s6266_s16 = smov 0   ;;  %s8969_s0 = inlined_call_operand.vmem [shape: bf16[2,18,18,4], index: 0, kind: input, shape index: {}]   ;;  %s8970_s1 = inlined_call_operand.vmem [shape: bf16[9,4,128], index: 1, kind: input, shape index: {}]   ;;  %s8971_s2 = inlined_call_operand.vmem [shape: f32[1,128], index: 2, kind: input, shape index: {}]   ;;  %s8972_s3 = inlined_call_operand.vmem [shape: f32[1,128], index: 3, kind: input, shape index: {}]   ;;  %s8973_s4 = inlined_call_operand.vmem [shape: f32[512,128], index: 4, kind: output, shape index: {}]  }
   0x1   :  { %s6268_s17 = smov 0  }
   0x2 LB: > { %s33_s18 = sadd.s32 1, %s6233_s16  ;;  %p5125_p0 = scmp.ge.s32.totalorder %s6237_s17, 1  ;;  %s6237_s17 = sphi %s6268_s17, %s14_s17   ;;  %s6233_s16 = sphi %s6266_s16, %s9249_s16   ;;  %s6229_s15 = sphi %s6264_s15, %s9248_s15  }
   0x3   : > { %p35_p1 = scmp.ge.s32.totalorder %s33_s18, 2  ;;  %p210_p2 = scmp.lt.s32.totalorder %s6237_s17, 3 }
   0x5   : > { %s9251_s18 = smov (%p35_p1, %s33_s18), 0  ;;  %p211_p3 = pnand %p5125_p0, %p210_p2 }
   0x7   : > { %214 = sbr.rel (%p211_p3) target bundleno = 560 (0x230), region = 36 }
   0xc   : > { %v5129_v0 = vld [vmem:[%s8970_s1 + $0x2] sm:$0x3]  ;;  %vm816_vm0 = vcmask 1041408   ;;  %p250_p4 = scmp.lt.s32.totalorder %s6229_s15, 1  ;;  %v313_v2 = vld [vmem:[%s8970_s1] sm:$0x3] }
   0xd   : > { %6131 = vmatprep.subr.msk.bf16.mxu1 %vm816_vm0, %v5129_v0  ;;  %6130 = vmatprep.subr.msk.bf16.mxu0 %vm816_vm0, %v5129_v0  ;;  %v818_v1 = vsel %vm816_vm0, %v5129_v0, 0  ;;  %v5210_v3 = vld [vmem:[%s8970_s1 + $0x4] sm:$0x3]  ;;  %vm330_vm1 = vsmask.f32 3328  ;;  %v6306_v4 = vsel %vm816_vm0, %v313_v2, 0 }
   0xe   : > { %6129 = vmatpush3.bf16.msra.mxu1 %v818_v1  ;;  %5823 = vmatpush3.bf16.msra.mxu0 %v818_v1  ;;  %s251_s23 = scalar_select %p250_p4, %s6229_s15, 1  ;;  %vm331_vm2 = vsmask.f32 7440  ;;  %vm767_vm3 = vcmask 31744   ;;  %v6332_v16 = vsel %vm816_vm0, %v5210_v3, 0  ;;  %vm1321_vm5 = vcmask 1042432  }
   0xf   : > { %6132 = vmatprep.subr.msk.bf16.mxu1 %vm816_vm0, %v313_v2  ;;  %6133 = vmatprep.subr.msk.bf16.mxu0 %vm816_vm0, %v5210_v3  ;;  %vm6347_vm4 = vmor %vm330_vm1, %vm331_vm2  ;;  %vm1322_vm6 = vcmask 1046532   ;;  %s5127_s20 = sshll.u32 %s6229_s15, 5 }
  0x10   : > { %s6140_s26 = smul.u32 216, %s251_s23  ;;  %vm6633_vm7 = vmor %vm1321_vm5, %vm1322_vm6  ;;  %p267_p5 = scmp.lt.s32.totalorder %s5127_s20, 63 }
  0x12   : > { %s6303_s29 = scalar_lea.vmem %s8969_s0, %s6140_s26  ;;  %s9253_s20 = smov (!%p267_p5, %s5127_s20), 63 }
  0x13   : > { %v6309_v5 = vld [vmem:[%s6303_s29] sm:$0xf]  ;;  %v6312_v6 = vld [vmem:[%s6303_s29 + $0x4] sm:$0xf]  ;;  %v6315_v7 = vld [vmem:[%s6303_s29 + $0x8] sm:$0x1] }
  0x14   : > { %v334_v8 = vshrl.u32 %v6309_v5, 16  ;;  %v337_v9 = vshll.u32 %v6309_v5, 16  ;;  %v343_v10 = vshll.u32 %v6312_v6, 16  ;;  %v347_v11 = vshrl.u32 %v6312_v6, 16  ;;  %v6322_v12 = vld [vmem:[%s6303_s29 + $0x60] sm:$0xf] }
  0x15   : > { %v353_v13 = vshll.u32 %v6315_v7, 16  ;;  %v6326_v14 = vld [vmem:[%s6303_s29 + $0x64] sm:$0xf]  ;;  %v6329_v15 = vld [vmem:[%s6303_s29 + $0x68] sm:$0x1]  ;;  %v526_v22 = vshrl.u32 %v6322_v12, 16 }
  0x16   : > { %v336_v17 = vrot.slane %v334_v8, 4  ;;  %v339_v18 = vrot.slane %v337_v9, 5  ;;  %v345_v19 = vrot.slane %v343_v10, 5  ;;  %v349_v20 = vrot.slane %v347_v11, 4  ;;  %v6340_v29 = vld [vmem:[%s6303_s29 + $0xc] sm:$0xf] }
  0x17   : > { %v355_v21 = vrot.slane %v353_v13, 5  ;;  %v529_v23 = vshll.u32 %v6322_v12, 16  ;;  %v535_v24 = vshll.u32 %v6326_v14, 16  ;;  %v539_v27 = vshrl.u32 %v6326_v14, 16  ;;  %v6343_v30 = vld [vmem:[%s6303_s29 + $0x10] sm:$0xf] }
  0x18   : > { %v340_v25 = vor.u32 %v339_v18, %v336_v17  ;;  %v350_v26 = vor.u32 %v349_v20, %v345_v19  ;;  %v545_v28 = vshll.u32 %v6329_v15, 16  ;;  %v528_v33 = vrot.slane %v526_v22, 4  ;;  %v6353_v41 = vld [vmem:[%s6303_s29 + $0x14] sm:$0x1]  ;;  %v6364_v53 = vld [vmem:[%s6303_s29 + $0x6c] sm:$0xf] }
  0x19   : > { %v531_v34 = vrot.slane %v529_v23, 5  ;;  %v537_v35 = vrot.slane %v535_v24, 5  ;;  %v541_v38 = vrot.slane %v539_v27, 4  ;;  %v358_v42 = vshrl.u32 %v6340_v29, 16  ;;  %v6368_v58 = vld [vmem:[%s6303_s29 + $0x70] sm:$0xf] }
  0x1a   : > { %v341_v36 = vrot.slane %v340_v25, 4  ;;  %v351_v37 = vrot.slane %v350_v26, 4  ;;  %v547_v39 = vrot.slane %v545_v28, 5  ;;  %v361_v43 = vshll.u32 %v6340_v29, 16  ;;  %v6376_v63 = vld [vmem:[%s6303_s29 + $0x74] sm:$0x1] }
  0x1b   : > { %v532_v40 = vor.u32 %v531_v34, %v528_v33  ;;  %v367_v44 = vshll.u32 %v6343_v30, 16  ;;  %v542_v47 = vor.u32 %v541_v38, %v537_v35  ;;  %v371_v48 = vshrl.u32 %v6343_v30, 16  ;;  %v6382_v8 = vld [vmem:[%s6303_s29 + $0x18] sm:$0xf]  ;;  %v6395_v25 = vld [vmem:[%s6303_s29 + $0x20] sm:$0x1] }
  0x1c   : > { %v346_v45 = vsel %vm6347_vm4, %v341_v36, %v345_v19  ;;  %v356_v46 = vsel %vm6347_vm4, %v351_v37, %v355_v21  ;;  %v360_v51 = vrot.slane %v358_v42, 4  ;;  %v363_v52 = vrot.slane %v361_v43, 5  ;;  %v6389_v21 = vld [vmem:[%s6303_s29 + $0x1c] sm:$0xf]  ;;  %s5128_s24 = sshll.u32 %s9253_s20, 3 }
  0x1d   : > { %v5130_v49 = vcombine.low %v346_v45, %v356_v46  ;;  %v533_v50 = vrot.slane %v532_v40, 4  ;;  %v543_v54 = vrot.slane %v542_v47, 4  ;;  %v369_v55 = vrot.slane %v367_v44, 5  ;;  %v6408_v40 = vld [vmem:[%s8970_s1 + $0x8] sm:$0x3]  ;;  %s8791_s27 = scalar_lea.vmem %s8973_s4, %s5128_s24 }
  0x1e   : > { %v373_v56 = vrot.slane %v371_v48, 4  ;;  %v377_v57 = vshll.u32 %v6353_v41, 16  ;;  %v364_v60 = vor.u32 %v363_v52, %v360_v51  ;;  %v550_v3 = vshrl.u32 %v6364_v53, 16  ;;  %v6413_v46 = vld [vmem:[%s6303_s29 + $0x7c] sm:$0xf] }
  0x1f   : > { %5824 = vmatprep.mubr.msk.bf16.mxu0 %vm767_vm3, %v5130_v49  ;;  %v538_v59 = vsel %vm6347_vm4, %v533_v50, %v537_v35  ;;  %v548_v0 = vsel %vm6347_vm4, %v543_v54, %v547_v39  ;;  %v553_v11 = vshll.u32 %v6364_v53, 16  ;;  %v559_v13 = vshll.u32 %v6368_v58, 16  ;;  %v6402_v35 = vld [vmem:[%s6303_s29 + $0x78] sm:$0xf] }
  0x20   : > { %v374_v1 = vor.u32 %v373_v56, %v369_v55  ;;  %v379_v2 = vrot.slane %v377_v57, 5  ;;  %v5138_v9 = vcombine.low %v538_v59, %v548_v0  ;;  %v365_v10 = vrot.slane %v364_v60, 4  ;;  %v6420_v56 = vld [vmem:[%s6303_s29 + $0x80] sm:$0x1] }
  0x21   : > { %v552_v18 = vrot.slane %v550_v3, 4  ;;  %v563_v19 = vshrl.u32 %v6368_v58, 16  ;;  %v569_v20 = vshll.u32 %v6376_v63, 16  ;;  %v555_v23 = vrot.slane %v553_v11, 5  ;;  %9009 = vst [vmem:[#allocation2_spill] sm:$0xff] %v6420_v56 }
  0x22   : > { %v375_v17 = vrot.slane %v374_v1, 4  ;;  %5840 = vmatprep.mubr.msk.bf16.mxu1 %vm767_vm3, %v5138_v9  ;;  %v370_v22 = vsel %vm6347_vm4, %v365_v10, %v369_v55  ;;  %v561_v24 = vrot.slane %v559_v13, 5  ;;  %v382_v26 = vshrl.u32 %v6382_v8, 16  ;;  %v6426_v1 = vld [vmem:[%s6303_s29 + $0x24] sm:$0xf] }
  0x23   : > { %v565_v28 = vrot.slane %v563_v19, 4  ;;  %v571_v33 = vrot.slane %v569_v20, 5  ;;  %v385_v34 = vshll.u32 %v6382_v8, 16  ;;  %v556_v37 = vor.u32 %v555_v23, %v552_v18  ;;  %v6434_v10 = vld [vmem:[%s6303_s29 + $0x28] sm:$0xf] }
  0x24   : > { %v380_v27 = vsel %vm6347_vm4, %v375_v17, %v379_v2  ;;  %v384_v38 = vrot.slane %v382_v26, 4  ;;  %v391_v39 = vshll.u32 %v6389_v21, 16  ;;  %v395_v44 = vshrl.u32 %v6389_v21, 16  ;;  %v6440_v19 = vld [vmem:[%s8970_s1 + $0x6] sm:$0x3] }
  0x25   : > { %v5131_v36 = vcombine.low %v370_v22, %v380_v27  ;;  %v566_v42 = vor.u32 %v565_v28, %v561_v24  ;;  %v387_v43 = vrot.slane %v385_v34, 5  ;;  %v401_v45 = vshll.u32 %v6395_v25, 16 }
  0x26   : > { %v557_v47 = vrot.slane %v556_v37, 4  ;;  %v393_v48 = vrot.slane %v391_v39, 5  ;;  %v574_v49 = vshrl.u32 %v6402_v35, 16  ;;  %v577_v50 = vshll.u32 %v6402_v35, 16 }
  0x27   : > { %5825 = vmatmul.mubr.msk.bf16.vlgmr.msra.gmra.mxu0 %vm767_vm3, %v5131_v36  ;;  %v567_v51 = vrot.slane %v566_v42, 4  ;;  %v388_v52 = vor.u32 %v387_v43, %v384_v38  ;;  %v397_v54 = vrot.slane %v395_v44, 4  ;;  %v403_v55 = vrot.slane %v401_v45, 5  ;;  %v6452_v36 = vld [vmem:[%s6303_s29 + $0x84] sm:$0xf] }
  0x28   : > { %5891 = vmatpush3.bf16.msra.mxu0 %v6332_v16  ;;  %v562_v57 = vsel %vm6347_vm4, %v557_v47, %v561_v24  ;;  %v576_v59 = vrot.slane %v574_v49, 4  ;;  %v579_v60 = vrot.slane %v577_v50, 5  ;;  %v583_v0 = vshll.u32 %v6413_v46, 16  ;;  %v6445_v24 = vld [vmem:[%s6303_s29 + $0x2c] sm:$0x1] }
  0x29   : > { %6135 = vmatprep.subr.msk.bf16.mxu0 %vm816_vm0, %v6408_v40  ;;  %v572_v16 = vsel %vm6347_vm4, %v567_v51, %v571_v33  ;;  %v389_v2 = vrot.slane %v388_v52, 4  ;;  %v398_v3 = vor.u32 %v397_v54, %v393_v48  ;;  %v587_v9 = vshrl.u32 %v6413_v46, 16  ;;  %v6459_v43 = vld [vmem:[%s6303_s29 + $0x88] sm:$0xf]  ;;  %v6467_v51 = vld [vmem:[%s6303_s29 + $0x8c] sm:$0x1] }
  0x2a   : > { %v5139_v11 = vcombine.low %v562_v57, %v572_v16  ;;  %v580_v13 = vor.u32 %v579_v60, %v576_v59  ;;  %v585_v17 = vrot.slane %v583_v0, 5  ;;  %v593_v18 = vshll.u32 %v6420_v56, 16  ;;  %9010 = vst [vmem:[#allocation3_spill] sm:$0xff] %v6467_v51  ;;  %v6475_v60 = vld [vmem:[%s6303_s29 + $0x30] sm:$0xf] }
  0x2b   : > { %v394_v20 = vsel %vm6347_vm4, %v389_v2, %v393_v48  ;;  %v399_v22 = vrot.slane %v398_v3, 4  ;;  %v589_v23 = vrot.slane %v587_v9, 4  ;;  %v406_v26 = vshrl.u32 %v6426_v1, 16  ;;  %v6480_v9 = vld [vmem:[%s6303_s29 + $0x34] sm:$0xf] }
  0x2c   : > { %5841 = vmatmul.mubr.msk.bf16.vlgmr.msra.gmra.mxu1 %vm767_vm3, %v5139_v11  ;;  %v581_v27 = vrot.slane %v580_v13, 4  ;;  %v595_v28 = vrot.slane %v593_v18, 5  ;;  %v409_v33 = vshll.u32 %v6426_v1, 16  ;;  %v415_v34 = vshll.u32 %v6434_v10, 16 }
  0x2d   : > { %5857 = vmatpush3.bf16.msra.mxu1 %v6306_v4  ;;  %v404_v37 = vsel %vm6347_vm4, %v399_v22, %v403_v55  ;;  %v590_v38 = vor.u32 %v589_v23, %v585_v17  ;;  %v408_v39 = vrot.slane %v406_v26, 4  ;;  %v419_v42 = vshrl.u32 %v6434_v10, 16 }
  0x2e   : > { %v5132_v44 = vcombine.low %v394_v20, %v404_v37  ;;  %v586_v45 = vsel %vm6347_vm4, %v581_v27, %v585_v17  ;;  %v411_v47 = vrot.slane %v409_v33, 5  ;;  %v417_v48 = vrot.slane %v415_v34, 5  ;;  %6134 = vmatprep.subr.msk.bf16.mxu1 %vm816_vm0, %v6440_v19  ;;  %v6488_v33 = vld [vmem:[%s6303_s29 + $0x38] sm:$0x1] }
  0x2f   : > { %v591_v4 = vrot.slane %v590_v38, 4  ;;  %v421_v49 = vrot.slane %v419_v42, 4  ;;  %v425_v50 = vshll.u32 %v6445_v24, 16  ;;  %v598_v52 = vshrl.u32 %v6452_v36, 16  ;;  %v6493_v38 = vld [vmem:[%s6303_s29 + $0x90] sm:$0xf] }
  0x30   : > { %5828 = vmatprep.mubr.msk.bf16.mxu0 %vm767_vm3, %v5132_v44  ;;  %v412_v54 = vor.u32 %v411_v47, %v408_v39  ;;  %v601_v55 = vshll.u32 %v6452_v36, 16  ;;  %v607_v57 = vshll.u32 %v6459_v43, 16  ;;  %v611_v59 = vshrl.u32 %v6459_v43, 16  ;;  %9011 = vst [vmem:[#allocation4_spill] sm:$0xff] %v6493_v38  ;;  %v6498_v47 = vld [vmem:[%s6303_s29 + $0x94] sm:$0xf] }
  0x31   : > { %v596_v0 = vsel %vm6347_vm4, %v591_v4, %v595_v28  ;;  %v422_v16 = vor.u32 %v421_v49, %v417_v48  ;;  %v427_v2 = vrot.slane %v425_v50, 5  ;;  %v600_v3 = vrot.slane %v598_v52, 4  ;;  %9012 = vst [vmem:[#allocation5_spill] sm:$0xff] %v6498_v47 }
  0x32   : > { %v5140_v11 = vcombine.low %v586_v45, %v596_v0  ;;  %v413_v13 = vrot.slane %v412_v54, 4  ;;  %v603_v17 = vrot.slane %v601_v55, 5  ;;  %v609_v18 = vrot.slane %v607_v57, 5 }
  0x33   : > { %v423_v20 = vrot.slane %v422_v16, 4  ;;  %v613_v22 = vrot.slane %v611_v59, 4  ;;  %v617_v23 = vshll.u32 %v6467_v51, 16  ;;  %v430_v26 = vshrl.u32 %v6475_v60, 16  ;;  %v6507_v16 = vld [vmem:[%s6303_s29 + $0x98] sm:$0x1] }
  0x34   : > { %5844 = vmatprep.mubr.msk.bf16.mxu1 %vm767_vm3, %v5140_v11  ;;  %v418_v27 = vsel %vm6347_vm4, %v413_v13, %v417_v48  ;;  %v604_v28 = vor.u32 %v603_v17, %v600_v3  ;;  %v433_v34 = vshll.u32 %v6475_v60, 16  ;;  %v439_v37 = vshll.u32 %v6480_v9, 16  ;;  %9013 = vst [vmem:[#allocation6_spill] sm:$0xff] %v6507_v16  ;;  %v6512_v11 = vld [vmem:[%s6303_s29 + $0x3c] sm:$0xf] }
  0x35   : > { %v428_v39 = vsel %vm6347_vm4, %v423_v20, %v427_v2  ;;  %v614_v42 = vor.u32 %v613_v22, %v609_v18  ;;  %v619_v44 = vrot.slane %v617_v23, 5  ;;  %v432_v45 = vrot.slane %v430_v26, 4  ;;  %v6517_v23 = vld [vmem:[%s6303_s29 + $0x40] sm:$0xf]  ;;  %v1274_v51 = vld [vmem:[%s6303_s29 + $0xc] sm:$0xe] }
  0x36   : > { %v5133_v48 = vcombine.low %v418_v27, %v428_v39  ;;  %v605_v4 = vrot.slane %v604_v28, 4  ;;  %v435_v49 = vrot.slane %v433_v34, 5  ;;  %v441_v50 = vrot.slane %v439_v37, 5 }
  0x37   : > { %v615_v52 = vrot.slane %v614_v42, 4  ;;  %v443_v54 = vshrl.u32 %v6480_v9, 16  ;;  %v449_v55 = vshll.u32 %v6488_v33, 16  ;;  %v622_v57 = vshrl.u32 %v6493_v38, 16 }
  0x38   : > { %5829 = vmatmul.mubr.msk.bf16.gmra.mxu0 %vm767_vm3, %v5133_v48  ;;  %v610_v59 = vsel %vm6347_vm4, %v605_v4, %v609_v18  ;;  %v436_v0 = vor.u32 %v435_v49, %v432_v45  ;;  %v625_v2 = vshll.u32 %v6493_v38, 16  ;;  %v631_v3 = vshll.u32 %v6498_v47, 16  ;;  %v6526_v48 = vld [vmem:[%s6303_s29 + $0x44] sm:$0x1] }
  0x39   : > { %v620_v13 = vsel %vm6347_vm4, %v615_v52, %v619_v44  ;;  %v445_v17 = vrot.slane %v443_v54, 4  ;;  %v451_v20 = vrot.slane %v449_v55, 5  ;;  %v624_v22 = vrot.slane %v622_v57, 4  ;;  %v6531_v52 = vld [vmem:[%s6303_s29 + $0x9c] sm:$0xf] }
  0x3a   : > { %v5141_v18 = vcombine.low %v610_v59, %v620_v13  ;;  %v437_v26 = vrot.slane %v436_v0, 4  ;;  %v627_v27 = vrot.slane %v625_v2, 5  ;;  %v633_v28 = vrot.slane %v631_v3, 5  ;;  %9014 = vst [vmem:[#allocation7_spill] sm:$0xff] %v6531_v52  ;;  %v6535_v13 = vld [vmem:[%s6303_s29 + $0xa0] sm:$0xf] }
  0x3b   : > { %v446_v34 = vor.u32 %v445_v17, %v441_v50  ;;  %v635_v37 = vshrl.u32 %v6498_v47, 16  ;;  %v641_v39 = vshll.u32 %v6507_v16, 16  ;;  %v454_v42 = vshrl.u32 %v6512_v11, 16  ;;  %9015 = vst [vmem:[#allocation8_spill] sm:$0xff] %v6535_v13 }
  0x3c   : > { %5845 = vmatmul.mubr.msk.bf16.gmra.mxu1 %vm767_vm3, %v5141_v18  ;;  %v442_v44 = vsel %vm6347_vm4, %v437_v26, %v441_v50  ;;  %v628_v45 = vor.u32 %v627_v27, %v624_v22  ;;  %v457_v4 = vshll.u32 %v6512_v11, 16  ;;  %v463_v49 = vshll.u32 %v6517_v23, 16  ;;  %v6541_v26 = vld [vmem:[%s6303_s29 + $0xa4] sm:$0x1] }
  0x3d   : > { %v447_v54 = vrot.slane %v446_v34, 4  ;;  %v637_v55 = vrot.slane %v635_v37, 4  ;;  %v643_v57 = vrot.slane %v641_v39, 5  ;;  %v456_v59 = vrot.slane %v454_v42, 4  ;;  %9016 = vst [vmem:[#allocation9_spill] sm:$0xff] %v6541_v26 }
  0x3e   : > { %v629_v0 = vrot.slane %v628_v45, 4  ;;  %v459_v2 = vrot.slane %v457_v4, 5  ;;  %v465_v3 = vrot.slane %v463_v49, 5  ;;  %v467_v50 = vshrl.u32 %v6517_v23, 16  ;;  %v6545_v34 = vld [vmem:[%s6303_s29 + $0x48] sm:$0xf] }
  0x3f   : > { %v452_v17 = vsel %vm6347_vm4, %v447_v54, %v451_v20  ;;  %v638_v22 = vor.u32 %v637_v55, %v633_v28  ;;  %v473_v18 = vshll.u32 %v6526_v48, 16  ;;  %v646_v27 = vshrl.u32 %v6531_v52, 16 }
  0x40   : > { %v5134_v37 = vcombine.low %v442_v44, %v452_v17  ;;  %v634_v39 = vsel %vm6347_vm4, %v629_v0, %v633_v28  ;;  %v460_v42 = vor.u32 %v459_v2, %v456_v59  ;;  %v469_v45 = vrot.slane %v467_v50, 4  ;;  %v6554_v17 = vld [vmem:[%s6303_s29 + $0x4c] sm:$0xf]  ;;  %v6560_v2 = vld [vmem:[%s6303_s29 + $0x50] sm:$0x1] }
  0x41   : > { %v639_v4 = vrot.slane %v638_v22, 4  ;;  %v475_v49 = vrot.slane %v473_v18, 5  ;;  %v648_v20 = vrot.slane %v646_v27, 4  ;;  %v649_v54 = vshll.u32 %v6531_v52, 16 }
  0x42   : > { %5832 = vmatprep.mubr.msk.bf16.mxu0 %vm767_vm3, %v5134_v37  ;;  %v461_v55 = vrot.slane %v460_v42, 4  ;;  %v470_v62 = vor.u32 %v469_v45, %v465_v3  ;;  %v655_v32 = vshll.u32 %v6535_v13, 16  ;;  %v659_v44 = vshrl.u32 %v6535_v13, 16  ;;  %v6566_v42 = vld [vmem:[%s6303_s29 + $0xa8] sm:$0xf] }
  0x43   : > { %v644_v28 = vsel %vm6347_vm4, %v639_v4, %v643_v57  ;;  %v651_v59 = vrot.slane %v649_v54, 5  ;;  %v665_v0 = vshll.u32 %v6541_v26, 16  ;;  %v478_v50 = vshrl.u32 %v6545_v34, 16  ;;  %9017 = vst [vmem:[#allocation10_spill] sm:$0xff] %v6566_v42 }
  0x44   : > { %v5142_v22 = vcombine.low %v634_v39, %v644_v28  ;;  %v466_v18 = vsel %vm6347_vm4, %v461_v55, %v465_v3  ;;  %v471_v27 = vrot.slane %v470_v62, 4  ;;  %v657_v37 = vrot.slane %v655_v32, 5 }
  0x45   : > { %v652_v45 = vor.u32 %v651_v59, %v648_v20  ;;  %v661_v61 = vrot.slane %v659_v44, 4  ;;  %v667_v57 = vrot.slane %v665_v0, 5  ;;  %v480_v4 = vrot.slane %v478_v50, 4  ;;  %v6576_v44 = vld [vmem:[%s6303_s29 + $0xac] sm:$0xf] }
  0x46   : > { %5848 = vmatprep.mubr.msk.bf16.mxu1 %vm767_vm3, %v5142_v22  ;;  %v476_v54 = vsel %vm6347_vm4, %v471_v27, %v475_v49  ;;  %v481_v39 = vshll.u32 %v6545_v34, 16  ;;  %v487_v28 = vshll.u32 %v6554_v17, 16  ;;  %v491_v62 = vshrl.u32 %v6554_v17, 16  ;;  %9018 = vst [vmem:[#allocation11_spill] sm:$0xff] %v6576_v44  ;;  %v6579_v22 = vld [vmem:[%s6303_s29 + $0xb0] sm:$0x1] }
  0x47   : > { %v5135_v3 = vcombine.low %v466_v18, %v476_v54  ;;  %v653_v32 = vrot.slane %v652_v45, 4  ;;  %v662_v55 = vor.u32 %v661_v61, %v657_v37  ;;  %v497_v20 = vshll.u32 %v6560_v2, 16  ;;  %9019 = vst [vmem:[#allocation12_spill] sm:$0xff] %v6579_v22 }
  0x48   : > { %v483_v59 = vrot.slane %v481_v39, 5  ;;  %v489_v0 = vrot.slane %v487_v28, 5  ;;  %v493_v50 = vrot.slane %v491_v62, 4  ;;  %v670_v49 = vshrl.u32 %v6566_v42, 16  ;;  %v6588_v62 = vld [vmem:[%s6303_s29 + $0x54] sm:$0xf] }
  0x49   : > { %5833 = vmatmul.mubr.msk.bf16.gmra.mxu0 %vm767_vm3, %v5135_v3  ;;  %v658_v18 = vsel %vm6347_vm4, %v653_v32, %v657_v37  ;;  %v663_v27 = vrot.slane %v662_v55, 4  ;;  %v499_v61 = vrot.slane %v497_v20, 5  ;;  %v673_v45 = vshll.u32 %v6566_v42, 16  ;;  %v6595_v55 = vld [vmem:[%s6303_s29 + $0x58] sm:$0xf] }
  0x4a   : > { %v484_v54 = vor.u32 %v483_v59, %v480_v4  ;;  %v494_v56 = vor.u32 %v493_v50, %v489_v0  ;;  %v672_v39 = vrot.slane %v670_v49, 4  ;;  %v679_v28 = vshll.u32 %v6576_v44, 16  ;;  %v6598_v49 = vld [vmem:[%s6303_s29 + $0x5c] sm:$0x1] }
  0x4b   : > { %v668_v3 = vsel %vm6347_vm4, %v663_v27, %v667_v57  ;;  %v675_v26 = vrot.slane %v673_v45, 5  ;;  %v683_v37 = vshrl.u32 %v6576_v44, 16  ;;  %v689_v32 = vshll.u32 %v6579_v22, 16  ;;  %v1273_v22 = vld [vmem:[%s6303_s29] sm:$0xe] }
  0x4c   : > { %v5143_v4 = vcombine.low %v658_v18, %v668_v3  ;;  %v485_v20 = vrot.slane %v484_v54, 4  ;;  %v495_v59 = vrot.slane %v494_v56, 4  ;;  %v681_v50 = vrot.slane %v679_v28, 5  ;;  %v6609_v54 = vld [vmem:[%s6303_s29 + $0xb4] sm:$0xf] }
  0x4d   : > { %v676_v42 = vor.u32 %v675_v26, %v672_v39  ;;  %v685_v52 = vrot.slane %v683_v37, 4  ;;  %v691_v13 = vrot.slane %v689_v32, 5  ;;  %v502_v57 = vshrl.u32 %v6588_v62, 16  ;;  %9020 = vst [vmem:[#allocation13_spill] sm:$0xff] %v6609_v54  ;;  %v6612_v37 = vld [vmem:[%s6303_s29 + $0xb8] sm:$0xf] }
  0x4e   : > { %5849 = vmatmul.mubr.msk.bf16.gmra.mxu1 %vm767_vm3, %v5143_v4  ;;  %v490_v27 = vsel %vm6347_vm4, %v485_v20, %v489_v0  ;;  %v500_v18 = vsel %vm6347_vm4, %v495_v59, %v499_v61  ;;  %v505_v56 = vshll.u32 %v6588_v62, 16  ;;  %v511_v45 = vshll.u32 %v6595_v55, 16  ;;  %v6617_v61 = vld [vmem:[%s6303_s29 + $0xbc] sm:$0x1] }
  0x4f   : > { %v5136_v26 = vcombine.low %v490_v27, %v500_v18  ;;  %v677_v39 = vrot.slane %v676_v42, 4  ;;  %v686_v28 = vor.u32 %v685_v52, %v681_v50  ;;  %v504_v3 = vrot.slane %v502_v57, 4 }
  0x50   : > { %v507_v32 = vrot.slane %v505_v56, 5  ;;  %v513_v4 = vrot.slane %v511_v45, 5  ;;  %v515_v0 = vshrl.u32 %v6595_v55, 16  ;;  %v521_v20 = vshll.u32 %v6598_v49, 16 }
  0x51   : > { %5836 = vmatprep.mubr.msk.bf16.mxu0 %vm767_vm3, %v5136_v26  ;;  %v682_v59 = vsel %vm6347_vm4, %v677_v39, %v681_v50  ;;  %v687_v27 = vrot.slane %v686_v28, 4  ;;  %v694_v52 = vshrl.u32 %v6609_v54, 16  ;;  %v697_v42 = vshll.u32 %v6609_v54, 16 }
  0x52   : > { %v508_v57 = vor.u32 %v507_v32, %v504_v3  ;;  %v517_v18 = vrot.slane %v515_v0, 4  ;;  %v523_v56 = vrot.slane %v521_v20, 5  ;;  %v703_v45 = vshll.u32 %v6612_v37, 16 }
  0x53   : > { %v692_v44 = vsel %vm6347_vm4, %v687_v27, %v691_v13  ;;  %v696_v16 = vrot.slane %v694_v52, 4  ;;  %v699_v26 = vrot.slane %v697_v42, 5  ;;  %v707_v38 = vshrl.u32 %v6612_v37, 16 }
  0x54   : > { %v5144_v50 = vcombine.low %v682_v59, %v692_v44  ;;  %v509_v39 = vrot.slane %v508_v57, 4  ;;  %v518_v28 = vor.u32 %v517_v18, %v513_v4  ;;  %v705_v47 = vrot.slane %v703_v45, 5  ;;  %v1275_v57 = vld [vmem:[%s6303_s29 + $0x18] sm:$0xe] }
  0x55   : > { %v700_v54 = vor.u32 %v699_v26, %v696_v16  ;;  %v709_v3 = vrot.slane %v707_v38, 4  ;;  %v713_v32 = vshll.u32 %v6617_v61, 16  ;;  %v5194_v13 = vrot.slane %v1273_v22, 9 }
  0x56   : > { %5852 = vmatprep.mubr.msk.bf16.mxu1 %vm767_vm3, %v5144_v50  ;;  %v514_v44 = vsel %vm6347_vm4, %v509_v39, %v513_v4  ;;  %v519_v20 = vrot.slane %v518_v28, 4  ;;  %v1326_v59 = vrot.slane %v6312_v6, 5  ;;  %v5163_v38 = vcombine.low %v6340_v29, %v6343_v30 }
  0x57   : > { %v701_v16 = vrot.slane %v700_v54, 4  ;;  %v710_v27 = vor.u32 %v709_v3, %v705_v47  ;;  %v715_v52 = vrot.slane %v713_v32, 5  ;;  %v5195_v42 = vrot.slane %v1274_v51, 9 }
  0x58   : > { %v524_v18 = vsel %vm6347_vm4, %v519_v20, %v523_v56  ;;  %v1327_v22 = vsel %vm6633_vm7, %v5194_v13, %v1326_v59  ;;  %v1328_v45 = vrot.slane %v1326_v59, 4  ;;  %v9023_v4 = vrot.slane %v6343_v30, 5 }
  0x59   : > { %v5137_v50 = vcombine.low %v514_v44, %v524_v18  ;;  %v706_v54 = vsel %vm6347_vm4, %v701_v16, %v705_v47  ;;  %v711_v39 = vrot.slane %v710_v27, 4  ;;  %v5162_v51 = vcombine.low %v6309_v5, %v6312_v6  ;;  %v1276_v27 = vld [vmem:[%s6303_s29 + $0x24] sm:$0xe] }
  0x5a   : > { %v1335_v26 = vrot.slane %v9023_v4, 4  ;;  %v9024_v28 = vrot.slane %v6315_v7, 5  ;;  %v9025_v3 = vmov %v9023_v4  ;;  %v5164_v13 = vcombine.low %v6382_v8, %v6389_v21  ;;  %v1278_v4 = vld [vmem:[%s6303_s29 + $0x3c] sm:$0xe] }
  0x5b   : > { %v1334_v32 = vsel %vm6633_vm7, %v5195_v42, %v9025_v3  ;;  %v5196_v44 = vrot.slane %v1275_v57, 9  ;;  %5837 = vmatmul.mubr.msk.bf16.gmra.mxu0 %vm767_vm3, %v5137_v50  ;;  %v716_v47 = vsel %vm6347_vm4, %v711_v39, %v715_v52  ;;  %v9026_v6 = vrot.slane %v6353_v41, 5  ;;  %v1277_v42 = vld [vmem:[%s6303_s29 + $0x30] sm:$0xe]  ;;  %v1279_v39 = vld [vmem:[%s6303_s29 + $0x48] sm:$0xe] }
  0x5c   : > { %v1330_v56 = vsel %vm6633_vm7, %v1328_v45, %v9024_v28  ;;  %v1340_v20 = vrot.slane %v6389_v21, 5  ;;  %v5145_v59 = vcombine.low %v706_v54, %v716_v47  ;;  %v1343_v16 = vrot.slane %v6395_v25, 5  ;;  %v1280_v47 = vld [vmem:[%s6303_s29 + $0x54] sm:$0xe]  ;;  %v6928_v21 = vld [vmem:[%s6303_s29 + $0x2c] sm:$0x1] }
  0x5d   : > { %v5211_v5 = vcombine.low %v1327_v22, %v1330_v56  ;;  %v1337_v7 = vsel %vm6633_vm7, %v1335_v26, %v9026_v6  ;;  %v1897_v52 = vsel %vm816_vm0, %v6440_v19, 0  ;;  %v1347_v18 = vrot.slane %v6434_v10, 5 }
  0x5e   : > { %v1341_v41 = vsel %vm6633_vm7, %v5196_v44, %v1340_v20  ;;  %v1342_v57 = vrot.slane %v1340_v20, 4  ;;  %5853 = vmatmul.mubr.msk.bf16.gmra.mxu1 %vm767_vm3, %v5145_v59  ;;  %v5212_v22 = vcombine.low %v1334_v32, %v1337_v7  ;;  %v2623_v25 = vsel %vm816_vm0, %v6408_v40, 0 }
  0x5f   : > { %5892 = vmatprep.mubr.msk.bf16.mxu0 %vm767_vm3, %v5211_v5  ;;  %v1354_v45 = vrot.slane %v6480_v9, 5  ;;  %5858 = vmatprep.mubr.msk.bf16.mxu1 %vm767_vm3, %v5162_v51  ;;  %v5197_v26 = vrot.slane %v1276_v27, 9  ;;  %v1350_v50 = vrot.slane %v6445_v24, 5  ;;  %v5198_v54 = vrot.slane %v1277_v42, 9  ;;  %v6700_v24 = vld [vmem:[%s8970_s1 + $0xc] sm:$0x3] }
  0x60   : > { %v1344_v19 = vsel %vm6633_vm7, %v1342_v57, %v1343_v16  ;;  %v1349_v56 = vrot.slane %v1347_v18, 4  ;;  %v1357_v32 = vrot.slane %v6488_v33, 5  ;;  %v5199_v44 = vrot.slane %v1278_v4, 9 }
  0x61   : > { %v5213_v28 = vcombine.low %v1341_v41, %v1344_v19  ;;  %v1356_v3 = vrot.slane %v1354_v45, 4  ;;  %v1361_v40 = vrot.slane %v6517_v23, 5  ;;  %v1385_v5 = vrot.slane %v6329_v15, 5 }
  0x62   : > { %v1364_v51 = vrot.slane %v6526_v48, 5  ;;  %v5200_v6 = vrot.slane %v1279_v39, 9  ;;  %v1368_v7 = vrot.slane %v6554_v17, 5  ;;  %v5165_v33 = vcombine.low %v6426_v1, %v6434_v10  ;;  %v1281_v1 = vld [vmem:[%s6303_s29 + $0x60] sm:$0xe] }
  0x63   : > { %5893 = vmatmul.mubr.msk.bf16.vlgmr.msra.gmra.mxu0 %vm767_vm3, %v5212_v22  ;;  %v1348_v20 = vsel %vm6633_vm7, %v5197_v26, %v1347_v18  ;;  %v1363_v59 = vrot.slane %v1361_v40, 4  ;;  %v1371_v16 = vrot.slane %v6560_v2, 5  ;;  %v1351_v48 = vsel %vm6633_vm7, %v1349_v56, %v1350_v50  ;;  %v6728_v22 = vld [vmem:[%s8970_s1 + $0xa] sm:$0x3]  ;;  %v6753_v50 = vld [vmem:[%s6303_s29 + $0x6c] sm:$0xe] }
  0x64   : > { %5959 = vmatpush3.bf16.msra.mxu0 %v2623_v25  ;;  %5896 = vmatprep.mubr.msk.bf16.mxu0 %vm767_vm3, %v5213_v28  ;;  %v1355_v27 = vsel %vm6633_vm7, %v5198_v54, %v1354_v45  ;;  %v1358_v42 = vsel %vm6633_vm7, %v1356_v3, %v1357_v32  ;;  %v1370_v41 = vrot.slane %v1368_v7, 4  ;;  %v6718_v10 = vsel %vm6633_vm7, %v5199_v44, %v1361_v40  ;;  %v1284_v39 = vld [vmem:[%s6303_s29 + $0x84] sm:$0xe]  ;;  %v6782_v44 = vld [vmem:[%s6303_s29 + $0x78] sm:$0xe] }
  0x65   : > { %v6722_v2 = vsel %vm6633_vm7, %v5200_v6, %v1368_v7  ;;  %v5201_v57 = vrot.slane %v1280_v47, 9  ;;  %v1375_v18 = vrot.slane %v6595_v55, 5  ;;  %6137 = vmatprep.subr.msk.bf16.mxu0 %vm816_vm0, %v6700_v24  ;;  %v6738_v25 = vsel %vm6633_vm7, %v1363_v59, %v1364_v51  ;;  %v1285_v40 = vld [vmem:[%s6303_s29 + $0x90] sm:$0xe] }
  0x66   : > { %5859 = vmatmul.mubr.msk.bf16.vlgmr.msra.gmra.mxu1 %vm767_vm3, %v5163_v38  ;;  %v6742_v45 = vsel %vm6633_vm7, %v1370_v41, %v1371_v16  ;;  %v1378_v4 = vrot.slane %v6598_v49, 5  ;;  %v1382_v19 = vrot.slane %v6326_v14, 5  ;;  %v5214_v29 = vcombine.low %v1348_v20, %v1351_v48  ;;  %v9027_v48 = vld [vmem:[#allocation3_spill] sm:$0xff] }
  0x67   : > { %5925 = vmatpush3.bf16.msra.mxu1 %v1897_v52  ;;  %5862 = vmatprep.mubr.msk.bf16.mxu1 %vm767_vm3, %v5164_v13  ;;  %v5166_v30 = vcombine.low %v6475_v60, %v6480_v9  ;;  %v1377_v38 = vrot.slane %v1375_v18, 4  ;;  %v5202_v26 = vrot.slane %v1281_v1, 9  ;;  %v5215_v49 = vcombine.low %v1355_v27, %v1358_v42  ;;  %v1286_v42 = vld [vmem:[%s6303_s29 + $0x9c] sm:$0xe] }
  0x68   : > { %v5167_v52 = vcombine.low %v6512_v11, %v6517_v23  ;;  %v5168_v8 = vcombine.low %v6545_v34, %v6554_v17  ;;  %6136 = vmatprep.subr.msk.bf16.mxu1 %vm816_vm0, %v6728_v22  ;;  %v5216_v60 = vcombine.low %v6718_v10, %v6738_v25  ;;  %v5217_v9 = vcombine.low %v6722_v2, %v6742_v45  ;;  %v9028_v10 = vld [vmem:[#allocation5_spill] sm:$0xff]  ;;  %v9029_v2 = vld [vmem:[#allocation4_spill] sm:$0xff] }
  0x69   : > { %v1384_v54 = vrot.slane %v1382_v19, 4  ;;  %v6772_v28 = vsel %vm6633_vm7, %v5201_v57, %v1375_v18  ;;  %v6776_v56 = vsel %vm6633_vm7, %v1377_v38, %v1378_v4  ;;  %v5203_v32 = vrot.slane %v6753_v50, 9  ;;  %v1287_v18 = vld [vmem:[%s6303_s29 + $0xa8] sm:$0xe]  ;;  %v9031_v38 = vld [vmem:[#allocation8_spill] sm:$0xff] }
  0x6a   : > { %v6788_v47 = vsel %vm6633_vm7, %v5202_v26, %v1382_v19  ;;  %v1389_v51 = vrot.slane %v6368_v58, 5  ;;  %v1392_v6 = vrot.slane %v6376_v63, 5  ;;  %v5205_v59 = vrot.slane %v1284_v39, 9  ;;  %v9030_v19 = vld [vmem:[#allocation6_spill] sm:$0xff]  ;;  %v9032_v26 = vld [vmem:[#allocation7_spill] sm:$0xff] }
  0x6b   : > { %5897 = vmatmul.mubr.msk.bf16.gmra.mxu0 %vm767_vm3, %v5214_v29  ;;  %v1403_v16 = vrot.slane %v6459_v43, 5  ;;  %v1406_v27 = vrot.slane %v9027_v48, 5  ;;  %v5218_v41 = vcombine.low %v6772_v28, %v6776_v56  ;;  %v6806_v63 = vsel %vm6633_vm7, %v1384_v54, %v1385_v5  ;;  %v9034_v48 = vld [vmem:[#allocation11_spill] sm:$0xff] }
  0x6c   : > { %5900 = vmatprep.mubr.msk.bf16.mxu0 %vm767_vm3, %v5215_v49  ;;  %v5204_v1 = vrot.slane %v6782_v44, 9  ;;  %v5206_v4 = vrot.slane %v1285_v40, 9  ;;  %v1410_v15 = vrot.slane %v9028_v10, 5  ;;  %v1391_v5 = vrot.slane %v1389_v51, 4  ;;  %v5308_v57 = vld [vmem:[%s6303_s29 + $0xc] sm:$0xf] }
  0x6d   : > { %v6815_v25 = vsel %vm6633_vm7, %v5205_v59, %v1403_v16  ;;  %v1405_v45 = vrot.slane %v1403_v16, 4  ;;  %v1413_v29 = vrot.slane %v9030_v19, 5  ;;  %v5207_v49 = vrot.slane %v1286_v42, 9  ;;  %v9033_v59 = vld [vmem:[#allocation9_spill] sm:$0xff]  ;;  %v9035_v42 = vld [vmem:[#allocation10_spill] sm:$0xff] }
  0x6e   : > { %5863 = vmatmul.mubr.msk.bf16.gmra.mxu1 %vm767_vm3, %v5165_v33  ;;  %v1396_v33 = vrot.slane %v6413_v46, 5  ;;  %v6829_v39 = vsel %vm6633_vm7, %v5206_v4, %v1410_v15  ;;  %v1412_v44 = vrot.slane %v1410_v15, 4  ;;  %v1417_v40 = vrot.slane %v9031_v38, 5  ;;  %v9036_v15 = vld [vmem:[#allocation12_spill] sm:$0xff] }
  0x6f   : > { %5866 = vmatprep.mubr.msk.bf16.mxu1 %vm767_vm3, %v5166_v30  ;;  %v6825_v54 = vsel %vm6633_vm7, %v1405_v45, %v1406_v27  ;;  %v1420_v16 = vrot.slane %v9033_v59, 5  ;;  %v5208_v45 = vrot.slane %v1287_v18, 9  ;;  %v1424_v4 = vrot.slane %v9034_v48, 5 }
  0x70   : > { %v6839_v27 = vsel %vm6633_vm7, %v1412_v44, %v1413_v29  ;;  %v1427_v50 = vrot.slane %v9036_v15, 5  ;;  %v6849_v19 = vsel %vm6633_vm7, %v5207_v49, %v1417_v40  ;;  %v1419_v7 = vrot.slane %v1417_v40, 4  ;;  %v9037_v29 = vld [vmem:[#allocation13_spill] sm:$0xff]  ;;  %v9038_v15 = vld [vmem:[#allocation2_spill] sm:$0xff]  ;;  %v6864_v49 = vld [vmem:[%s6303_s29 + $0x10] sm:$0xf] }
  0x71   : > { %v6856_v18 = vsel %vm6633_vm7, %v5203_v32, %v1389_v51  ;;  %v6861_v59 = vsel %vm6633_vm7, %v5208_v45, %v1424_v4  ;;  %v1426_v30 = vrot.slane %v1424_v4, 4  ;;  %v5311_v40 = vld [vmem:[%s6303_s29 + $0x18] sm:$0xf]  ;;  %v1398_v20 = vrot.slane %v1396_v33, 4 }
  0x72   : > { %v2141_v44 = vshrl.u32 %v5308_v57, 16  ;;  %v2144_v32 = vshll.u32 %v5308_v57, 16  ;;  %v5219_v51 = vcombine.low %v6788_v47, %v6806_v63  ;;  %v6879_v45 = vsel %vm6633_vm7, %v1391_v5, %v1392_v6  ;;  %v1288_v57 = vld [vmem:[%s6303_s29 + $0xb4] sm:$0xe]  ;;  %v6900_v47 = vld [vmem:[%s6303_s29 + $0x14] sm:$0x1] }
  0x73   : > { %5901 = vmatmul.mubr.msk.bf16.gmra.mxu0 %vm767_vm3, %v5216_v60  ;;  %v1399_v60 = vrot.slane %v9038_v15, 5  ;;  %v6894_v11 = vsel %vm6633_vm7, %v5204_v1, %v1396_v33  ;;  %v2150_v6 = vshll.u32 %v6864_v49, 16  ;;  %v5312_v63 = vld [vmem:[%s6303_s29 + $0x1c] sm:$0xf]  ;;  %v2154_v17 = vshrl.u32 %v6864_v49, 16 }
  0x74   : > { %5904 = vmatprep.mubr.msk.bf16.mxu0 %vm767_vm3, %v5217_v9  ;;  %v6869_v9 = vsel %vm6633_vm7, %v1419_v7, %v1420_v16  ;;  %v6885_v7 = vsel %vm6633_vm7, %v1426_v30, %v1427_v50  ;;  %v2143_v5 = vrot.slane %v2141_v44, 4  ;;  %v2146_v34 = vrot.slane %v2144_v32, 5  ;;  %v5314_v15 = vld [vmem:[%s6303_s29 + $0x24] sm:$0xf]  ;;  %v6913_v44 = vld [vmem:[%s6303_s29 + $0x28] sm:$0xf] }
  0x75   : > { %v2165_v50 = vshrl.u32 %v5311_v40, 16  ;;  %v1400_v1 = vsel %vm6633_vm7, %v1398_v20, %v1399_v60  ;;  %v5209_v33 = vrot.slane %v1288_v57, 9  ;;  %v6908_v30 = vrot.slane %v2150_v6, 5 }
  0x76   : > { %5867 = vmatmul.mubr.msk.bf16.gmra.mxu1 %vm767_vm3, %v5167_v52  ;;  %v1431_v52 = vrot.slane %v6612_v37, 5  ;;  %v2168_v16 = vshll.u32 %v5311_v40, 16  ;;  %v1434_v23 = vrot.slane %v6617_v61, 5  ;;  %v2156_v4 = vrot.slane %v2154_v17, 4 }
  0x77   : > { %5870 = vmatprep.mubr.msk.bf16.mxu1 %vm767_vm3, %v5168_v8  ;;  %v5313_v8 = vld [vmem:[%s6303_s29 + $0x20] sm:$0x1]  ;;  %v2167_v3 = vrot.slane %v2165_v50, 4  ;;  %v2174_v13 = vshll.u32 %v5312_v63, 16  ;;  %v2160_v20 = vshll.u32 %v6900_v47, 16  ;;  %v2178_v57 = vshrl.u32 %v5312_v63, 16 }
  0x78   : > { %v1433_v32 = vrot.slane %v1431_v52, 4  ;;  %v2170_v60 = vrot.slane %v2168_v16, 5  ;;  %v5220_v61 = vcombine.low %v6856_v18, %v6879_v45  ;;  %v5221_v40 = vcombine.low %v6894_v11, %v1400_v1 }
  0x79   : > { %v2147_v6 = vor.u32 %v2146_v34, %v2143_v5  ;;  %v6924_v17 = vrot.slane %v2174_v13, 5  ;;  %v2157_v28 = vor.u32 %v2156_v4, %v6908_v30  ;;  %v2184_v50 = vshll.u32 %v5313_v8, 16  ;;  %v6951_v5 = vld [vmem:[%s6303_s29 + $0x34] sm:$0xf] }
  0x7a   : > { %v2171_v56 = vor.u32 %v2170_v60, %v2167_v3  ;;  %v6936_v18 = vsel %vm6633_vm7, %v5209_v33, %v1431_v52  ;;  %v2189_v13 = vshrl.u32 %v5314_v15, 16  ;;  %v2192_v45 = vshll.u32 %v5314_v15, 16  ;;  %v5317_v52 = vld [vmem:[%s6303_s29 + $0x30] sm:$0xf] }
  0x7b   : > { %5905 = vmatmul.mubr.msk.bf16.gmra.mxu0 %vm767_vm3, %v5218_v41  ;;  %v2180_v41 = vrot.slane %v2178_v57, 4  ;;  %v2198_v11 = vshll.u32 %v6913_v44, 16  ;;  %v9040_v3 = vcombine.low %v6322_v12, %v6326_v14  ;;  %v6945_v4 = vsel %vm6633_vm7, %v1433_v32, %v1434_v23 }
  0x7c   : > { %5908 = vmatprep.mubr.msk.bf16.mxu0 %vm767_vm3, %v5219_v51  ;;  %v9039_v51 = vcombine.low %v6588_v62, %v6595_v55  ;;  %v2162_v62 = vrot.slane %v2160_v20, 5  ;;  %v2202_v63 = vshrl.u32 %v6913_v44, 16  ;;  %v2148_v34 = vrot.slane %v2147_v6, 4 }
  0x7d   : > { %v2181_v55 = vor.u32 %v2180_v41, %v6924_v17  ;;  %v2191_v8 = vrot.slane %v2189_v13, 4  ;;  %v2194_v1 = vrot.slane %v2192_v45, 5  ;;  %v6953_v33 = vrot.slane %v2198_v11, 5  ;;  %v6959_v41 = vld [vmem:[%s6303_s29 + $0x38] sm:$0x1] }
  0x7e   : > { %5871 = vmatmul.mubr.msk.bf16.gmra.mxu1 %vm767_vm3, %v9039_v51  ;;  %v2158_v12 = vrot.slane %v2157_v28, 4  ;;  %v2172_v14 = vrot.slane %v2171_v56, 4  ;;  %v2186_v16 = vrot.slane %v2184_v50, 5  ;;  %v2204_v23 = vrot.slane %v2202_v63, 4  ;;  %v5320_v13 = vld [vmem:[%s6303_s29 + $0x3c] sm:$0xf] }
  0x7f   : > { %5874 = vmatprep.mubr.msk.bf16.mxu1 %vm767_vm3, %v9040_v3  ;;  %v2182_v15 = vrot.slane %v2181_v55, 4  ;;  %v2208_v32 = vshll.u32 %v6928_v21, 16  ;;  %v2213_v20 = vshrl.u32 %v5317_v52, 16  ;;  %v2216_v60 = vshll.u32 %v5317_v52, 16 }
  0x80   : > { %v2195_v57 = vor.u32 %v2194_v1, %v2191_v8  ;;  %v2205_v6 = vor.u32 %v2204_v23, %v6953_v33  ;;  %v2222_v28 = vshll.u32 %v6951_v5, 16  ;;  %v2226_v56 = vshrl.u32 %v6951_v5, 16  ;;  %v5323_v8 = vld [vmem:[%s6303_s29 + $0x48] sm:$0xf]  ;;  %v6986_v1 = vld [vmem:[%s6303_s29 + $0x4c] sm:$0xf] }
  0x81   : > { %v2215_v50 = vrot.slane %v2213_v20, 4  ;;  %v2218_v51 = vrot.slane %v2216_v60, 5  ;;  %v9041_v3 = vcombine.low %v6364_v53, %v6368_v58  ;;  %v5226_v55 = vcombine.low %v6936_v18, %v6945_v4 }
  0x82   : > { %v6965_v45 = vrot.slane %v2222_v28, 5  ;;  %v2228_v11 = vrot.slane %v2226_v56, 4  ;;  %v2163_v63 = vsel %vm6347_vm4, %v2158_v12, %v2162_v62  ;;  %v2177_v52 = vsel %vm6347_vm4, %v2172_v14, %v6924_v17 }
  0x83   : > { %5909 = vmatmul.mubr.msk.bf16.gmra.mxu0 %vm767_vm3, %v5220_v61  ;;  %v6968_v61 = vld [vmem:[%s6303_s29 + $0x40] sm:$0xf]  ;;  %v9042_v53 = vcombine.low %v6402_v35, %v6413_v46  ;;  %v2187_v58 = vsel %vm6347_vm4, %v2182_v15, %v2186_v16  ;;  %v2196_v23 = vrot.slane %v2195_v57, 4  ;;  %v2219_v20 = vor.u32 %v2218_v51, %v2215_v50  ;;  %v7020_v50 = vld [vmem:[%s6303_s29 + $0x44] sm:$0x1] }
  0x84   : > { %5912 = vmatprep.mubr.msk.bf16.mxu0 %vm767_vm3, %v5221_v40  ;;  %v2153_v40 = vsel %vm6347_vm4, %v2148_v34, %v6908_v30  ;;  %v2206_v30 = vrot.slane %v2205_v6, 4  ;;  %v2210_v34 = vrot.slane %v2208_v32, 5  ;;  %v2232_v62 = vshll.u32 %v6959_v41, 16  ;;  %v5326_v51 = vld [vmem:[%s6303_s29 + $0x54] sm:$0xf] }
  0x85   : > { %v2237_v12 = vshrl.u32 %v5320_v13, 16  ;;  %v2240_v17 = vshll.u32 %v5320_v13, 16  ;;  %v6997_v14 = vsel %vm816_vm0, %v6728_v22, 0  ;;  %v2229_v35 = vor.u32 %v2228_v11, %v6965_v45 }
  0x86   : > { %5875 = vmatmul.mubr.msk.bf16.gmra.mxu1 %vm767_vm3, %v9041_v3  ;;  %v2246_v46 = vshll.u32 %v6968_v61, 16  ;;  %v2250_v16 = vshrl.u32 %v6968_v61, 16  ;;  %v7002_v15 = vcombine.low %v2153_v40, %v2163_v63  ;;  %v7006_v32 = vsel %vm816_vm0, %v6700_v24, 0  ;;  %v7029_v40 = vld [vmem:[%s6303_s29 + $0x58] sm:$0xf] }
  0x87   : > { %5878 = vmatprep.mubr.msk.bf16.mxu1 %vm767_vm3, %v9042_v53  ;;  %v2261_v60 = vshrl.u32 %v5323_v8, 16  ;;  %v2264_v57 = vshll.u32 %v5323_v8, 16  ;;  %v9043_v6 = vcombine.low %v6815_v25, %v6825_v54  ;;  %v7012_v22 = vcombine.low %v2177_v52, %v2187_v58  ;;  %v7034_v8 = vld [vmem:[%s6303_s29 + $0x50] sm:$0x1] }
  0x88   : > { %v2201_v28 = vsel %vm6347_vm4, %v2196_v23, %v6953_v33  ;;  %v2211_v56 = vsel %vm6347_vm4, %v2206_v30, %v2210_v34  ;;  %v2270_v24 = vshll.u32 %v6986_v1, 16  ;;  %v9044_v25 = vcombine.low %v6829_v39, %v6839_v27  ;;  %v5329_v34 = vld [vmem:[%s6303_s29 + $0x60] sm:$0xf] }
  0x89   : > { %v2220_v54 = vrot.slane %v2219_v20, 4  ;;  %v2234_v13 = vrot.slane %v2232_v62, 5  ;;  %v2239_v11 = vrot.slane %v2237_v12, 4  ;;  %v2242_v3 = vrot.slane %v2240_v17, 5 }
  0x8a   : > { %v2230_v33 = vrot.slane %v2229_v35, 4  ;;  %v7031_v63 = vrot.slane %v2246_v46, 5  ;;  %v2252_v52 = vrot.slane %v2250_v16, 4  ;;  %v2274_v53 = vshrl.u32 %v6986_v1, 16  ;;  %v7051_v35 = vld [vmem:[%s6303_s29 + $0x5c] sm:$0x1] }
  0x8b   : > { %5913 = vmatmul.mubr.msk.bf16.gmra.mxu0 %vm767_vm3, %v9043_v6  ;;  %v9045_v39 = vcombine.low %v6452_v36, %v6459_v43  ;;  %v2263_v27 = vrot.slane %v2261_v60, 4  ;;  %v2266_v58 = vrot.slane %v2264_v57, 5  ;;  %v2285_v23 = vshrl.u32 %v5326_v51, 16 }
  0x8c   : > { %5916 = vmatprep.mubr.msk.bf16.mxu0 %vm767_vm3, %v9044_v25  ;;  %v2288_v30 = vshll.u32 %v5326_v51, 16  ;;  %v9046_v20 = vcombine.low %v9029_v2, %v9028_v10  ;;  %v7046_v62 = vcombine.low %v2201_v28, %v2211_v56  ;;  %v7048_v12 = vrot.slane %v2270_v24, 5  ;;  %v7064_v28 = vld [vmem:[%s6303_s29 + $0x64] sm:$0xf] }
  0x8d   : > { %v2276_v17 = vrot.slane %v2274_v53, 4  ;;  %v2294_v36 = vshll.u32 %v7029_v40, 16  ;;  %v2256_v43 = vshll.u32 %v7020_v50, 16  ;;  %v2287_v46 = vrot.slane %v2285_v23, 4 }
  0x8e   : > { %5879 = vmatmul.mubr.msk.bf16.gmra.mxu1 %vm767_vm3, %v9045_v39  ;;  %v2290_v16 = vrot.slane %v2288_v30, 5  ;;  %v2298_v60 = vshrl.u32 %v7029_v40, 16  ;;  %v2225_v10 = vsel %vm6347_vm4, %v2220_v54, %v6965_v45  ;;  %v2235_v2 = vsel %vm6347_vm4, %v2230_v33, %v2234_v13  ;;  %v7086_v30 = vld [vmem:[%s6303_s29 + $0x68] sm:$0x1] }
  0x8f   : > { %5882 = vmatprep.mubr.msk.bf16.mxu1 %vm767_vm3, %v9046_v20  ;;  %v2243_v57 = vor.u32 %v2242_v3, %v2239_v11  ;;  %v7061_v6 = vrot.slane %v2294_v36, 5  ;;  %v2253_v56 = vor.u32 %v2252_v52, %v7031_v63  ;;  %v2267_v24 = vor.u32 %v2266_v58, %v2263_v27  ;;  %v5332_v3 = vld [vmem:[%s6303_s29 + $0x6c] sm:$0xf]  ;;  %v7083_v27 = vld [vmem:[%s6303_s29 + $0x70] sm:$0xf] }
  0x90   : > { %v2280_v51 = vshll.u32 %v7034_v8, 16  ;;  %v2300_v25 = vrot.slane %v2298_v60, 4  ;;  %v9047_v53 = vcombine.low %v6849_v19, %v6869_v9  ;;  %v2277_v45 = vor.u32 %v2276_v17, %v7048_v12 }
  0x91   : > { %v2291_v54 = vor.u32 %v2290_v16, %v2287_v46  ;;  %v2309_v13 = vshrl.u32 %v5329_v34, 16  ;;  %v2312_v11 = vshll.u32 %v5329_v34, 16  ;;  %v9048_v33 = vcombine.low %v6861_v59, %v6885_v7  ;;  %v5335_v16 = vld [vmem:[%s6303_s29 + $0x78] sm:$0xf] }
  0x92   : > { %v2301_v52 = vor.u32 %v2300_v25, %v7061_v6  ;;  %v2304_v39 = vshll.u32 %v7051_v35, 16  ;;  %v2318_v19 = vshll.u32 %v7064_v28, 16  ;;  %v2322_v9 = vshrl.u32 %v7064_v28, 16 }
  0x93   : > { %5917 = vmatmul.mubr.msk.bf16.gmra.mxu0 %vm767_vm3, %v9047_v53  ;;  %v2244_v58 = vrot.slane %v2243_v57, 4  ;;  %v2258_v23 = vrot.slane %v2256_v43, 5  ;;  %v2311_v34 = vrot.slane %v2309_v13, 4  ;;  %v2314_v20 = vrot.slane %v2312_v11, 5 }
  0x94   : > { %5920 = vmatprep.mubr.msk.bf16.mxu0 %vm767_vm3, %v9048_v33  ;;  %v9049_v59 = vcombine.low %v9032_v26, %v9031_v38  ;;  %v7092_v7 = vcombine.low %v2225_v10, %v2235_v2  ;;  %v2254_v17 = vrot.slane %v2253_v56, 4  ;;  %v2268_v36 = vrot.slane %v2267_v24, 4  ;;  %v7102_v2 = vld [vmem:[%s6303_s29 + $0x7c] sm:$0xf] }
  0x95   : > { %v7094_v46 = vrot.slane %v2318_v19, 5  ;;  %v9050_v43 = vcombine.low %v9035_v42, %v9034_v48  ;;  %v2278_v60 = vrot.slane %v2277_v45, 4  ;;  %v2282_v57 = vrot.slane %v2280_v51, 5  ;;  %9051 = vst [vmem:[#allocation3_spill] sm:$0xff] %v7102_v2  ;;  %v5338_v19 = vld [vmem:[%s6303_s29 + $0x84] sm:$0xf] }
  0x96   : > { %5883 = vmatmul.mubr.msk.bf16.gmra.mxu1 %vm767_vm3, %v9049_v59  ;;  %v2292_v25 = vrot.slane %v2291_v54, 4  ;;  %v2324_v38 = vrot.slane %v2322_v9, 4  ;;  %v2302_v26 = vrot.slane %v2301_v52, 4  ;;  %v2306_v53 = vrot.slane %v2304_v39, 5 }
  0x97   : > { %5886 = vmatprep.mubr.msk.bf16.mxu1 %vm767_vm3, %v9050_v43  ;;  %v2315_v13 = vor.u32 %v2314_v20, %v2311_v34  ;;  %v2333_v10 = vshrl.u32 %v5332_v3, 16  ;;  %v2249_v56 = vsel %vm6347_vm4, %v2244_v58, %v7031_v63  ;;  %v2336_v24 = vshll.u32 %v5332_v3, 16  ;;  %v6181_v63 = vld [vmem:[%s6303_s29 + $0xc] sm:$0xff]   ;;  %v7136_v34 = vld [vmem:[%s6303_s29 + $0x88] sm:$0xf] }
  0x98   : > { %v2342_v48 = vshll.u32 %v7083_v27, 16  ;;  %v2346_v42 = vshrl.u32 %v7083_v27, 16  ;;  %v2259_v51 = vsel %vm6347_vm4, %v2254_v17, %v2258_v23  ;;  %v2273_v45 = vsel %vm6347_vm4, %v2268_v36, %v7048_v12  ;;  %9052 = vst [vmem:[#allocation5_spill] sm:$0xff] %v7136_v34  ;;  %v7145_v36 = vld [vmem:[%s6303_s29 + $0x74] sm:$0x1] }
  0x99   : > { %v2325_v54 = vor.u32 %v2324_v38, %v7094_v46  ;;  %v2328_v11 = vshll.u32 %v7086_v30, 16  ;;  %v2283_v3 = vsel %vm6347_vm4, %v2278_v60, %v2282_v57  ;;  %v2297_v33 = vsel %vm6347_vm4, %v2292_v25, %v7061_v6  ;;  %9054 = vst [vmem:[#allocation4_spill] sm:$0xff] %v7145_v36  ;;  %v7155_v38 = vld [vmem:[%s6303_s29 + $0x80] sm:$0x1] }
  0x9a   : > { %v2357_v52 = vshrl.u32 %v5335_v16, 16  ;;  %v2360_v12 = vshll.u32 %v5335_v16, 16  ;;  %v2307_v18 = vsel %vm6347_vm4, %v2302_v26, %v2306_v53  ;;  %v2316_v4 = vrot.slane %v2315_v13, 4  ;;  %9055 = vst [vmem:[#allocation6_spill] sm:$0xff] %v7155_v38  ;;  %v7158_v26 = vld [vmem:[%s6303_s29 + $0x8c] sm:$0x1] }
  0x9b   : > { %5921 = vmatmul.mubr.msk.bf16.gmra.mxu0 %vm767_vm3, %v5226_v55  ;;  %v2335_v55 = vrot.slane %v2333_v10, 4  ;;  %v2366_v39 = vshll.u32 %v7102_v2, 16  ;;  %v2338_v9 = vrot.slane %v2336_v24, 5  ;;  %v7132_v58 = vrot.slane %v2342_v48, 5  ;;  %9056 = vst [vmem:[#allocation8_spill] sm:$0xff] %v7158_v26  ;;  %v6182_v10 = vld [vmem:[%s6303_s29 + $0x18] sm:$0xff]  }
  0x9c   : > { %5960 = vmatprep.mubr.msk.bf16.mxu0 %vm767_vm3, %v7002_v15  ;;  %v2348_v23 = vrot.slane %v2346_v42, 4  ;;  %v2370_v6 = vshrl.u32 %v7102_v2, 16  ;;  %v9053_v15 = vcombine.low %v9037_v29, %v6612_v37  ;;  %v7142_v20 = vcombine.low %v2249_v56, %v2259_v51  ;;  %v5341_v51 = vld [vmem:[%s6303_s29 + $0x90] sm:$0xf] }
  0x9d   : > { %v2326_v59 = vrot.slane %v2325_v54, 4  ;;  %v2330_v17 = vrot.slane %v2328_v11, 5  ;;  %v2359_v16 = vrot.slane %v2357_v52, 4  ;;  %v2362_v43 = vrot.slane %v2360_v12, 5 }
  0x9e   : > { %5887 = vmatmul.mubr.msk.bf16.gmra.mxu1 %vm767_vm3, %v9053_v15  ;;  %v7148_v60 = vrot.slane %v2366_v39, 5  ;;  %v2372_v57 = vrot.slane %v2370_v6, 4  ;;  %v2381_v25 = vshrl.u32 %v5338_v19, 16  ;;  %v7150_v37 = vcombine.low %v2273_v45, %v2283_v3  ;;  %v7169_v45 = vld [vmem:[%s6303_s29 + $0x94] sm:$0xf] }
  0x9f   : > { %5926 = vmatprep.mubr.msk.bf16.mxu1 %vm767_vm3, %v6181_v63  ;;  %v7152_v29 = vcombine.low %v2297_v33, %v2307_v18  ;;  %v2384_v53 = vshll.u32 %v5338_v19, 16  ;;  %v2390_v13 = vshll.u32 %v7136_v34, 16  ;;  %v2321_v56 = vsel %vm6347_vm4, %v2316_v4, %v7094_v46  ;;  %9057 = vst [vmem:[#allocation7_spill] sm:$0xff] %v7169_v45  ;;  %v7177_v33 = vld [vmem:[%s8970_s1 + $0x10] sm:$0x3]  ;;  %v6183_v46 = vld [vmem:[%s6303_s29 + $0x24] sm:$0xff]  }
  0xa0   : > { %v2339_v24 = vor.u32 %v2338_v9, %v2335_v55  ;;  %v2349_v48 = vor.u32 %v2348_v23, %v7132_v58  ;;  %v2352_v42 = vshll.u32 %v7145_v36, 16  ;;  %v2383_v54 = vrot.slane %v2381_v25, 4  ;;  %9058 = vst [vmem:[#allocation9_spill] sm:$0xff] %v7177_v33 }
  0xa1   : > { %v2386_v11 = vrot.slane %v2384_v53, 5  ;;  %v7171_v63 = vrot.slane %v2390_v13, 5  ;;  %v2394_v3 = vshrl.u32 %v7136_v34, 16  ;;  %v2331_v52 = vsel %vm6347_vm4, %v2326_v59, %v2330_v17 }
  0xa2   : > { %v2363_v12 = vor.u32 %v2362_v43, %v2359_v16  ;;  %v2373_v18 = vor.u32 %v2372_v57, %v7148_v60  ;;  %v2376_v4 = vshll.u32 %v7155_v38, 16  ;;  %v2405_v19 = vshrl.u32 %v5341_v51, 16  ;;  %v7211_v57 = vld [vmem:[%s6303_s29 + $0xa0] sm:$0xf] }
  0xa3   : > { %5961 = vmatmul.mubr.msk.bf16.vlgmr.msra.gmra.mxu0 %vm767_vm3, %v7012_v22  ;;  %v2387_v55 = vor.u32 %v2386_v11, %v2383_v54  ;;  %v2396_v39 = vrot.slane %v2394_v3, 4  ;;  %v2408_v9 = vshll.u32 %v5341_v51, 16  ;;  %v5344_v22 = vld [vmem:[%s6303_s29 + $0x9c] sm:$0xf]  ;;  %v7190_v23 = vrot.slane %v2339_v24, 4  ;;  %9060 = vst [vmem:[#allocation10_spill] sm:$0xff] %v7211_v57 }
  0xa4   : > { %6027 = vmatpush3.bf16.msra.mxu0 %v7006_v32  ;;  %5964 = vmatprep.mubr.msk.bf16.mxu0 %vm767_vm3, %v7046_v62  ;;  %v7192_v6 = vrot.slane %v2352_v42, 5  ;;  %v2400_v15 = vshll.u32 %v7158_v26, 16  ;;  %v2414_v59 = vshll.u32 %v7169_v45, 16  ;;  %v7199_v32 = vld [vmem:[%s8970_s1 + $0xe] sm:$0x3]  ;;  %v7204_v62 = vcombine.low %v2321_v56, %v2331_v52 }
  0xa5   : > { %9059 = vst [vmem:[#allocation11_spill] sm:$0xff] %v7199_v32  ;;  %6139 = vmatprep.subr.msk.bf16.mxu0 %vm816_vm0, %v7177_v33  ;;  %v7206_v17 = vrot.slane %v2349_v48, 4  ;;  %v2397_v16 = vor.u32 %v2396_v39, %v7171_v63  ;;  %v2418_v43 = vshrl.u32 %v7169_v45, 16  ;;  %v7215_v25 = vrot.slane %v2363_v12, 4  ;;  %v7224_v56 = vld [vmem:[%s6303_s29 + $0x98] sm:$0x1] }
  0xa6   : > { %5927 = vmatmul.mubr.msk.bf16.vlgmr.msra.gmra.mxu1 %vm767_vm3, %v6182_v10  ;;  %v7217_v53 = vrot.slane %v2373_v18, 4  ;;  %v7219_v13 = vrot.slane %v2376_v4, 5  ;;  %v7221_v10 = vrot.slane %v2387_v55, 4  ;;  %9061 = vst [vmem:[#allocation12_spill] sm:$0xff] %v7224_v56  ;;  %v2407_v24 = vrot.slane %v2405_v19, 4  ;;  %v6185_v19 = vld [vmem:[%s6303_s29 + $0x3c] sm:$0xff]  }
  0xa7   : > { %5993 = vmatpush3.bf16.msra.mxu1 %v6997_v14  ;;  %5930 = vmatprep.mubr.msk.bf16.mxu1 %vm767_vm3, %v6183_v46  ;;  %v2410_v48 = vrot.slane %v2408_v9, 5  ;;  %v2429_v42 = vshrl.u32 %v5344_v22, 16  ;;  %v2432_v51 = vshll.u32 %v5344_v22, 16  ;;  %v6184_v14 = vld [vmem:[%s6303_s29 + $0x30] sm:$0xff]   ;;  %v7233_v11 = vrot.slane %v2400_v15, 5 }
  0xa8   : > { %6138 = vmatprep.subr.msk.bf16.mxu1 %vm816_vm0, %v7199_v32  ;;  %v7235_v3 = vrot.slane %v2414_v59, 5  ;;  %v2438_v46 = vshll.u32 %v7211_v57, 16  ;;  %v5347_v52 = vld [vmem:[%s6303_s29 + $0xa8] sm:$0xf]  ;;  %v7239_v12 = vrot.slane %v2397_v16, 4  ;;  %v2420_v18 = vrot.slane %v2418_v43, 4 }
  0xa9   : > { %v2424_v4 = vshll.u32 %v7224_v56, 16  ;;  %v2442_v55 = vshrl.u32 %v7211_v57, 16  ;;  %v7244_v39 = vld [vmem:[%s6303_s29 + $0xac] sm:$0xf]  ;;  %v2411_v59 = vor.u32 %v2410_v48, %v2407_v24  ;;  %v7268_v16 = vld [vmem:[%s6303_s29 + $0xa4] sm:$0x1] }
  0xaa   : > { %9062 = vst [vmem:[#allocation13_spill] sm:$0xff] %v7244_v39  ;;  %9063 = vst [vmem:[#allocation2_spill] sm:$0xff] %v7268_v16  ;;  %v2431_v43 = vrot.slane %v2429_v42, 4  ;;  %v2434_v22 = vrot.slane %v2432_v51, 5  ;;  %v2453_v54 = vshrl.u32 %v5347_v52, 16  ;;  %v7270_v9 = vrot.slane %v2438_v46, 5 }
  0xab   : > { %5965 = vmatmul.mubr.msk.bf16.gmra.mxu0 %vm767_vm3, %v7092_v7  ;;  %v2444_v32 = vrot.slane %v2442_v55, 4  ;;  %v2456_v15 = vshll.u32 %v5347_v52, 16  ;;  %v2462_v33 = vshll.u32 %v7244_v39, 16  ;;  %v5350_v57 = vld [vmem:[%s6303_s29 + $0xb4] sm:$0xf]  ;;  %v2421_v24 = vor.u32 %v2420_v18, %v7235_v3 }
  0xac   : > { %5968 = vmatprep.mubr.msk.bf16.mxu0 %vm767_vm3, %v7142_v20  ;;  %v2403_v20 = vsel %vm6347_vm4, %v7239_v12, %v7233_v11  ;;  %v7280_v48 = vrot.slane %v2424_v4, 5  ;;  %v7283_v42 = vld [vmem:[%s6303_s29 + $0xb0] sm:$0x1]  ;;  %v2455_v51 = vrot.slane %v2453_v54, 4  ;;  %v7286_v46 = vld [vmem:[%s6303_s29 + $0xb8] sm:$0xf]  ;;  %v2435_v18 = vor.u32 %v2434_v22, %v2431_v43 }
  0xad   : > { %9064 = vst [vmem:[#allocation14_spill] sm:$0xff] %v7283_v42  ;;  %9065 = vst [vmem:[#allocation15_spill] sm:$0xff] %v7286_v46  ;;  %v2458_v52 = vrot.slane %v2456_v15, 5  ;;  %v7290_v55 = vrot.slane %v2462_v33, 5  ;;  %v2466_v11 = vshrl.u32 %v7244_v39, 16  ;;  %v7293_v12 = vrot.slane %v2411_v59, 4 }
  0xae   : > { %5931 = vmatmul.mubr.msk.bf16.gmra.mxu1 %vm767_vm3, %v6184_v14  ;;  %v2448_v14 = vshll.u32 %v7268_v16, 16  ;;  %v7296_v4 = vld [vmem:[%s6303_s29 + $0xbc] sm:$0x1]  ;;  %v2477_v54 = vshrl.u32 %v5350_v57, 16  ;;  %v2480_v7 = vshll.u32 %v5350_v57, 16  ;;  %v2445_v56 = vor.u32 %v2444_v32, %v7270_v9  ;;  %v6186_v16 = vld [vmem:[%s6303_s29 + $0x48] sm:$0xff]  }
  0xaf   : > { %5934 = vmatprep.mubr.msk.bf16.mxu1 %vm767_vm3, %v6185_v19  ;;  %v2468_v45 = vrot.slane %v2466_v11, 4  ;;  %v2472_v19 = vshll.u32 %v7283_v42, 16  ;;  %v2486_v15 = vshll.u32 %v7286_v46, 16  ;;  %v5353_v33 = vld [vmem:[%s6303_s29 + $0xc0] sm:$0xf]  ;;  %v2459_v26 = vor.u32 %v2458_v52, %v2455_v51  ;;  %v6187_v57 = vld [vmem:[%s6303_s29 + $0x54] sm:$0xff]  }
  0xb0   : > { %v2479_v39 = vrot.slane %v2477_v54, 4  ;;  %v2482_v34 = vrot.slane %v2480_v7, 5  ;;  %v2490_v59 = vshrl.u32 %v7286_v46, 16  ;;  %v7305_v22 = vld [vmem:[%s6303_s29 + $0xc4] sm:$0xf]  ;;  %v2422_v43 = vrot.slane %v2421_v24, 4 }
  0xb1   : > { %v2450_v32 = vrot.slane %v2448_v14, 5  ;;  %v2469_v11 = vor.u32 %v2468_v45, %v7290_v55  ;;  %v2488_v42 = vrot.slane %v2486_v15, 5  ;;  %v2496_v7 = vshll.u32 %v7296_v4, 16  ;;  %v7317_v45 = vld [vmem:[%s6303_s29 + $0xc8] sm:$0x1] }
  0xb2   : > { %v2483_v51 = vor.u32 %v2482_v34, %v2479_v39  ;;  %v2492_v52 = vrot.slane %v2490_v59, 4  ;;  %v2501_v54 = vshrl.u32 %v5353_v33, 16  ;;  %v2436_v46 = vrot.slane %v2435_v18, 4 }
  0xb3   : > { %5969 = vmatmul.mubr.msk.bf16.gmra.mxu0 %vm767_vm3, %v7150_v37  ;;  %v2446_v38 = vrot.slane %v2445_v56, 4  ;;  %v2504_v2 = vshll.u32 %v5353_v33, 16  ;;  %v2510_v37 = vshll.u32 %v7305_v22, 16  ;;  %v2460_v24 = vrot.slane %v2459_v26, 4 }
  0xb4   : > { %5972 = vmatprep.mubr.msk.bf16.mxu0 %vm767_vm3, %v7152_v29  ;;  %v2474_v14 = vrot.slane %v2472_v19, 5  ;;  %v2493_v36 = vor.u32 %v2492_v52, %v2488_v42  ;;  %v2503_v15 = vrot.slane %v2501_v54, 4  ;;  %v2470_v34 = vrot.slane %v2469_v11, 4 }
  0xb5   : > { %v2506_v29 = vrot.slane %v2504_v2, 5  ;;  %v7320_v39 = vrot.slane %v2510_v37, 5  ;;  %v2514_v56 = vshrl.u32 %v7305_v22, 16  ;;  %v9066_v26 = vsel %vm6347_vm4, %v7206_v17, %v7192_v6 }
  0xb6   : > { %5935 = vmatmul.mubr.msk.bf16.gmra.mxu1 %vm767_vm3, %v6186_v16  ;;  %v9067_v16 = vsel %vm6347_vm4, %v7190_v23, %v7132_v58  ;;  %v2484_v19 = vrot.slane %v2483_v51, 4  ;;  %v2494_v33 = vrot.slane %v2493_v36, 4  ;;  %v2498_v2 = vrot.slane %v2496_v7, 5  ;;  %v6188_v23 = vld [vmem:[%s6303_s29 + $0x60] sm:$0xff]  }
  0xb7   : > { %5938 = vmatprep.mubr.msk.bf16.mxu1 %vm767_vm3, %v6187_v57  ;;  %v5365_v18 = vcombine.low %v9067_v16, %v9066_v26  ;;  %v9068_v59 = vsel %vm6347_vm4, %v7217_v53, %v7219_v13  ;;  %v9069_v6 = vsel %vm6347_vm4, %v7215_v25, %v7148_v60  ;;  %v2507_v57 = vor.u32 %v2506_v29, %v2503_v15  ;;  %v5391_v13 = vld [vmem:[%s6303_s29 + $0x24] sm:$0xe]  ;;  %v5394_v26 = vld [vmem:[%s6303_s29 + $0x48] sm:$0xe] }
  0xb8   : > { %v5366_v17 = vcombine.low %v9069_v6, %v9068_v59  ;;  %v2516_v11 = vrot.slane %v2514_v56, 4  ;;  %v2520_v58 = vshll.u32 %v7317_v45, 16  ;;  %v9070_v36 = vsel %vm6347_vm4, %v7221_v10, %v7171_v63  ;;  %v6189_v63 = vld [vmem:[%s6303_s29 + $0x6c] sm:$0xff]   ;;  %v5395_v6 = vld [vmem:[%s6303_s29 + $0x54] sm:$0xe] }
  0xb9   : > { %v5367_v51 = vcombine.low %v9070_v36, %v2403_v20  ;;  %v2417_v53 = vsel %vm6347_vm4, %v7293_v12, %v7235_v3  ;;  %v2427_v60 = vsel %vm6347_vm4, %v2422_v43, %v7280_v48  ;;  %v2441_v25 = vsel %vm6347_vm4, %v2436_v46, %v7270_v9  ;;  %v7373_v12 = vld [vmem:[%s6303_s29 + $0xc] sm:$0xe] }
  0xba   : > { %v2451_v10 = vsel %vm6347_vm4, %v2446_v38, %v2450_v32  ;;  %v2465_v3 = vsel %vm6347_vm4, %v2460_v24, %v7290_v55  ;;  %v2475_v20 = vsel %vm6347_vm4, %v2470_v34, %v2474_v14  ;;  %v2517_v48 = vor.u32 %v2516_v11, %v7320_v39  ;;  %v5392_v55 = vld [vmem:[%s6303_s29 + $0x30] sm:$0xe]  ;;  %v5393_v14 = vld [vmem:[%s6303_s29 + $0x3c] sm:$0xe] }
  0xbb   : > { %5973 = vmatmul.mubr.msk.bf16.gmra.mxu0 %vm767_vm3, %v7204_v62  ;;  %v2489_v62 = vsel %vm6347_vm4, %v2484_v19, %v2488_v42  ;;  %v2499_v38 = vsel %vm6347_vm4, %v2494_v33, %v2498_v2  ;;  %v7380_v9 = vrot.slane %v2507_v57, 4  ;;  %v2884_v46 = vrot.slane %v6864_v49, 5  ;;  %v6190_v57 = vld [vmem:[%s6303_s29 + $0x78] sm:$0xff]  }
  0xbc   : > { %5976 = vmatprep.mubr.msk.bf16.mxu0 %vm767_vm3, %v5365_v18  ;;  %v7384_v43 = vcombine.low %v2417_v53, %v2427_v60  ;;  %v7386_v32 = vrot.slane %v2517_v48, 4  ;;  %v7388_v52 = vrot.slane %v2520_v58, 5  ;;  %v5407_v7 = vrot.slane %v5391_v13, 9  ;;  %v6191_v53 = vld [vmem:[%s6303_s29 + $0x84] sm:$0xff]   ;;  %v5396_v13 = vld [vmem:[%s6303_s29 + $0x60] sm:$0xe] }
  0xbd   : > { %v7391_v54 = vcombine.low %v2441_v25, %v2451_v10  ;;  %v7393_v42 = vcombine.low %v2465_v3, %v2475_v20  ;;  %v5405_v37 = vrot.slane %v7373_v12, 9  ;;  %v2898_v24 = vrot.slane %v6913_v44, 5  ;;  %v6197_v49 = vld [vmem:[%s6303_s29 + $0x18] sm:$0xff]  }
  0xbe   : > { %5939 = vmatmul.mubr.msk.bf16.gmra.mxu1 %vm767_vm3, %v6188_v23  ;;  %v7399_v15 = vcombine.low %v2489_v62, %v2499_v38  ;;  %v2887_v34 = vrot.slane %v6900_v47, 5  ;;  %v2901_v29 = vrot.slane %v6928_v21, 5  ;;  %v5408_v56 = vrot.slane %v5392_v55, 9  ;;  %v5398_v55 = vld [vmem:[%s6303_s29 + $0x78] sm:$0xe] }
  0xbf   : > { %5942 = vmatprep.mubr.msk.bf16.mxu1 %vm767_vm3, %v6189_v63  ;;  %v2513_v16 = vsel %vm6347_vm4, %v7380_v9, %v7320_v39  ;;  %v7410_v44 = vrot.slane %v2884_v46, 4  ;;  %v7414_v18 = vsel %vm6633_vm7, %v5407_v7, %v2898_v24  ;;  %v2900_v19 = vrot.slane %v2898_v24, 4 }
  0xc0   : > { %v2523_v21 = vsel %vm6347_vm4, %v7386_v32, %v7388_v52  ;;  %v2905_v33 = vrot.slane %v6951_v5, 5  ;;  %v2908_v2 = vrot.slane %v6959_v41, 5  ;;  %v5409_v59 = vrot.slane %v5393_v14, 9  ;;  %v6196_v52 = vld [vmem:[%s6303_s29 + $0xc0] sm:$0xff]  }
  0xc1   : > { %v7426_v11 = vsel %vm6633_vm7, %v2900_v19, %v2901_v29  ;;  %v2912_v58 = vrot.slane %v6968_v61, 5  ;;  %v2915_v23 = vrot.slane %v7020_v50, 5  ;;  %v5410_v36 = vrot.slane %v5394_v26, 9  ;;  %v5399_v19 = vld [vmem:[%s6303_s29 + $0x84] sm:$0xe] }
  0xc2   : > { %v5424_v5 = vcombine.low %v7414_v18, %v7426_v11  ;;  %v7436_v41 = vsel %vm6633_vm7, %v5408_v56, %v2905_v33  ;;  %v2907_v60 = vrot.slane %v2905_v33, 4  ;;  %v2919_v25 = vrot.slane %v6986_v1, 5 }
  0xc3   : > { %5977 = vmatmul.mubr.msk.bf16.gmra.mxu0 %vm767_vm3, %v5366_v17  ;;  %v7443_v61 = vsel %vm6633_vm7, %v5409_v59, %v2912_v58  ;;  %v2914_v50 = vrot.slane %v2912_v58, 4  ;;  %v2922_v17 = vrot.slane %v7034_v8, 5  ;;  %v5411_v63 = vrot.slane %v5395_v6, 9  ;;  %v9071_v59 = vld [vmem:[#allocation4_spill] sm:$0xff] }
  0xc4   : > { %5980 = vmatprep.mubr.msk.bf16.mxu0 %vm767_vm3, %v5367_v51  ;;  %v7448_v10 = vsel %vm6633_vm7, %v2907_v60, %v2908_v2  ;;  %v7452_v3 = vsel %vm6633_vm7, %v5410_v36, %v2919_v25  ;;  %v2921_v1 = vrot.slane %v2919_v25, 4  ;;  %v2926_v20 = vrot.slane %v7029_v40, 5  ;;  %v5397_v51 = vld [vmem:[%s6303_s29 + $0x6c] sm:$0xe]  ;;  %v6192_v58 = vld [vmem:[%s6303_s29 + $0x90] sm:$0xff]  }
  0xc5   : > { %v5425_v48 = vcombine.low %v7436_v41, %v7448_v10  ;;  %v7461_v8 = vsel %vm6633_vm7, %v2914_v50, %v2915_v23  ;;  %v2929_v62 = vrot.slane %v7051_v35, 5  ;;  %v5412_v38 = vrot.slane %v5396_v13, 9  ;;  %v9072_v36 = vld [vmem:[#allocation3_spill] sm:$0xff]  ;;  %v5400_v60 = vld [vmem:[%s6303_s29 + $0x90] sm:$0xe]  ;;  %v9073_v50 = vld [vmem:[#allocation6_spill] sm:$0xff] }
  0xc6   : > { %5943 = vmatmul.mubr.msk.bf16.gmra.mxu1 %vm767_vm3, %v6190_v57  ;;  %v5426_v40 = vcombine.low %v7443_v61, %v7461_v8  ;;  %v7470_v7 = vsel %vm6633_vm7, %v2921_v1, %v2922_v17  ;;  %v7474_v24 = vsel %vm6633_vm7, %v5411_v63, %v2926_v20  ;;  %v2928_v14 = vrot.slane %v2926_v20, 4 }
  0xc7   : > { %5946 = vmatprep.mubr.msk.bf16.mxu1 %vm767_vm3, %v6191_v53  ;;  %v5427_v35 = vcombine.low %v7452_v3, %v7470_v7  ;;  %v2933_v29 = vrot.slane %v7064_v28, 5  ;;  %v2936_v56 = vrot.slane %v7086_v30, 5  ;;  %v5413_v26 = vrot.slane %v5397_v51, 9  ;;  %v9074_v51 = vld [vmem:[#allocation5_spill] sm:$0xff]  ;;  %v5531_v3 = vld [vmem:[%s6303_s29 + $0x48] sm:$0xf] }
  0xc8   : > { %v7483_v33 = vsel %vm6633_vm7, %v2928_v14, %v2929_v62  ;;  %v2940_v2 = vrot.slane %v7083_v27, 5  ;;  %v2943_v6 = vrot.slane %v9071_v59, 5  ;;  %v5414_v57 = vrot.slane %v5398_v55, 9  ;;  %v6193_v27 = vld [vmem:[%s6303_s29 + $0x9c] sm:$0xff]   ;;  %v9082_v55 = vld [vmem:[#allocation15_spill] sm:$0xff] }
  0xc9   : > { %v5428_v23 = vcombine.low %v7474_v24, %v7483_v33  ;;  %v7492_v28 = vsel %vm6633_vm7, %v5412_v38, %v2933_v29  ;;  %v2935_v30 = vrot.slane %v2933_v29, 4  ;;  %v2947_v53 = vrot.slane %v9072_v36, 5  ;;  %v5401_v38 = vld [vmem:[%s6303_s29 + $0x9c] sm:$0xe]  ;;  %v9077_v36 = vld [vmem:[#allocation12_spill] sm:$0xff] }
  0xca   : > { %v7501_v25 = vsel %vm6633_vm7, %v5413_v26, %v2940_v2  ;;  %v2942_v13 = vrot.slane %v2940_v2, 4  ;;  %v2950_v17 = vrot.slane %v9073_v50, 5  ;;  %v5415_v63 = vrot.slane %v5399_v19, 9  ;;  %v5402_v26 = vld [vmem:[%s6303_s29 + $0xa8] sm:$0xe] }
  0xcb   : > { %5981 = vmatmul.mubr.msk.bf16.gmra.mxu0 %vm767_vm3, %v7384_v43  ;;  %v7508_v1 = vsel %vm6633_vm7, %v2935_v30, %v2936_v56  ;;  %v7512_v43 = vsel %vm6633_vm7, %v5414_v57, %v2947_v53  ;;  %v2949_v20 = vrot.slane %v2947_v53, 4  ;;  %v2954_v62 = vrot.slane %v9074_v51, 5  ;;  %v5404_v57 = vld [vmem:[%s6303_s29 + $0xc0] sm:$0xe]  ;;  %v6194_v19 = vld [vmem:[%s6303_s29 + $0xa8] sm:$0xff]  }
  0xcc   : > { %5984 = vmatprep.mubr.msk.bf16.mxu0 %vm767_vm3, %v7391_v54  ;;  %v7520_v14 = vsel %vm6633_vm7, %v2942_v13, %v2943_v6  ;;  %v9075_v54 = vld [vmem:[#allocation8_spill] sm:$0xff]  ;;  %v5416_v56 = vrot.slane %v5400_v60, 9  ;;  %v2964_v53 = vrot.slane %v9077_v36, 5  ;;  %v5417_v60 = vrot.slane %v5401_v38, 9  ;;  %v9080_v38 = vld [vmem:[#allocation13_spill] sm:$0xff] }
  0xcd   : > { %v2957_v29 = vrot.slane %v9075_v54, 5  ;;  %v7529_v2 = vsel %vm6633_vm7, %v2949_v20, %v2950_v17  ;;  %v7533_v59 = vsel %vm6633_vm7, %v5415_v63, %v2954_v62  ;;  %v2956_v6 = vrot.slane %v2954_v62, 4  ;;  %v5403_v13 = vld [vmem:[%s6303_s29 + $0xb4] sm:$0xe]  ;;  %v9078_v17 = vld [vmem:[#allocation10_spill] sm:$0xff] }
  0xce   : > { %5947 = vmatmul.mubr.msk.bf16.gmra.mxu1 %vm767_vm3, %v6192_v58  ;;  %v9076_v58 = vld [vmem:[#allocation7_spill] sm:$0xff]  ;;  %v2968_v63 = vrot.slane %v9078_v17, 5  ;;  %v9079_v20 = vld [vmem:[#allocation2_spill] sm:$0xff]  ;;  %v5418_v62 = vrot.slane %v5402_v26, 9  ;;  %v2975_v36 = vrot.slane %v9080_v38, 5  ;;  %v5419_v26 = vrot.slane %v5403_v13, 9 }
  0xcf   : > { %5950 = vmatprep.mubr.msk.bf16.mxu1 %vm767_vm3, %v6193_v27  ;;  %v2961_v30 = vrot.slane %v9076_v58, 5  ;;  %v7543_v50 = vsel %vm6633_vm7, %v2956_v6, %v2957_v29  ;;  %v2971_v51 = vrot.slane %v9079_v20, 5  ;;  %v9081_v17 = vld [vmem:[#allocation14_spill] sm:$0xff]  ;;  %v6195_v27 = vld [vmem:[%s6303_s29 + $0xb4] sm:$0xff]   ;;  %v2888_v39 = vsel %vm6633_vm7, %v7410_v44, %v2887_v34  ;;  %v7760_v7 = vld [vmem:[%s6303_s29 + $0x4c] sm:$0xf] }
  0xd0   : > { %v7558_v29 = vsel %vm6633_vm7, %v5417_v60, %v2968_v63  ;;  %v2970_v6 = vrot.slane %v2968_v63, 4  ;;  %v2978_v20 = vrot.slane %v9081_v17, 5  ;;  %v2977_v38 = vrot.slane %v2975_v36, 4  ;;  %v6214_v44 = vld [vmem:[%s6303_s29 + $0x20] sm:$0x1] }
  0xd1   : > { %v7551_v54 = vsel %vm6633_vm7, %v5416_v56, %v2961_v30  ;;  %v2963_v58 = vrot.slane %v2961_v30, 4  ;;  %v7570_v30 = vsel %vm6633_vm7, %v5418_v62, %v2975_v36  ;;  %v2982_v60 = vrot.slane %v9082_v55, 5 }
  0xd2   : > { %v5420_v63 = vrot.slane %v5404_v57, 9  ;;  %v7586_v55 = vsel %vm6633_vm7, %v2977_v38, %v2978_v20  ;;  %v2989_v57 = vrot.slane %v7305_v22, 5  ;;  %v2885_v22 = vsel %vm6633_vm7, %v5405_v37, %v2884_v46  ;;  %v6199_v38 = vld [vmem:[%s6303_s29 + $0x30] sm:$0xff]  }
  0xd3   : > { %5985 = vmatmul.mubr.msk.bf16.gmra.mxu0 %vm767_vm3, %v7393_v42  ;;  %v7566_v56 = vsel %vm6633_vm7, %v2963_v58, %v2964_v53  ;;  %v7579_v42 = vsel %vm6633_vm7, %v2970_v6, %v2971_v51  ;;  %v2985_v53 = vrot.slane %v7296_v4, 5  ;;  %v2984_v58 = vrot.slane %v2982_v60, 4 }
  0xd4   : > { %5988 = vmatprep.mubr.msk.bf16.mxu0 %vm767_vm3, %v7399_v15  ;;  %v7590_v15 = vsel %vm6633_vm7, %v5419_v26, %v2982_v60  ;;  %v2992_v51 = vrot.slane %v7317_v45, 5  ;;  %v5390_v45 = vld [vmem:[%s6303_s29 + $0x18] sm:$0xe]  ;;  %v7630_v9 = vsel %vm6633_vm7, %v5420_v63, %v2989_v57  ;;  %v2991_v46 = vrot.slane %v2989_v57, 4  ;;  %v6198_v26 = vld [vmem:[%s6303_s29 + $0x24] sm:$0xff]  }
  0xd5   : > { %v7618_v32 = vsel %vm6633_vm7, %v2984_v58, %v2985_v53  ;;  %v5406_v37 = vrot.slane %v5390_v45, 9  ;;  %v5422_v34 = vcombine.low %v2885_v22, %v2888_v39  ;;  %v9083_v60 = vld [vmem:[#allocation9_spill] sm:$0xff] }
  0xd6   : > { %5951 = vmatmul.mubr.msk.bf16.gmra.mxu1 %vm767_vm3, %v6194_v19  ;;  %v5372_v19 = vcombine.low %v2513_v16, %v2523_v21  ;;  %v7635_v47 = vsel %vm6633_vm7, %v2991_v46, %v2992_v51  ;;  %v2894_v21 = vrot.slane %v6214_v44, 5  ;;  %v4651_v53 = vsel %vm816_vm0, %v9083_v60, 0  ;;  %v5519_v63 = vld [vmem:[%s6303_s29 + $0x18] sm:$0xf]  ;;  %v5520_v57 = vld [vmem:[%s6303_s29 + $0x1c] sm:$0xf] }
  0xd7   : > { %5954 = vmatprep.mubr.msk.bf16.mxu1 %vm767_vm3, %v6195_v27  ;;  %v6213_v27 = vld [vmem:[%s6303_s29 + $0x1c] sm:$0xf]  ;;  %v5522_v51 = vld [vmem:[%s6303_s29 + $0x24] sm:$0xf]  ;;  %v3699_v45 = vshrl.u32 %v5519_v63, 16  ;;  %v3708_v39 = vshll.u32 %v5520_v57, 16 }
  0xd8   : > { %v2891_v36 = vrot.slane %v6213_v27, 5  ;;  %v3702_v27 = vshll.u32 %v5519_v63, 16  ;;  %v3723_v46 = vshrl.u32 %v5522_v51, 16  ;;  %v6201_v44 = vld [vmem:[%s6303_s29 + $0x48] sm:$0xff]   ;;  %v5600_v60 = vld [vmem:[%s6303_s29 + $0x18] sm:$0xe] }
  0xd9   : > { %v7676_v63 = vld [vmem:[%s6303_s29 + $0x2c] sm:$0x1] }
  0xda   : > { %v2893_v16 = vrot.slane %v2891_v36, 4  ;;  %v2892_v17 = vsel %vm6633_vm7, %v5406_v37, %v2891_v36  ;;  %v7660_v36 = vld [vmem:[%s6303_s29 + $0x28] sm:$0xf]  ;;  %v6200_v37 = vld [vmem:[%s6303_s29 + $0x3c] sm:$0xff]   ;;  %v3725_v18 = vrot.slane %v3723_v46, 4 }
  0xdb   : > { %5989 = vmatmul.mubr.msk.bf16.gmra.mxu0 %vm767_vm3, %v5372_v19  ;;  %v9084_v19 = vld [vmem:[#allocation11_spill] sm:$0xff] }
  0xdc   : > { %6028 = vmatprep.mubr.msk.bf16.mxu0 %vm767_vm3, %v6197_v49  ;;  %v2895_v20 = vsel %vm6633_vm7, %v2893_v16, %v2894_v21  ;;  %v4181_v22 = vsel %vm816_vm0, %v9084_v19, 0  ;;  %v3712_v49 = vshrl.u32 %v5520_v57, 16  ;;  %v3736_v16 = vshrl.u32 %v7660_v36, 16  ;;  %v5521_v21 = vld [vmem:[%s6303_s29 + $0x20] sm:$0x1] }
  0xdd   : > { %v5423_v58 = vcombine.low %v2892_v17, %v2895_v20  ;;  %v3701_v17 = vrot.slane %v3699_v45, 4  ;;  %v3704_v20 = vrot.slane %v3702_v27, 5  ;;  %v5525_v19 = vld [vmem:[%s6303_s29 + $0x30] sm:$0xf]  ;;  %v3718_v45 = vshll.u32 %v5521_v21, 16 }
  0xde   : > { %5955 = vmatmul.mubr.msk.bf16.gmra.mxu1 %vm767_vm3, %v6196_v52  ;;  %v3726_v52 = vshll.u32 %v5522_v51, 16  ;;  %v3738_v51 = vrot.slane %v3736_v16, 4  ;;  %v5616_v27 = vrot.slane %v5600_v60, 9  ;;  %v4445_v46 = vrot.slane %v5521_v21, 5  ;;  %v5601_v16 = vld [vmem:[%s6303_s29 + $0x24] sm:$0xe] }
  0xdf   : > { %5994 = vmatprep.mubr.msk.bf16.mxu1 %vm767_vm3, %v5422_v34  ;;  %v3732_v34 = vshll.u32 %v7660_v36, 16  ;;  %v6202_v21 = vld [vmem:[%s6303_s29 + $0x54] sm:$0xff]   ;;  %v3750_v10 = vshll.u32 %v5525_v19, 16  ;;  %v6203_v60 = vld [vmem:[%s6303_s29 + $0x60] sm:$0xff]  }
  0xe0   : > { %v3728_v11 = vrot.slane %v3726_v52, 5  ;;  %v3742_v52 = vshll.u32 %v7676_v63, 16 }
  0xe3   : > { %6029 = vmatmul.mubr.msk.bf16.vlgmr.msra.gmra.mxu0 %vm767_vm3, %v6198_v26  ;;  %v7672_v26 = vrot.slane %v3708_v39, 5 }
  0xe4   : > { %6095 = vmatpush3.bf16.msra.mxu0 %v4651_v53  ;;  %6032 = vmatprep.mubr.msk.bf16.mxu0 %vm767_vm3, %v6199_v38  ;;  %v3714_v38 = vrot.slane %v3712_v49, 4  ;;  %v4442_v53 = vrot.slane %v5520_v57, 5  ;;  %v7686_v57 = vld [vmem:[%s6303_s29 + $0x34] sm:$0xf] }
  0xe6   : > { %5995 = vmatmul.mubr.msk.bf16.vlgmr.msra.gmra.mxu1 %vm767_vm3, %v5423_v58  ;;  %v7681_v58 = vrot.slane %v3732_v34, 5  ;;  %v3715_v39 = vor.u32 %v3714_v38, %v7672_v26  ;;  %v4444_v49 = vrot.slane %v4442_v53, 4  ;;  %v3729_v34 = vor.u32 %v3728_v11, %v3725_v18 }
  0xe7   : > { %6061 = vmatpush3.bf16.msra.mxu1 %v4181_v22  ;;  %5998 = vmatprep.mubr.msk.bf16.mxu1 %vm767_vm3, %v5424_v5  ;;  %v7679_v5 = vpop.f32.mrf.mxu0  ;;  %v3705_v22 = vor.u32 %v3704_v20, %v3701_v17  ;;  %v3747_v17 = vshrl.u32 %v5525_v19, 16  ;;  %v3760_v38 = vshrl.u32 %v7686_v57, 16  ;;  %v7711_v61 = vsel %vm6633_vm7, %v5616_v27, %v4442_v53  ;;  %v5528_v19 = vld [vmem:[%s6303_s29 + $0x3c] sm:$0xf] }
  0xe8   : > { %v3739_v41 = vor.u32 %v3738_v51, %v7681_v58  ;;  %v3716_v8 = vrot.slane %v3715_v39, 4  ;;  %v3744_v11 = vrot.slane %v3742_v52, 5  ;;  %v5617_v51 = vrot.slane %v5601_v16, 9  ;;  %v7725_v39 = vld [vmem:[%s6303_s29 + $0x38] sm:$0x1] }
  0xe9   : > { %v7703_v20 = vpop.f32.mrf.mxu0  ;;  %v3706_v18 = vrot.slane %v3705_v22, 4  ;;  %v3730_v12 = vrot.slane %v3729_v34, 4  ;;  %v4452_v22 = vrot.slane %v7676_v63, 5  ;;  %v3762_v52 = vrot.slane %v3760_v38, 4 }
  0xea   : > { %v3740_v27 = vrot.slane %v3739_v41, 4  ;;  %v3771_v34 = vshrl.u32 %v5528_v19, 16  ;;  %v3774_v16 = vshll.u32 %v5528_v19, 16  ;;  %v7738_v41 = vld [vmem:[%s6303_s29 + $0x40] sm:$0xf] }
  0xeb   : > { %6033 = vmatmul.mubr.msk.bf16.gmra.mxu0 %vm767_vm3, %v6200_v37  ;;  %v7722_v53 = vpop.f32.mrf.mxu0  ;;  %v3711_v63 = vsel %vm6347_vm4, %v3706_v18, %v7672_v26  ;;  %v3735_v26 = vsel %vm6347_vm4, %v3730_v12, %v7681_v58  ;;  %v5602_v18 = vld [vmem:[%s6303_s29 + $0x30] sm:$0xe]  ;;  %v3780_v24 = vshll.u32 %v7738_v41, 16  ;;  %v3784_v33 = vshrl.u32 %v7738_v41, 16 }
  0xec   : > { %6036 = vmatprep.mubr.msk.bf16.mxu0 %vm767_vm3, %v6201_v44  ;;  %v7694_v37 = vpop.f32.mrf.mxu1  ;;  %v4449_v44 = vrot.slane %v7660_v36, 5  ;;  %v3720_v36 = vrot.slane %v3718_v45, 5  ;;  %v3749_v45 = vrot.slane %v3747_v17, 4  ;;  %v3745_v58 = vsel %vm6347_vm4, %v3740_v27, %v3744_v11 }
  0xed   : > { %9085 = vst [vmem:[#allocation4_spill] sm:$0xff] %v7694_v37  ;;  %v7767_v12 = vpop.f32.mrf.mxu0  ;;  %v3776_v19 = vrot.slane %v3774_v16, 5  ;;  %v3808_v11 = vshrl.u32 %v7760_v7, 16 }
  0xee   : > { %5999 = vmatmul.mubr.msk.bf16.gmra.mxu1 %vm767_vm3, %v5425_v48  ;;  %v3756_v48 = vshll.u32 %v7686_v57, 16  ;;  %v7718_v6 = vpop.f32.mrf.mxu1  ;;  %v4451_v4 = vrot.slane %v4449_v44, 4  ;;  %v3721_v17 = vsel %vm6347_vm4, %v3716_v8, %v3720_v36  ;;  %v4456_v36 = vrot.slane %v7686_v57, 5  ;;  %v6205_v8 = vld [vmem:[%s6303_s29 + $0x78] sm:$0xff]  }
  0xef   : > { %6002 = vmatprep.mubr.msk.bf16.mxu1 %vm767_vm3, %v5426_v40  ;;  %v7715_v40 = vsel %vm6633_vm7, %v4444_v49, %v4445_v46  ;;  %9086 = vst [vmem:[#allocation3_spill] sm:$0xff] %v7718_v6  ;;  %v3752_v49 = vrot.slane %v3750_v10, 5  ;;  %v7781_v27 = vcombine.low %v3711_v63, %v3721_v17  ;;  %v7783_v57 = vcombine.low %v3735_v26, %v3745_v58  ;;  %v7797_v17 = vld [vmem:[%s6303_s29 + $0x58] sm:$0xf]  ;;  %v7803_v58 = vld [vmem:[%s6303_s29 + $0x44] sm:$0x1] }
  0xf0   : > { %v7727_v46 = vrot.slane %v3756_v48, 5  ;;  %v7744_v10 = vpop.f32.mrf.mxu1  ;;  %v7751_v48 = vsel %vm6633_vm7, %v5617_v51, %v4449_v44  ;;  %v7755_v38 = vsel %vm6633_vm7, %v4451_v4, %v4452_v22  ;;  %v3773_v51 = vrot.slane %v3771_v34, 4  ;;  %v5534_v34 = vld [vmem:[%s6303_s29 + $0x54] sm:$0xf] }
  0xf1   : > { %9087 = vst [vmem:[#allocation6_spill] sm:$0xff] %v7744_v10  ;;  %v3753_v44 = vor.u32 %v3752_v49, %v3749_v45  ;;  %v3798_v22 = vshll.u32 %v5531_v3, 16  ;;  %v4458_v13 = vrot.slane %v4456_v36, 4  ;;  %v4459_v63 = vrot.slane %v7725_v39, 5  ;;  %v5603_v49 = vld [vmem:[%s6303_s29 + $0x3c] sm:$0xe] }
  0xf2   : > { %v3763_v4 = vor.u32 %v3762_v52, %v7727_v46  ;;  %v7779_v45 = vpop.f32.mrf.mxu1  ;;  %v5618_v52 = vrot.slane %v5602_v18, 9  ;;  %v3777_v18 = vor.u32 %v3776_v19, %v3773_v51  ;;  %v9090_v6 = vcombine.low %v7492_v28, %v7508_v1 }
  0xf3   : > { %6037 = vmatmul.mubr.msk.bf16.gmra.mxu0 %vm767_vm3, %v6202_v21  ;;  %v3804_v21 = vshll.u32 %v7760_v7, 16  ;;  %9088 = vst [vmem:[#allocation5_spill] sm:$0xff] %v7779_v45  ;;  %v3800_v45 = vrot.slane %v3798_v22, 5  ;;  %v3819_v51 = vshrl.u32 %v5534_v34, 16  ;;  %v3822_v19 = vshll.u32 %v5534_v34, 16 }
  0xf4   : > { %6040 = vmatprep.mubr.msk.bf16.mxu0 %vm767_vm3, %v6203_v60  ;;  %v3766_v60 = vshll.u32 %v7725_v39, 16  ;;  %v7800_v26 = vrot.slane %v3763_v4, 4  ;;  %v3810_v39 = vrot.slane %v3808_v11, 4  ;;  %v7838_v22 = vsel %vm6633_vm7, %v4458_v13, %v4459_v63 }
  0xf5   : > { %v7808_v10 = vrot.slane %v3804_v21, 5  ;;  %v9092_v21 = vcombine.low %v7501_v25, %v7520_v14  ;;  %v4463_v25 = vrot.slane %v7738_v41, 5  ;;  %v6207_v14 = vld [vmem:[%s6303_s29 + $0x90] sm:$0xff]   ;;  %v5619_v1 = vrot.slane %v5603_v49, 9  ;;  %v5537_v41 = vld [vmem:[%s6303_s29 + $0x60] sm:$0xf] }
  0xf6   : > { %6003 = vmatmul.mubr.msk.bf16.gmra.mxu1 %vm767_vm3, %v5427_v35  ;;  %v6204_v35 = vld [vmem:[%s6303_s29 + $0x6c] sm:$0xff]   ;;  %v7793_v62 = vrot.slane %v3766_v60, 5  ;;  %v3821_v37 = vrot.slane %v3819_v51, 4 }
  0xf7   : > { %6006 = vmatprep.mubr.msk.bf16.mxu1 %vm767_vm3, %v5428_v23  ;;  %v3795_v23 = vshrl.u32 %v5531_v3, 16  ;;  %v7791_v3 = vrot.slane %v3753_v44, 4  ;;  %v3786_v44 = vrot.slane %v3784_v33, 4  ;;  %v3832_v33 = vshrl.u32 %v7797_v17, 16 }
  0xf8   : > { %v7789_v16 = vpop.f32.mrf.mxu0  ;;  %v3811_v13 = vor.u32 %v3810_v39, %v7808_v10  ;;  %v4470_v39 = vrot.slane %v7760_v7, 5  ;;  %v9096_v7 = vcombine.low %v7512_v43, %v7529_v2  ;;  %v9098_v43 = vcombine.low %v7533_v59, %v7543_v50  ;;  %v6208_v2 = vld [vmem:[%s6303_s29 + $0x9c] sm:$0xff]  }
  0xf9   : > { %9089 = vst [vmem:[#allocation8_spill] sm:$0xff] %v7789_v16  ;;  %v3797_v60 = vrot.slane %v3795_v23, 4  ;;  %v6206_v23 = vld [vmem:[%s6303_s29 + $0x84] sm:$0xff]   ;;  %v7865_v16 = vld [vmem:[%s6303_s29 + $0x5c] sm:$0x1]  ;;  %v4477_v59 = vrot.slane %v7797_v17, 5 }
  0xfa   : > { %v7826_v28 = vpop.f32.mrf.mxu0 }
  0xfb   : > { %6041 = vmatmul.mubr.msk.bf16.gmra.mxu0 %vm767_vm3, %v6204_v35  ;;  %v7805_v35 = vrot.slane %v3780_v24, 5  ;;  %v3828_v24 = vshll.u32 %v7797_v17, 16  ;;  %9093 = vst [vmem:[#allocation12_spill] sm:$0xff] %v7826_v28  ;;  %v3824_v28 = vrot.slane %v3822_v19, 5 }
  0xfc   : > { %6044 = vmatprep.mubr.msk.bf16.mxu0 %vm767_vm3, %v6205_v8  ;;  %v7814_v4 = vpop.f32.mrf.mxu1  ;;  %v7817_v8 = vld [vmem:[%s6303_s29 + $0x50] sm:$0x1]  ;;  %v7858_v49 = vpop.f32.mrf.mxu0 }
  0xfd   : > { %9091 = vst [vmem:[#allocation7_spill] sm:$0xff] %v7814_v4  ;;  %v3787_v34 = vor.u32 %v3786_v44, %v7805_v35  ;;  %v7848_v4 = vrot.slane %v3777_v18, 4  ;;  %v7855_v11 = vrot.slane %v3828_v24, 5  ;;  %v3834_v44 = vrot.slane %v3832_v33, 4  ;;  %9095 = vst [vmem:[#allocation2_spill] sm:$0xff] %v7858_v49 }
  0xfe   : > { %6007 = vmatmul.mubr.msk.bf16.gmra.mxu1 %vm767_vm3, %v9090_v6  ;;  %v7834_v6 = vsel %vm6633_vm7, %v5618_v52, %v4456_v36  ;;  %v3801_v36 = vor.u32 %v3800_v45, %v3797_v60  ;;  %v3814_v52 = vshll.u32 %v7817_v8, 16  ;;  %v7853_v63 = vpop.f32.mrf.mxu1  ;;  %v4465_v18 = vrot.slane %v4463_v25, 4  ;;  %v5604_v24 = vld [vmem:[%s6303_s29 + $0x48] sm:$0xe] }
  0xff   : > { %6010 = vmatprep.mubr.msk.bf16.mxu1 %vm767_vm3, %v9092_v21  ;;  %v3790_v21 = vshll.u32 %v7803_v58, 16  ;;  %9094 = vst [vmem:[#allocation10_spill] sm:$0xff] %v7853_v63  ;;  %v4466_v60 = vrot.slane %v7803_v58, 5  ;;  %v3788_v51 = vrot.slane %v3787_v34, 4  ;;  %v3843_v33 = vshrl.u32 %v5537_v41, 16 }
 0x100   : > { %v7871_v63 = vsel %vm6633_vm7, %v5619_v1, %v4463_v25  ;;  %v3802_v45 = vrot.slane %v3801_v36, 4  ;;  %v3812_v49 = vrot.slane %v3811_v13, 4  ;;  %v3816_v58 = vrot.slane %v3814_v52, 5  ;;  %v7886_v36 = vld [vmem:[%s6303_s29 + $0x64] sm:$0xf]  ;;  %v7893_v13 = vpop.f32.mrf.mxu0 }
 0x101   : > { %v3792_v19 = vrot.slane %v3790_v21, 5  ;;  %v3783_v34 = vsel %vm6347_vm4, %v7848_v4, %v7805_v35  ;;  %v3825_v21 = vor.u32 %v3824_v28, %v3821_v37  ;;  %v3835_v1 = vor.u32 %v3834_v44, %v7855_v11  ;;  %9099 = vst [vmem:[#allocation14_spill] sm:$0xff] %v7893_v13  ;;  %v5605_v28 = vld [vmem:[%s6303_s29 + $0x54] sm:$0xe]  ;;  %v6212_v13 = vld [vmem:[%s6303_s29 + $0xcc] sm:$0xff]  }
 0x102   : > { %v3838_v25 = vshll.u32 %v7865_v16, 16  ;;  %v7897_v52 = vsel %vm6633_vm7, %v4465_v18, %v4466_v60  ;;  %v5620_v35 = vrot.slane %v5604_v24, 9  ;;  %v4472_v37 = vrot.slane %v4470_v39, 4 }
 0x103   : > { %6045 = vmatmul.mubr.msk.bf16.gmra.mxu0 %vm767_vm3, %v6206_v23  ;;  %v3846_v23 = vshll.u32 %v5537_v41, 16  ;;  %v4473_v4 = vrot.slane %v7817_v8, 5  ;;  %v6209_v41 = vld [vmem:[%s6303_s29 + $0xa8] sm:$0xff]   ;;  %v3793_v44 = vsel %vm6347_vm4, %v3788_v51, %v3792_v19  ;;  %v3845_v50 = vrot.slane %v3843_v33, 4 }
 0x104   : > { %6048 = vmatprep.mubr.msk.bf16.mxu0 %vm767_vm3, %v6207_v14  ;;  %v7877_v14 = vpop.f32.mrf.mxu1  ;;  %v3817_v18 = vsel %vm6347_vm4, %v3812_v49, %v3816_v58  ;;  %v3852_v60 = vshll.u32 %v7886_v36, 16  ;;  %v3856_v8 = vshrl.u32 %v7886_v36, 16  ;;  %v3836_v51 = vrot.slane %v3835_v1, 4  ;;  %v7915_v33 = vld [vmem:[%s6303_s29 + $0x68] sm:$0x1] }
 0x105   : > { %9097 = vst [vmem:[#allocation13_spill] sm:$0xff] %v7877_v14  ;;  %v3826_v14 = vrot.slane %v3825_v21, 4  ;;  %v3840_v17 = vrot.slane %v3838_v25, 5  ;;  %v5621_v19 = vrot.slane %v5605_v28, 9  ;;  %v9102_v49 = vsel %vm6347_vm4, %v7800_v26, %v7793_v62  ;;  %v5540_v25 = vld [vmem:[%s6303_s29 + $0x6c] sm:$0xf] }
 0x106   : > { %6011 = vmatmul.mubr.msk.bf16.gmra.mxu1 %vm767_vm3, %v9096_v7  ;;  %v3848_v7 = vrot.slane %v3846_v23, 5  ;;  %v7912_v24 = vpop.f32.mrf.mxu1  ;;  %v7936_v21 = vsel %vm6633_vm7, %v5620_v35, %v4470_v39  ;;  %v7940_v1 = vsel %vm6633_vm7, %v4472_v37, %v4473_v4  ;;  %v7943_v62 = vcombine.low %v3783_v34, %v3793_v44  ;;  %v5606_v4 = vld [vmem:[%s6303_s29 + $0x60] sm:$0xe]  ;;  %v5546_v44 = vld [vmem:[%s6303_s29 + $0x84] sm:$0xf] }
 0x107   : > { %6014 = vmatprep.mubr.msk.bf16.mxu1 %vm767_vm3, %v9098_v43  ;;  %v3807_v43 = vsel %vm6347_vm4, %v3802_v45, %v7808_v10  ;;  %9100 = vst [vmem:[#allocation15_spill] sm:$0xff] %v7912_v24  ;;  %v9103_v45 = vsel %vm6347_vm4, %v7791_v3, %v7727_v46  ;;  %v4479_v46 = vrot.slane %v4477_v59, 4  ;;  %v4480_v3 = vrot.slane %v7865_v16, 5 }
 0x108   : > { %v7930_v23 = vcombine.low %v9103_v45, %v9102_v49  ;;  %9104 = vst [vmem:[#allocation11_spill] sm:$0xff] %v7943_v62  ;;  %v3849_v26 = vor.u32 %v3848_v7, %v3845_v50  ;;  %v7950_v28 = vcombine.low %v3807_v43, %v3817_v18  ;;  %v7952_v39 = vrot.slane %v3852_v60, 5 }
 0x109   : > { %v7918_v10 = vpop.f32.mrf.mxu0  ;;  %v7954_v35 = vrot.slane %v3856_v8, 4  ;;  %v3862_v37 = vshll.u32 %v7915_v33, 16  ;;  %v9106_v34 = vcombine.low %v7551_v54, %v7566_v56  ;;  %v3831_v50 = vsel %vm6347_vm4, %v3826_v14, %v7855_v11  ;;  %v5543_v54 = vld [vmem:[%s6303_s29 + $0x78] sm:$0xf] }
 0x10a   : > { %9101 = vst [vmem:[#allocation9_spill] sm:$0xff] %v7918_v10  ;;  %9105 = vst [vmem:[#allocation16_spill] sm:$0xff] %v7950_v28  ;;  %v3841_v7 = vsel %vm6347_vm4, %v3836_v51, %v3840_v17  ;;  %v7974_v43 = vsel %vm6633_vm7, %v5621_v19, %v4477_v59  ;;  %v9108_v56 = vcombine.low %v7558_v29, %v7579_v42  ;;  %v3867_v60 = vshrl.u32 %v5540_v25, 16  ;;  %v7986_v51 = vld [vmem:[%s6303_s29 + $0x7c] sm:$0xf]  ;;  %v6211_v59 = vld [vmem:[%s6303_s29 + $0xc0] sm:$0xff]  }
 0x10b   : > { %6049 = vmatmul.mubr.msk.bf16.gmra.mxu0 %vm767_vm3, %v6208_v2  ;;  %v7948_v2 = vld [vmem:[%s6303_s29 + $0x70] sm:$0xf]  ;;  %v7981_v18 = vpop.f32.mrf.mxu0  ;;  %v3870_v8 = vshll.u32 %v5540_v25, 16  ;;  %v7991_v17 = vsel %vm6633_vm7, %v4479_v46, %v4480_v3  ;;  %v7993_v29 = vrot.slane %v3849_v26, 4  ;;  %v5622_v42 = vrot.slane %v5606_v4, 9 }
 0x10c   : > { %6052 = vmatprep.mubr.msk.bf16.mxu0 %vm767_vm3, %v6209_v41  ;;  %v6210_v41 = vld [vmem:[%s6303_s29 + $0xb4] sm:$0xff]   ;;  %9109 = vst [vmem:[#allocation18_spill] sm:$0xff] %v7981_v18  ;;  %v3876_v11 = vshll.u32 %v7948_v2, 16  ;;  %v3880_v14 = vshrl.u32 %v7948_v2, 16  ;;  %v4484_v19 = vrot.slane %v7886_v36, 5  ;;  %v7996_v49 = vcombine.low %v3831_v50, %v3841_v7 }
 0x10d   : > { %v3859_v45 = vor.u32 %v7954_v35, %v7952_v39  ;;  %v8000_v25 = vrot.slane %v3862_v37, 5  ;;  %v3891_v46 = vshrl.u32 %v5543_v54, 16  ;;  %v3894_v3 = vshll.u32 %v5543_v54, 16  ;;  %v8012_v4 = vld [vmem:[%s6303_s29 + $0x88] sm:$0xf]  ;;  %v8015_v35 = vpop.f32.mrf.mxu0 }
 0x10e   : > { %6015 = vmatmul.mubr.msk.bf16.gmra.mxu1 %vm767_vm3, %v9106_v34  ;;  %v7962_v16 = vpop.f32.mrf.mxu1  ;;  %9110 = vst [vmem:[#allocation19_spill] sm:$0xff] %v7996_v49  ;;  %v4487_v34 = vrot.slane %v7915_v33, 5  ;;  %v3900_v36 = vshll.u32 %v7986_v51, 16  ;;  %v3904_v26 = vshrl.u32 %v7986_v51, 16  ;;  %9112 = vst [vmem:[#allocation21_spill] sm:$0xff] %v8015_v35  ;;  %v3869_v33 = vrot.slane %v3867_v60, 4 }
 0x10f   : > { %9107 = vst [vmem:[#allocation17_spill] sm:$0xff] %v7962_v16  ;;  %6018 = vmatprep.mubr.msk.bf16.mxu1 %vm767_vm3, %v9108_v56  ;;  %v8004_v56 = vld [vmem:[%s6303_s29 + $0x74] sm:$0x1]  ;;  %v3872_v37 = vrot.slane %v3870_v8, 5  ;;  %v8017_v50 = vrot.slane %v3876_v11, 5  ;;  %v3882_v7 = vrot.slane %v3880_v14, 4  ;;  %v9113_v54 = vcombine.low %v7570_v30, %v7586_v55  ;;  %v8045_v49 = vpop.f32.mrf.mxu0 }
 0x110   : > { %v8007_v58 = vpop.f32.mrf.mxu1  ;;  %v4486_v16 = vrot.slane %v4484_v19, 4  ;;  %v8030_v60 = vld [vmem:[%s6303_s29 + $0x80] sm:$0x1]  ;;  %v8033_v8 = vld [vmem:[%s6303_s29 + $0x6c] sm:$0xe]  ;;  %v3915_v11 = vshrl.u32 %v5546_v44, 16 }
 0x111   : > { %9111 = vst [vmem:[#allocation20_spill] sm:$0xff] %v8007_v58  ;;  %v8026_v58 = vsel %vm6633_vm7, %v5622_v42, %v4484_v19  ;;  %v3918_v14 = vshll.u32 %v5546_v44, 16  ;;  %v3928_v24 = vshrl.u32 %v8012_v4, 16  ;;  %v3893_v19 = vrot.slane %v3891_v46, 4  ;;  %9115 = vst [vmem:[#allocation23_spill] sm:$0xff] %v8045_v49 }
 0x112   : > { %v8041_v42 = vpop.f32.mrf.mxu1  ;;  %v3896_v35 = vrot.slane %v3894_v3, 5  ;;  %v8043_v18 = vrot.slane %v3900_v36, 5  ;;  %v3906_v10 = vrot.slane %v3904_v26, 4  ;;  %v9116_v44 = vcombine.low %v7590_v15, %v7618_v32  ;;  %v8064_v32 = vld [vmem:[%s6303_s29 + $0x8c] sm:$0x1] }
 0x113   : > { %6053 = vmatmul.mubr.msk.bf16.gmra.mxu0 %vm767_vm3, %v6210_v41  ;;  %v3886_v41 = vshll.u32 %v8004_v56, 16  ;;  %9114 = vst [vmem:[#allocation22_spill] sm:$0xff] %v8041_v42  ;;  %v3873_v30 = vor.u32 %v3872_v37, %v3869_v33  ;;  %v3883_v55 = vor.u32 %v3882_v7, %v8017_v50  ;;  %v3910_v46 = vshll.u32 %v8030_v60, 16  ;;  %v5608_v33 = vld [vmem:[%s6303_s29 + $0x78] sm:$0xe] }
 0x114   : > { %6056 = vmatprep.mubr.msk.bf16.mxu0 %vm767_vm3, %v6211_v59  ;;  %v3924_v59 = vshll.u32 %v8012_v4, 16  ;;  %v8055_v3 = vrot.slane %v3859_v45, 4  ;;  %v8059_v36 = vsel %vm6633_vm7, %v4486_v16, %v4487_v34  ;;  %v5623_v26 = vrot.slane %v8033_v8, 9  ;;  %v8069_v42 = vpop.f32.mrf.mxu1  ;;  %v5549_v8 = vld [vmem:[%s6303_s29 + $0x90] sm:$0xf] }
 0x115   : > { %v4498_v15 = vrot.slane %v7986_v51, 5  ;;  %v3917_v37 = vrot.slane %v3915_v11, 4  ;;  %v3920_v7 = vrot.slane %v3918_v14, 5  ;;  %9117 = vst [vmem:[#allocation24_spill] sm:$0xff] %v8069_v42  ;;  %v3888_v45 = vrot.slane %v3886_v41, 5 }
 0x116   : > { %6019 = vmatmul.mubr.msk.bf16.gmra.mxu1 %vm767_vm3, %v9113_v54  ;;  %v4491_v54 = vrot.slane %v7948_v2, 5  ;;  %v8067_v2 = vrot.slane %v3924_v59, 5  ;;  %v4494_v49 = vrot.slane %v8004_v56, 5  ;;  %v3897_v16 = vor.u32 %v3896_v35, %v3893_v19  ;;  %v8078_v59 = vld [vmem:[%s6303_s29 + $0x94] sm:$0xf] }
 0x117   : > { %6022 = vmatprep.mubr.msk.bf16.mxu1 %vm767_vm3, %v9116_v44  ;;  %v3930_v44 = vrot.slane %v3928_v24, 4  ;;  %v3907_v34 = vor.u32 %v3906_v10, %v8043_v18  ;;  %v3874_v51 = vrot.slane %v3873_v30, 4  ;;  %v3884_v11 = vrot.slane %v3883_v55, 4 }
 0x118   : > { %v4493_v62 = vrot.slane %v4491_v54, 4  ;;  %v3912_v14 = vrot.slane %v3910_v46, 5  ;;  %v9118_v24 = vcombine.low %v7711_v61, %v7715_v40  ;;  %v5624_v56 = vrot.slane %v5608_v33, 9 }
 0x119   : > { %v4500_v35 = vrot.slane %v4498_v15, 4  ;;  %v4501_v10 = vrot.slane %v8030_v60, 5  ;;  %v3934_v41 = vshll.u32 %v8064_v32, 16  ;;  %v3931_v30 = vor.u32 %v3930_v44, %v8067_v2 }
 0x11a   : > { %v3939_v55 = vshrl.u32 %v5549_v8, 16  ;;  %v3942_v46 = vshll.u32 %v5549_v8, 16  ;;  %v9120_v61 = vcombine.low %v7630_v9, %v7635_v47  ;;  %v3898_v40 = vrot.slane %v3897_v16, 4 }
 0x11b   : > { %v8074_v28 = vpop.f32.mrf.mxu0  ;;  %6057 = vmatmul.mubr.msk.bf16.gmra.mxu0 %vm767_vm3, %v6212_v13  ;;  %v3921_v13 = vor.u32 %v3920_v7, %v3917_v37  ;;  %v3908_v33 = vrot.slane %v3907_v34, 4  ;;  %v3948_v60 = vshll.u32 %v8078_v59, 16  ;;  %v3865_v37 = vsel %vm6347_vm4, %v8055_v3, %v8000_v25 }
 0x11c   : > { %6096 = vmatprep.mubr.msk.bf16.mxu0 %vm767_vm3, %v9118_v24  ;;  %v3952_v24 = vshrl.u32 %v8078_v59, 16  ;;  %v3879_v9 = vsel %vm6347_vm4, %v3874_v51, %v8017_v50  ;;  %v8110_v47 = vsel %vm6633_vm7, %v5623_v26, %v4491_v54  ;;  %v8114_v7 = vsel %vm6633_vm7, %v4493_v62, %v4494_v49  ;;  %v5609_v54 = vld [vmem:[%s6303_s29 + $0x84] sm:$0xe]  ;;  %v9159_v31 = vld [vmem:[#allocation24_spill] sm:$0xff] }
 0x11d   : > { %v8086_v19 = vpop.f32.mrf.mxu0  ;;  %v8122_v25 = vsel %vm6633_vm7, %v5624_v56, %v4498_v15  ;;  %v8126_v50 = vsel %vm6633_vm7, %v4500_v35, %v4501_v10  ;;  %v3936_v3 = vrot.slane %v3934_v41, 5  ;;  %v3922_v62 = vrot.slane %v3921_v13, 4  ;;  %v8150_v13 = vld [vmem:[%s6303_s29 + $0x98] sm:$0x1] }
 0x11e   : > { %9119 = vst [vmem:[#allocation25_spill] sm:$0xff] %v8086_v19  ;;  %v8089_v42 = vpop.f32.mrf.mxu1  ;;  %6023 = vmatmul.mubr.msk.bf16.gmra.mxu1 %vm767_vm3, %v9120_v61  ;;  %v3932_v49 = vrot.slane %v3931_v30, 4  ;;  %v3941_v16 = vrot.slane %v3939_v55, 4  ;;  %v3944_v34 = vrot.slane %v3942_v46, 5  ;;  %v3903_v15 = vsel %vm6347_vm4, %v3898_v40, %v8043_v18  ;;  %v5552_v30 = vld [vmem:[%s6303_s29 + $0x9c] sm:$0xf] }
 0x11f   : > { %v8097_v19 = vpop.f32.mrf.mxu0  ;;  %6062 = vmatprep.mubr.msk.bf16.mxu1 %vm767_vm3, %v7781_v27  ;;  %v3889_v27 = vsel %vm6347_vm4, %v3884_v11, %v3888_v45  ;;  %v3913_v45 = vsel %vm6347_vm4, %v3908_v33, %v3912_v14  ;;  %v8138_v51 = vrot.slane %v3948_v60, 5  ;;  %v3954_v11 = vrot.slane %v3952_v24, 4  ;;  %v8181_v24 = vld [vmem:[%s6303_s29 + $0xa0] sm:$0xf] }
 0x120   : > { %v8116_v44 = vpop.f32.mrf.mxu1  ;;  %v9121_v35 = vcombine.low %v7751_v48, %v7755_v38  ;;  %v5638_v10 = vcombine.low %v7974_v43, %v7991_v17  ;;  %v5639_v41 = vcombine.low %v8026_v58, %v8059_v36  ;;  %v5625_v18 = vrot.slane %v5609_v54, 9 }
 0x121   : > { %v8129_v26 = vpop.f32.mrf.mxu0  ;;  %v4505_v14 = vrot.slane %v8012_v4, 5  ;;  %v9122_v48 = vcombine.low %v7834_v6, %v7838_v22  ;;  %v9123_v38 = vsel %vm6347_vm4, %v7993_v29, %v7952_v39  ;;  %v8166_v61 = vcombine.low %v3879_v9, %v3889_v27  ;;  %v5610_v29 = vld [vmem:[%s6303_s29 + $0x90] sm:$0xe]  ;;  %v9130_v4 = vld [vmem:[#allocation2_spill] sm:$0xff] }
 0x122   : > { %v8131_v8 = vpop.f32.mrf.mxu1  ;;  %v8164_v46 = vcombine.low %v9123_v38, %v3865_v37  ;;  %v8172_v60 = vcombine.low %v3903_v15, %v3913_v45  ;;  %v3927_v6 = vsel %vm6347_vm4, %v3922_v62, %v8067_v2  ;;  %v3937_v22 = vsel %vm6347_vm4, %v3932_v49, %v3936_v3 }
 0x123   : > { %v5894_v56 = vpop.f32.mrf.mxu0  ;;  %6097 = vmatmul.mubr.msk.bf16.vlgmr.msra.gmra.mxu0 %vm767_vm3, %v9121_v35  ;;  %v3945_v39 = vor.u32 %v3944_v34, %v3941_v16  ;;  %v3955_v9 = vor.u32 %v3954_v11, %v8138_v51  ;;  %v3958_v27 = vshll.u32 %v8150_v13, 16  ;;  %v3963_v54 = vshrl.u32 %v5552_v30, 16 }
 0x124   : > { %v8153_v55 = vpop.f32.mrf.mxu1  ;;  %6100 = vmatprep.mubr.msk.bf16.mxu0 %vm767_vm3, %v9122_v48  ;;  %v3966_v15 = vshll.u32 %v5552_v30, 16  ;;  %v8192_v3 = vsel %vm6633_vm7, %v5625_v18, %v4505_v14  ;;  %v4507_v62 = vrot.slane %v4505_v14, 4  ;;  %v4508_v49 = vrot.slane %v8064_v32, 5 }
 0x125   : > { %v1571_v33 = vpop.f32.mrf.mxu0  ;;  %v5626_v16 = vrot.slane %v5610_v29, 9  ;;  %v4512_v34 = vrot.slane %v8078_v59, 5  ;;  %v3972_v11 = vshll.u32 %v8181_v24, 16  ;;  %v3976_v35 = vshrl.u32 %v8181_v24, 16 }
 0x126   : > { %v5860_v37 = vpop.f32.mrf.mxu1  ;;  %6063 = vmatmul.mubr.msk.bf16.vlgmr.msra.gmra.mxu1 %vm767_vm3, %v7783_v57  ;;  %v8201_v48 = vcombine.low %v3927_v6, %v3937_v22  ;;  %v8203_v18 = vrot.slane %v3945_v39, 4  ;;  %v3956_v32 = vrot.slane %v3955_v9, 4  ;;  %v3960_v38 = vrot.slane %v3958_v27, 5  ;;  %v5555_v22 = vld [vmem:[%s6303_s29 + $0xa8] sm:$0xf] }
 0x127   : > { %v1155_v45 = vadd.f32 %v5860_v37, %v7679_v5  ;;  %v5895_v2 = vpop.f32.mrf.mxu0  ;;  %6066 = vmatprep.mubr.msk.bf16.mxu1 %vm767_vm3, %v7930_v23  ;;  %v3965_v29 = vrot.slane %v3963_v54, 4  ;;  %v3968_v59 = vrot.slane %v3966_v15, 5  ;;  %v4515_v6 = vrot.slane %v8150_v13, 5  ;;  %v8229_v27 = vld [vmem:[%s6303_s29 + $0xac] sm:$0xf] }
 0x128   : > { %v1146_v57 = vpop.f32.mrf.mxu1  ;;  %v3978_v9 = vrot.slane %v3976_v35, 4  ;;  %v9127_v35 = vld [vmem:[#allocation8_spill] sm:$0xff] }
 0x129   : > { %v8198_v5 = vadd.f32 %v5894_v56, %v1155_v45  ;;  %v1147_v23 = vadd.f32 %v1146_v57, %v7703_v20  ;;  %v1574_v30 = vpop.f32.mrf.mxu0  ;;  %v9124_v45 = vcombine.low %v7871_v63, %v7897_v52  ;;  %v8214_v20 = vsel %vm6633_vm7, %v4507_v62, %v4508_v49  ;;  %v5611_v62 = vld [vmem:[%s6303_s29 + $0x9c] sm:$0xe] }
 0x12a   : > { %v5861_v14 = vpop.f32.mrf.mxu1  ;;  %v4514_v63 = vrot.slane %v4512_v34, 4  ;;  %v8226_v52 = vrot.slane %v3972_v11, 5  ;;  %v4519_v49 = vrot.slane %v8181_v24, 5  ;;  %v3996_v24 = vshll.u32 %v8229_v27, 16 }
 0x12b   : > { %v8205_v37 = vadd.f32 %v1571_v33, %v1147_v23  ;;  %v1158_v40 = vadd.f32 %v5861_v14, %v7722_v53  ;;  %v5898_v56 = vpop.f32.mrf.mxu0  ;;  %6101 = vmatmul.mubr.msk.bf16.gmra.mxu0 %vm767_vm3, %v9124_v45  ;;  %v9125_v33 = vcombine.low %v7936_v21, %v7940_v1  ;;  %v8224_v53 = vsel %vm6633_vm7, %v5626_v16, %v4512_v34  ;;  %v5554_v1 = vld [vmem:[%s6303_s29 + $0xa4] sm:$0x1]  ;;  %v9126_v16 = vld [vmem:[#allocation11_spill] sm:$0xff] }
 0x12c   : > { %v1149_v39 = vpop.f32.mrf.mxu1  ;;  %v3951_v21 = vsel %vm6347_vm4, %v8203_v18, %v8138_v51  ;;  %v3987_v34 = vshrl.u32 %v5555_v22, 16  ;;  %v9128_v51 = vld [vmem:[#allocation16_spill] sm:$0xff]  ;;  %v4000_v18 = vshrl.u32 %v8229_v27, 16 }
 0x12d   : > { %6104 = vmatprep.mubr.msk.bf16.mxu0 %vm767_vm3, %v9125_v33  ;;  %v8231_v54 = vadd.f32 %v5895_v2, %v1158_v40  ;;  %v1150_v13 = vadd.f32 %v1149_v39, %v7767_v12  ;;  %v1587_v15 = vpop.f32.mrf.mxu0  ;;  %v3961_v40 = vsel %vm6347_vm4, %v3956_v32, %v3960_v38  ;;  %v3969_v2 = vor.u32 %v3968_v59, %v3965_v29  ;;  %v9129_v59 = vld [vmem:[#allocation12_spill] sm:$0xff] }
 0x12e   : > { %v5864_v57 = vpop.f32.mrf.mxu1  ;;  %6067 = vmatmul.mubr.msk.bf16.gmra.mxu1 %vm767_vm3, %v9126_v16  ;;  %v3990_v12 = vshll.u32 %v5555_v22, 16  ;;  %v8254_v39 = vsel %vm6633_vm7, %v4514_v63, %v4515_v6  ;;  %v3979_v32 = vor.u32 %v3978_v9, %v8226_v52  ;;  %v3982_v38 = vshll.u32 %v5554_v1, 16 }
 0x12f   : > { %v8245_v11 = vadd.f32 %v1574_v30, %v1150_v13  ;;  %v1171_v23 = vadd.f32 %v5864_v57, %v9127_v35  ;;  %v5899_v14 = vpop.f32.mrf.mxu0  ;;  %6070 = vmatprep.mubr.msk.bf16.mxu1 %vm767_vm3, %v9128_v51  ;;  %v5627_v30 = vrot.slane %v5611_v62, 9  ;;  %v4521_v13 = vrot.slane %v4519_v49, 4 }
 0x130   : > { %v1162_v45 = vpop.f32.mrf.mxu1  ;;  %v4522_v57 = vrot.slane %v5554_v1, 5  ;;  %v8262_v51 = vrot.slane %v3969_v2, 4  ;;  %v3989_v6 = vrot.slane %v3987_v34, 4  ;;  %v3992_v63 = vrot.slane %v3990_v12, 5  ;;  %v8272_v1 = vld [vmem:[%s6303_s29 + $0xb0] sm:$0x1] }
 0x131   : > { %v8257_v29 = vadd.f32 %v5898_v56, %v1171_v23  ;;  %v1163_v22 = vadd.f32 %v1162_v45, %v9129_v59  ;;  %v1590_v33 = vpop.f32.mrf.mxu0  ;;  %v8274_v23 = vrot.slane %v3996_v24, 5  ;;  %v4002_v2 = vrot.slane %v4000_v18, 4  ;;  %v9131_v12 = vld [vmem:[#allocation14_spill] sm:$0xff] }
 0x132   : > { %v5865_v16 = vpop.f32.mrf.mxu1  ;;  %v8284_v43 = vrot.slane %v3979_v32, 4  ;;  %v8286_v17 = vrot.slane %v3982_v38, 5  ;;  %v8294_v58 = vsel %vm6633_vm7, %v5627_v30, %v4519_v49  ;;  %v8298_v36 = vsel %vm6633_vm7, %v4521_v13, %v4522_v57  ;;  %v8310_v30 = vld [vmem:[%s6303_s29 + $0xb8] sm:$0xf] }
 0x133   : > { %v8264_v9 = vadd.f32 %v1587_v15, %v1163_v22  ;;  %v1174_v62 = vadd.f32 %v5865_v16, %v9130_v4  ;;  %v5902_v56 = vpop.f32.mrf.mxu0  ;;  %6105 = vmatmul.mubr.msk.bf16.gmra.mxu0 %vm767_vm3, %v5638_v10  ;;  %v8280_v15 = vcombine.low %v3951_v21, %v3961_v40  ;;  %v5612_v10 = vld [vmem:[%s6303_s29 + $0xa8] sm:$0xe]  ;;  %v3993_v32 = vor.u32 %v3992_v63, %v3989_v6  ;;  %v9133_v22 = vld [vmem:[#allocation9_spill] sm:$0xff] }
 0x134   : > { %v1165_v45 = vpop.f32.mrf.mxu1  ;;  %6108 = vmatprep.mubr.msk.bf16.mxu0 %vm767_vm3, %v5639_v41  ;;  %v5558_v41 = vld [vmem:[%s6303_s29 + $0xb4] sm:$0xf]  ;;  %v9132_v40 = vld [vmem:[#allocation19_spill] sm:$0xff]  ;;  %v4006_v38 = vshll.u32 %v8272_v1, 16  ;;  %v4526_v49 = vrot.slane %v8229_v27, 5  ;;  %v4003_v16 = vor.u32 %v4002_v2, %v8274_v23  ;;  %v3985_v27 = vsel %vm6347_vm4, %v8284_v43, %v8286_v17 }
 0x135   : > { %v8289_v34 = vadd.f32 %v5899_v14, %v1174_v62  ;;  %v1166_v24 = vadd.f32 %v1165_v45, %v9131_v12  ;;  %v1603_v18 = vpop.f32.mrf.mxu0  ;;  %v5628_v62 = vrot.slane %v5612_v10, 9  ;;  %v4011_v6 = vshrl.u32 %v5558_v41, 16 }
 0x136   : > { %v5868_v21 = vpop.f32.mrf.mxu1  ;;  %6071 = vmatmul.mubr.msk.bf16.gmra.mxu1 %vm767_vm3, %v9132_v40  ;;  %v4014_v63 = vshll.u32 %v5558_v41, 16  ;;  %v4020_v2 = vshll.u32 %v8310_v30, 16  ;;  %v4024_v10 = vshrl.u32 %v8310_v30, 16  ;;  %v5561_v40 = vld [vmem:[%s6303_s29 + $0xc0] sm:$0xf]  ;;  %v3994_v4 = vrot.slane %v3993_v32, 4 }
 0x137   : > { %v8312_v59 = vadd.f32 %v1590_v33, %v1166_v24  ;;  %v1187_v13 = vadd.f32 %v5868_v21, %v9133_v22  ;;  %v5903_v57 = vpop.f32.mrf.mxu0  ;;  %6074 = vmatprep.mubr.msk.bf16.mxu1 %vm767_vm3, %v8164_v46  ;;  %v9135_v24 = vld [vmem:[#allocation18_spill] sm:$0xff]  ;;  %v4008_v43 = vrot.slane %v4006_v38, 5  ;;  %v4528_v17 = vrot.slane %v4526_v49, 4 }
 0x138   : > { %v1178_v45 = vpop.f32.mrf.mxu1  ;;  %v4529_v33 = vrot.slane %v8272_v1, 5  ;;  %v8340_v14 = vsel %vm6633_vm7, %v5628_v62, %v4526_v49  ;;  %v8343_v32 = vld [vmem:[%s6303_s29 + $0xc4] sm:$0xf]  ;;  %v9139_v1 = vcombine.low %v8122_v25, %v8126_v50  ;;  %v8355_v62 = vrot.slane %v4020_v2, 5 }
 0x139   : > { %v8324_v12 = vadd.f32 %v5902_v56, %v1187_v13  ;;  %v1179_v21 = vadd.f32 %v1178_v45, %v9135_v24  ;;  %v1606_v46 = vpop.f32.mrf.mxu0  ;;  %v9137_v56 = vld [vmem:[#allocation21_spill] sm:$0xff]  ;;  %v9138_v45 = vcombine.low %v8110_v47, %v8114_v7  ;;  %v4004_v24 = vrot.slane %v4003_v16, 4  ;;  %v9140_v16 = vld [vmem:[#allocation23_spill] sm:$0xff] }
 0x13a   : > { %v5869_v22 = vpop.f32.mrf.mxu1  ;;  %v4035_v47 = vshrl.u32 %v5561_v40, 16  ;;  %v4038_v7 = vshll.u32 %v5561_v40, 16  ;;  %v3999_v25 = vsel %vm6347_vm4, %v3994_v4, %v8274_v23  ;;  %v8364_v50 = vsel %vm6633_vm7, %v4528_v17, %v4529_v33  ;;  %v5613_v40 = vld [vmem:[%s6303_s29 + $0xb4] sm:$0xe] }
 0x13b   : > { %9134 = vst [vmem:[#allocation11_spill] sm:$0xff] %v8324_v12  ;;  %v8331_v35 = vadd.f32 %v1603_v18, %v1179_v21  ;;  %v1190_v41 = vadd.f32 %v5869_v22, %v9137_v56  ;;  %v5906_v13 = vpop.f32.mrf.mxu0  ;;  %6109 = vmatmul.mubr.msk.bf16.gmra.mxu0 %vm767_vm3, %v9138_v45  ;;  %v8350_v18 = vld [vmem:[%s6303_s29 + $0xbc] sm:$0x1]  ;;  %v4013_v21 = vrot.slane %v4011_v6, 4  ;;  %v4016_v22 = vrot.slane %v4014_v63, 5 }
 0x13c   : > { %v1181_v38 = vpop.f32.mrf.mxu1  ;;  %6112 = vmatprep.mubr.msk.bf16.mxu0 %vm767_vm3, %v9139_v1  ;;  %v4048_v6 = vshrl.u32 %v8343_v32, 16  ;;  %v4030_v23 = vshll.u32 %v8350_v18, 16  ;;  %v4533_v17 = vrot.slane %v8310_v30, 5  ;;  %v9141_v1 = vld [vmem:[#allocation25_spill] sm:$0xff] }
 0x13d   : > { %9136 = vst [vmem:[#allocation8_spill] sm:$0xff] %v8331_v35  ;;  %v8352_v56 = vadd.f32 %v5903_v57, %v1190_v41  ;;  %v1182_v45 = vadd.f32 %v1181_v38, %v9140_v16  ;;  %v1619_v49 = vpop.f32.mrf.mxu0  ;;  %v4026_v35 = vrot.slane %v4024_v10, 4  ;;  %v4044_v57 = vshll.u32 %v8343_v32, 16 }
 0x13e   : > { %v5872_v12 = vpop.f32.mrf.mxu1  ;;  %6075 = vmatmul.mubr.msk.bf16.gmra.mxu1 %vm767_vm3, %v8166_v61  ;;  %v4009_v61 = vsel %vm6347_vm4, %v4004_v24, %v4008_v43  ;;  %v4017_v33 = vor.u32 %v4016_v22, %v4013_v21  ;;  %v4037_v41 = vrot.slane %v4035_v47, 4  ;;  %v4040_v38 = vrot.slane %v4038_v7, 5 }
 0x13f   : > { %v8368_v63 = vadd.f32 %v1606_v46, %v1182_v45  ;;  %v1203_v2 = vadd.f32 %v5872_v12, %v8074_v28  ;;  %v5907_v10 = vpop.f32.mrf.mxu0  ;;  %6078 = vmatprep.mubr.msk.bf16.mxu1 %vm767_vm3, %v8172_v60  ;;  %v9142_v60 = vsel %vm6347_vm4, %v8262_v51, %v8226_v52  ;;  %v4027_v24 = vor.u32 %v4026_v35, %v8355_v62 }
 0x140   : > { %v1194_v4 = vpop.f32.mrf.mxu1  ;;  %v8386_v43 = vcombine.low %v9142_v60, %v3985_v27  ;;  %v8389_v30 = vcombine.low %v3999_v25, %v4009_v61  ;;  %v8393_v22 = vrot.slane %v4044_v57, 5  ;;  %v4050_v47 = vrot.slane %v4048_v6, 4  ;;  %v5563_v27 = vld [vmem:[%s6303_s29 + $0xc8] sm:$0x1] }
 0x141   : > { %v8378_v46 = vadd.f32 %v5906_v13, %v1203_v2  ;;  %v1195_v28 = vadd.f32 %v1194_v4, %v9141_v1  ;;  %v1622_v12 = vpop.f32.mrf.mxu0  ;;  %v5645_v13 = vcombine.low %v8340_v14, %v8364_v50  ;;  %v9143_v52 = vcombine.low %v8192_v3, %v8214_v20  ;;  %v5564_v14 = vld [vmem:[%s6303_s29 + $0xcc] sm:$0xf]  ;;  %v8414_v20 = vld [vmem:[%s6303_s29 + $0xd0] sm:$0xf]  ;;  %v5614_v4 = vld [vmem:[%s6303_s29 + $0xc0] sm:$0xe] }
 0x142   : > { %v5873_v21 = vpop.f32.mrf.mxu1  ;;  %v8402_v35 = vrot.slane %v4030_v23, 5  ;;  %v5629_v51 = vrot.slane %v5613_v40, 9  ;;  %v9144_v50 = vcombine.low %v8224_v53, %v8254_v39  ;;  %v4536_v57 = vrot.slane %v8350_v18, 5 }
 0x143   : > { %v8395_v7 = vadd.f32 %v1619_v49, %v1195_v28  ;;  %v1206_v16 = vadd.f32 %v5873_v21, %v8097_v19  ;;  %v5910_v45 = vpop.f32.mrf.mxu0  ;;  %6113 = vmatmul.mubr.msk.bf16.gmra.mxu0 %vm767_vm3, %v9143_v52  ;;  %v8410_v49 = vrot.slane %v4017_v33, 4  ;;  %v4535_v19 = vrot.slane %v4533_v17, 4 }
 0x144   : > { %v1197_v25 = vpop.f32.mrf.mxu1  ;;  %6116 = vmatprep.mubr.msk.bf16.mxu0 %vm767_vm3, %v9144_v50  ;;  %v4041_v3 = vor.u32 %v4040_v38, %v4037_v41  ;;  %v8419_v23 = vrot.slane %v4027_v24, 4  ;;  %v4540_v53 = vrot.slane %v8343_v32, 5  ;;  %v4051_v33 = vor.u32 %v4050_v47, %v8393_v22 }
 0x145   : > { %v8416_v6 = vadd.f32 %v5907_v10, %v1206_v16  ;;  %v1198_v2 = vadd.f32 %v1197_v25, %v8129_v26  ;;  %v1635_v61 = vpop.f32.mrf.mxu0  ;;  %v4054_v18 = vshll.u32 %v5563_v27, 16  ;;  %v4059_v40 = vshrl.u32 %v5564_v14, 16  ;;  %v9147_v10 = vld [vmem:[#allocation4_spill] sm:$0xff]  ;;  %v9148_v16 = vld [vmem:[#allocation3_spill] sm:$0xff] }
 0x146   : > { %v5876_v39 = vpop.f32.mrf.mxu1  ;;  %6079 = vmatmul.mubr.msk.bf16.gmra.mxu1 %vm767_vm3, %v8201_v48  ;;  %v4062_v41 = vshll.u32 %v5564_v14, 16  ;;  %v4068_v28 = vshll.u32 %v8414_v20, 16  ;;  %v4072_v32 = vshrl.u32 %v8414_v20, 16  ;;  %v4534_v48 = vsel %vm6633_vm7, %v5629_v51, %v4533_v17  ;;  %v9149_v17 = vld [vmem:[#allocation6_spill] sm:$0xff] }
 0x147   : > { %9145 = vst [vmem:[#allocation16_spill] sm:$0xff] %v8416_v6  ;;  %v8426_v38 = vadd.f32 %v1622_v12, %v1198_v2  ;;  %v1219_v1 = vadd.f32 %v5876_v39, %v9147_v10  ;;  %v5911_v26 = vpop.f32.mrf.mxu0  ;;  %6082 = vmatprep.mubr.msk.bf16.mxu1 %vm767_vm3, %v8280_v15  ;;  %v4537_v24 = vsel %vm6633_vm7, %v4535_v19, %v4536_v57  ;;  %v4042_v21 = vrot.slane %v4041_v3, 4 }
 0x148   : > { %v1210_v60 = vpop.f32.mrf.mxu1  ;;  %v5630_v12 = vrot.slane %v5614_v4, 9  ;;  %v4542_v25 = vrot.slane %v4540_v53, 4  ;;  %v4543_v15 = vrot.slane %v5563_v27, 5  ;;  %v4052_v2 = vrot.slane %v4051_v33, 4  ;;  %v5566_v33 = vld [vmem:[%s6303_s29 + $0xd4] sm:$0x1] }
 0x149   : > { %9146 = vst [vmem:[#allocation12_spill] sm:$0xff] %v8426_v38  ;;  %v8437_v47 = vadd.f32 %v5910_v45, %v1219_v1  ;;  %v1211_v52 = vadd.f32 %v1210_v60, %v9148_v16  ;;  %v1638_v14 = vpop.f32.mrf.mxu0  ;;  %v4056_v39 = vrot.slane %v4054_v18, 5  ;;  %v4061_v10 = vrot.slane %v4059_v40, 4  ;;  %v9151_v18 = vld [vmem:[#allocation5_spill] sm:$0xff] }
 0x14a   : > { %v5877_v50 = vpop.f32.mrf.mxu1  ;;  %v4064_v38 = vrot.slane %v4062_v41, 5  ;;  %v9150_v45 = vcombine.low %v8294_v58, %v8298_v36  ;;  %v8447_v57 = vrot.slane %v4068_v28, 5  ;;  %v4074_v27 = vrot.slane %v4072_v32, 4 }
 0x14b   : > { %v8440_v6 = vadd.f32 %v1635_v61, %v1211_v52  ;;  %v1222_v51 = vadd.f32 %v5877_v50, %v9149_v17  ;;  %v5914_v19 = vpop.f32.mrf.mxu0  ;;  %v4023_v61 = vsel %vm6347_vm4, %v8410_v49, %v8355_v62  ;;  %v4033_v4 = vsel %vm6347_vm4, %v8419_v23, %v8402_v35  ;;  %v5615_v62 = vld [vmem:[%s6303_s29 + $0xcc] sm:$0xe] }
 0x14c   : > { %6117 = vmatmul.mubr.msk.bf16.gmra.mxu0 %vm767_vm3, %v9150_v45  ;;  %v1213_v3 = vpop.f32.mrf.mxu1  ;;  %v4547_v58 = vrot.slane %v8414_v20, 5  ;;  %v4544_v1 = vsel %vm6633_vm7, %v4542_v25, %v4543_v15  ;;  %v5646_v35 = vcombine.low %v4534_v48, %v4537_v24  ;;  %v4047_v20 = vsel %vm6347_vm4, %v4042_v21, %v8393_v22  ;;  %v9153_v25 = vld [vmem:[#allocation10_spill] sm:$0xff] }
 0x14d   : > { %6120 = vmatprep.mubr.msk.bf16.mxu0 %vm767_vm3, %v5645_v13  ;;  %v8460_v36 = vadd.f32 %v5911_v26, %v1222_v51  ;;  %v1214_v40 = vadd.f32 %v1213_v3, %v9151_v18  ;;  %v1651_v41 = vpop.f32.mrf.mxu0  ;;  %v4541_v13 = vsel %vm6633_vm7, %v5630_v12, %v4540_v53  ;;  %v4057_v23 = vsel %vm6347_vm4, %v4052_v2, %v4056_v39  ;;  %v9152_v53 = vld [vmem:[#allocation7_spill] sm:$0xff] }
 0x14e   : > { %v5880_v49 = vpop.f32.mrf.mxu1  ;;  %6083 = vmatmul.mubr.msk.bf16.gmra.mxu1 %vm767_vm3, %v8386_v43  ;;  %v4065_v26 = vor.u32 %v4064_v38, %v4061_v10  ;;  %v4075_v12 = vor.u32 %v4074_v27, %v8447_v57  ;;  %v4078_v43 = vshll.u32 %v5566_v33, 16  ;;  %v5647_v24 = vcombine.low %v4541_v13, %v4544_v1 }
 0x14f   : > { %v8475_v28 = vadd.f32 %v1638_v14, %v1214_v40  ;;  %v1235_v32 = vadd.f32 %v5880_v49, %v9152_v53  ;;  %v5915_v60 = vpop.f32.mrf.mxu0  ;;  %6086 = vmatprep.mubr.msk.bf16.mxu1 %vm767_vm3, %v8389_v30  ;;  %v5631_v16 = vrot.slane %v5615_v62, 9  ;;  %v4549_v52 = vrot.slane %v4547_v58, 4  ;;  %v9154_v30 = vld [vmem:[#allocation13_spill] sm:$0xff] }
 0x150   : > { %v1226_v48 = vpop.f32.mrf.mxu1  ;;  %v4550_v22 = vrot.slane %v5566_v33, 5  ;;  %v5581_v50 = vcombine.low %v4023_v61, %v4033_v4  ;;  %v5582_v2 = vcombine.low %v4047_v20, %v4057_v23  ;;  %v4066_v39 = vrot.slane %v4065_v26, 4  ;;  %v9155_v33 = vld [vmem:[#allocation15_spill] sm:$0xff]  ;;  %v9156_v62 = vld [vmem:[#allocation17_spill] sm:$0xff]  ;;  %v9157_v26 = vld [vmem:[#allocation20_spill] sm:$0xff] }
 0x151   : > { %v8481_v21 = vadd.f32 %v5914_v19, %v1235_v32  ;;  %v1227_v38 = vadd.f32 %v1226_v48, %v9153_v25  ;;  %v1654_v14 = vpop.f32.mrf.mxu0  ;;  %v4076_v45 = vrot.slane %v4075_v12, 4  ;;  %v4080_v27 = vrot.slane %v4078_v43, 5  ;;  %v9158_v43 = vld [vmem:[#allocation22_spill] sm:$0xff] }
 0x152   : > { %v5881_v15 = vpop.f32.mrf.mxu1  ;;  %v4548_v19 = vsel %vm6633_vm7, %v5631_v16, %v4547_v58  ;;  %v4551_v61 = vsel %vm6633_vm7, %v4549_v52, %v4550_v22  ;;  %v4071_v13 = vsel %vm6347_vm4, %v4066_v39, %v8447_v57 }
 0x153   : > { %v8484_v10 = vadd.f32 %v1651_v41, %v1227_v38  ;;  %v1238_v17 = vadd.f32 %v5881_v15, %v9154_v30  ;;  %v5918_v51 = vpop.f32.mrf.mxu0  ;;  %v4081_v0 = vsel %vm6347_vm4, %v4076_v45, %v4080_v27 }
 0x154   : > { %6121 = vmatmul.mubr.msk.bf16.gmra.mxu0 %vm767_vm3, %v5646_v35  ;;  %v1229_v3 = vpop.f32.mrf.mxu1  ;;  %v5648_v35 = vcombine.low %v4548_v19, %v4551_v61  ;;  %v5583_v12 = vcombine.low %v4071_v13, %v4081_v0 }
 0x155   : > { %6124 = vmatprep.mubr.msk.bf16.mxu0 %vm767_vm3, %v5647_v24  ;;  %v8493_v4 = vadd.f32 %v5915_v60, %v1238_v17  ;;  %v1230_v18 = vadd.f32 %v1229_v3, %v9155_v33  ;;  %v1667_v40 = vpop.f32.mrf.mxu0 }
 0x156   : > { %v5884_v41 = vpop.f32.mrf.mxu1  ;;  %6087 = vmatmul.mubr.msk.bf16.gmra.mxu1 %vm767_vm3, %v5581_v50 }
 0x157   : > { %v8500_v1 = vadd.f32 %v1654_v14, %v1230_v18  ;;  %v1251_v49 = vadd.f32 %v5884_v41, %v9156_v62  ;;  %v5919_v58 = vpop.f32.mrf.mxu0  ;;  %6090 = vmatprep.mubr.msk.bf16.mxu1 %vm767_vm3, %v5582_v2 }
 0x158   : > { %v1242_v20 = vpop.f32.mrf.mxu1 }
 0x159   : > { %v8506_v23 = vadd.f32 %v5918_v51, %v1251_v49  ;;  %v1243_v53 = vadd.f32 %v1242_v20, %v9157_v26  ;;  %v1670_v32 = vpop.f32.mrf.mxu0 }
 0x15a   : > { %v5885_v60 = vpop.f32.mrf.mxu1 }
 0x15b   : > { %v8509_v57 = vadd.f32 %v1667_v40, %v1243_v53  ;;  %v1254_v48 = vadd.f32 %v5885_v60, %v9158_v43  ;;  %v5922_v24 = vpop.f32.mrf.mxu0 }
 0x15c   : > { %6125 = vmatmul.mubr.msk.bf16.gmra.mxu0 %vm767_vm3, %v5648_v35  ;;  %v1245_v16 = vpop.f32.mrf.mxu1 }
 0x15d   : > { %v8513_v52 = vadd.f32 %v5919_v58, %v1254_v48  ;;  %v1246_v22 = vadd.f32 %v1245_v16, %v9159_v31  ;;  %v1683_v25 = vpop.f32.mrf.mxu0 }
 0x15e   : > { %v5888_v38 = vpop.f32.mrf.mxu1  ;;  %6091 = vmatmul.mubr.msk.bf16.gmra.mxu1 %vm767_vm3, %v5583_v12 }
 0x15f   : > { %v8517_v14 = vadd.f32 %v1670_v32, %v1246_v22  ;;  %v1267_v15 = vadd.f32 %v5888_v38, %v8089_v42  ;;  %v5923_v50 = vpop.f32.mrf.mxu0 }
 0x160   : > { %v1258_v2 = vpop.f32.mrf.mxu1 }
 0x161   : > { %v8520_v39 = vadd.f32 %v5922_v24, %v1267_v15  ;;  %v1259_v30 = vadd.f32 %v1258_v2, %v8116_v44  ;;  %v1686_v17 = vpop.f32.mrf.mxu0 }
 0x162   : > { %v5889_v51 = vpop.f32.mrf.mxu1 }
 0x163   : > { %v8523_v45 = vadd.f32 %v1683_v25, %v1259_v30  ;;  %v1270_v27 = vadd.f32 %v5889_v51, %v8131_v8  ;;  %v5962_v3 = vpop.f32.mrf.mxu0  ;;  %v9160_v30 = vld [vmem:[#allocation11_spill] sm:$0xff] }
 0x164   : > { %v1261_v19 = vpop.f32.mrf.mxu1 }
 0x165   : > { %v8526_v61 = vadd.f32 %v5923_v50, %v1270_v27  ;;  %v1262_v33 = vadd.f32 %v1261_v19, %v8153_v55  ;;  %v2659_v18 = vpop.f32.mrf.mxu0 }
 0x166   : > { %v5928_v42 = vpop.f32.mrf.mxu1 }
 0x167   : > { %v8529_v40 = vadd.f32 %v1686_v17, %v1262_v33  ;;  %v2062_v41 = vadd.f32 %v5928_v42, %v8198_v5  ;;  %v5963_v13 = vpop.f32.mrf.mxu0 }
 0x168   : > { %v1933_v44 = vpop.f32.mrf.mxu1 }
 0x169   : > { %v8532_v62 = vadd.f32 %v5962_v3, %v2062_v41  ;;  %v2060_v49 = vadd.f32 %v1933_v44, %v8205_v37  ;;  %v2662_v58 = vpop.f32.mrf.mxu0  ;;  %v9161_v3 = vld [vmem:[#allocation8_spill] sm:$0xff] }
 0x16a   : > { %v5929_v8 = vpop.f32.mrf.mxu1 }
 0x16b   : > { %v8535_v0 = vadd.f32 %v2659_v18, %v2060_v49  ;;  %v2063_v35 = vadd.f32 %v5929_v8, %v8231_v54  ;;  %v5966_v20 = vpop.f32.mrf.mxu0 }
 0x16c   : > { %v1936_v55 = vpop.f32.mrf.mxu1 }
 0x16d   : > { %v8538_v26 = vadd.f32 %v5963_v13, %v2063_v35  ;;  %v2061_v53 = vadd.f32 %v1936_v55, %v8245_v11  ;;  %v2675_v32 = vpop.f32.mrf.mxu0 }
 0x16e   : > { %v5932_v5 = vpop.f32.mrf.mxu1 }
 0x16f   : > { %v8541_v60 = vadd.f32 %v2662_v58, %v2061_v53  ;;  %v2066_v12 = vadd.f32 %v5932_v5, %v8257_v29  ;;  %v5967_v43 = vpop.f32.mrf.mxu0 }
 0x170   : > { %v1949_v37 = vpop.f32.mrf.mxu1 }
 0x171   : > { %v8544_v48 = vadd.f32 %v5966_v20, %v2066_v12  ;;  %v2064_v24 = vadd.f32 %v1949_v37, %v8264_v9  ;;  %v2678_v16 = vpop.f32.mrf.mxu0 }
 0x172   : > { %v5933_v54 = vpop.f32.mrf.mxu1 }
 0x173   : > { %v8547_v31 = vadd.f32 %v2675_v32, %v2064_v24  ;;  %v2067_v22 = vadd.f32 %v5933_v54, %v8289_v34  ;;  %v5970_v25 = vpop.f32.mrf.mxu0  ;;  %v9163_v54 = vld [vmem:[#allocation12_spill] sm:$0xff] }
 0x174   : > { %v1952_v11 = vpop.f32.mrf.mxu1 }
 0x175   : > { %v8550_v38 = vadd.f32 %v5967_v43, %v2067_v22  ;;  %v2065_v15 = vadd.f32 %v1952_v11, %v8312_v59  ;;  %v2691_v50 = vpop.f32.mrf.mxu0  ;;  %v9162_v43 = vld [vmem:[#allocation16_spill] sm:$0xff] }
 0x176   : > { %v5936_v29 = vpop.f32.mrf.mxu1 }
 0x177   : > { %v8553_v2 = vadd.f32 %v2678_v16, %v2065_v15  ;;  %v2070_v17 = vadd.f32 %v5936_v29, %v9160_v30  ;;  %v5971_v51 = vpop.f32.mrf.mxu0 }
 0x178   : > { %v1965_v9 = vpop.f32.mrf.mxu1 }
 0x179   : > { %v8556_v27 = vadd.f32 %v5970_v25, %v2070_v17  ;;  %v2068_v19 = vadd.f32 %v1965_v9, %v9161_v3  ;;  %v2694_v33 = vpop.f32.mrf.mxu0 }
 0x17a   : > { %v5937_v34 = vpop.f32.mrf.mxu1 }
 0x17b   : > { %v8559_v18 = vadd.f32 %v2691_v50, %v2068_v19  ;;  %v2071_v42 = vadd.f32 %v5937_v34, %v8352_v56  ;;  %v5974_v41 = vpop.f32.mrf.mxu0 }
 0x17c   : > { %v1968_v59 = vpop.f32.mrf.mxu1 }
 0x17d   : > { %v8562_v13 = vadd.f32 %v5971_v51, %v2071_v42  ;;  %v2069_v44 = vadd.f32 %v1968_v59, %v8368_v63  ;;  %v2707_v49 = vpop.f32.mrf.mxu0 }
 0x17e   : > { %v5940_v58 = vpop.f32.mrf.mxu1 }
 0x17f   : > { %v8565_v8 = vadd.f32 %v2694_v33, %v2069_v44  ;;  %v2074_v35 = vadd.f32 %v5940_v58, %v8378_v46  ;;  %v5975_v20 = vpop.f32.mrf.mxu0 }
 0x180   : > { %v1981_v55 = vpop.f32.mrf.mxu1 }
 0x181   : > { %v8568_v53 = vadd.f32 %v5974_v41, %v2074_v35  ;;  %v2072_v32 = vadd.f32 %v1981_v55, %v8395_v7  ;;  %v2710_v5 = vpop.f32.mrf.mxu0 }
 0x182   : > { %v5941_v56 = vpop.f32.mrf.mxu1 }
 0x183   : > { %v8571_v12 = vadd.f32 %v2707_v49, %v2072_v32  ;;  %v2075_v37 = vadd.f32 %v5941_v56, %v9162_v43  ;;  %v5978_v24 = vpop.f32.mrf.mxu0 }
 0x184   : > { %v1984_v63 = vpop.f32.mrf.mxu1 }
 0x185   : > { %v8574_v16 = vadd.f32 %v5975_v20, %v2075_v37  ;;  %v2073_v22 = vadd.f32 %v1984_v63, %v9163_v54  ;;  %v2723_v25 = vpop.f32.mrf.mxu0 }
 0x186   : > { %v5944_v46 = vpop.f32.mrf.mxu1 }
 0x187   : > { %v8577_v11 = vadd.f32 %v2710_v5, %v2073_v22  ;;  %v2078_v15 = vadd.f32 %v5944_v46, %v8437_v47  ;;  %v5979_v50 = vpop.f32.mrf.mxu0 }
 0x188   : > { %v1997_v7 = vpop.f32.mrf.mxu1 }
 0x189   : > { %v8580_v29 = vadd.f32 %v5978_v24, %v2078_v15  ;;  %v2076_v30 = vadd.f32 %v1997_v7, %v8440_v6  ;;  %v2726_v17 = vpop.f32.mrf.mxu0 }
 0x18a   : > { %v5945_v51 = vpop.f32.mrf.mxu1 }
 0x18b   : > { %v8583_v9 = vadd.f32 %v2723_v25, %v2076_v30  ;;  %v2079_v3 = vadd.f32 %v5945_v51, %v8460_v36  ;;  %v5982_v19 = vpop.f32.mrf.mxu0 }
 0x18c   : > { %v2000_v33 = vpop.f32.mrf.mxu1 }
 0x18d   : > { %v8586_v34 = vadd.f32 %v5979_v50, %v2079_v3  ;;  %v2077_v42 = vadd.f32 %v2000_v33, %v8475_v28  ;;  %v2739_v41 = vpop.f32.mrf.mxu0 }
 0x18e   : > { %v5948_v47 = vpop.f32.mrf.mxu1 }
 0x18f   : > { %9164 = vst [vmem:[#allocation2_spill] sm:$0xff] %v8586_v34  ;;  %v8589_v59 = vadd.f32 %v2726_v17, %v2077_v42  ;;  %v2082_v44 = vadd.f32 %v5948_v47, %v8481_v21  ;;  %v5983_v49 = vpop.f32.mrf.mxu0 }
 0x190   : > { %v2013_v6 = vpop.f32.mrf.mxu1 }
 0x191   : > { %9165 = vst [vmem:[#allocation14_spill] sm:$0xff] %v8589_v59  ;;  %v8592_v58 = vadd.f32 %v5982_v19, %v2082_v44  ;;  %v2080_v35 = vadd.f32 %v2013_v6, %v8484_v10  ;;  %v2742_v20 = vpop.f32.mrf.mxu0 }
 0x192   : > { %v5949_v36 = vpop.f32.mrf.mxu1 }
 0x193   : > { %9166 = vst [vmem:[#allocation19_spill] sm:$0xff] %v8592_v58  ;;  %v8595_v55 = vadd.f32 %v2739_v41, %v2080_v35  ;;  %v2083_v32 = vadd.f32 %v5949_v36, %v8493_v4  ;;  %v5986_v5 = vpop.f32.mrf.mxu0 }
 0x194   : > { %v2016_v28 = vpop.f32.mrf.mxu1 }
 0x195   : > { %9167 = vst [vmem:[#allocation9_spill] sm:$0xff] %v8595_v55  ;;  %v8598_v56 = vadd.f32 %v5983_v49, %v2083_v32  ;;  %v2081_v43 = vadd.f32 %v2016_v28, %v8500_v1  ;;  %v2755_v37 = vpop.f32.mrf.mxu0 }
 0x196   : > { %v5952_v21 = vpop.f32.mrf.mxu1 }
 0x197   : > { %9168 = vst [vmem:[#allocation18_spill] sm:$0xff] %v8598_v56  ;;  %v8601_v24 = vadd.f32 %v2742_v20, %v2081_v43  ;;  %v2086_v63 = vadd.f32 %v5952_v21, %v8506_v23  ;;  %v5987_v54 = vpop.f32.mrf.mxu0 }
 0x198   : > { %v2029_v10 = vpop.f32.mrf.mxu1 }
 0x199   : > { %9169 = vst [vmem:[#allocation21_spill] sm:$0xff] %v8601_v24  ;;  %v8604_v22 = vadd.f32 %v5986_v5, %v2086_v63  ;;  %v2084_v25 = vadd.f32 %v2029_v10, %v8509_v57  ;;  %v2758_v46 = vpop.f32.mrf.mxu0 }
 0x19a   : > { %v5953_v4 = vpop.f32.mrf.mxu1 }
 0x19b   : > { %9170 = vst [vmem:[#allocation23_spill] sm:$0xff] %v8604_v22  ;;  %v8607_v15 = vadd.f32 %v2755_v37, %v2084_v25  ;;  %v2087_v50 = vadd.f32 %v5953_v4, %v8513_v52  ;;  %v5990_v7 = vpop.f32.mrf.mxu0 }
 0x19c   : > { %v2032_v1 = vpop.f32.mrf.mxu1 }
 0x19d   : > { %9171 = vst [vmem:[#allocation25_spill] sm:$0xff] %v8607_v15  ;;  %v8610_v30 = vadd.f32 %v5987_v54, %v2087_v50  ;;  %v2085_v17 = vadd.f32 %v2032_v1, %v8517_v14  ;;  %v2771_v51 = vpop.f32.mrf.mxu0 }
 0x19e   : > { %v5956_v23 = vpop.f32.mrf.mxu1 }
 0x19f   : > { %9172 = vst [vmem:[#allocation4_spill] sm:$0xff] %v8610_v30  ;;  %v8613_v3 = vadd.f32 %v2758_v46, %v2085_v17  ;;  %v2090_v19 = vadd.f32 %v5956_v23, %v8520_v39  ;;  %v5991_v33 = vpop.f32.mrf.mxu0 }
 0x1a0   : > { %v2045_v57 = vpop.f32.mrf.mxu1 }
 0x1a1   : > { %9173 = vst [vmem:[#allocation3_spill] sm:$0xff] %v8613_v3  ;;  %v8616_v42 = vadd.f32 %v5990_v7, %v2090_v19  ;;  %v2088_v41 = vadd.f32 %v2045_v57, %v8523_v45  ;;  %v2774_v47 = vpop.f32.mrf.mxu0 }
 0x1a2   : > { %v5957_v52 = vpop.f32.mrf.mxu1 }
 0x1a3   : > { %9174 = vst [vmem:[#allocation6_spill] sm:$0xff] %v8616_v42  ;;  %v8619_v44 = vadd.f32 %v2771_v51, %v2088_v41  ;;  %v2091_v49 = vadd.f32 %v5957_v52, %v8526_v61  ;;  %v8622_v6 = vpop.f32.mrf.mxu0 }
 0x1a4   : > { %v2048_v14 = vpop.f32.mrf.mxu1 }
 0x1a5   : > { %9175 = vst [vmem:[#allocation5_spill] sm:$0xff] %v8619_v44  ;;  %v8624_v35 = vadd.f32 %v5991_v33, %v2091_v49  ;;  %v2089_v20 = vadd.f32 %v2048_v14, %v8529_v40  ;;  %v8627_v39 = vpop.f32.mrf.mxu0 }
 0x1a6   : > { %v5996_v36 = vpop.f32.mrf.mxu1 }
 0x1a7   : > { %9176 = vst [vmem:[#allocation7_spill] sm:$0xff] %v8624_v35  ;;  %v8629_v32 = vadd.f32 %v2774_v47, %v2089_v20  ;;  %v8631_v5 = vpop.f32.mrf.mxu0 }
 0x1a8   : > { %v3129_v45 = vpop.f32.mrf.mxu1 }
 0x1a9   : > { %9177 = vst [vmem:[#allocation10_spill] sm:$0xff] %v8629_v32  ;;  %v8633_v28 = vpop.f32.mrf.mxu0 }
 0x1aa   : > { %v8635_v43 = vpop.f32.mrf.mxu1 }
 0x1ab   : > { %v8637_v61 = vpop.f32.mrf.mxu0 }
 0x1ac   : > { %v8639_v37 = vpop.f32.mrf.mxu1 }
 0x1ad   : > { %v8641_v21 = vpop.f32.mrf.mxu0 }
 0x1ae   : > { %v8643_v63 = vpop.f32.mrf.mxu1 }
 0x1af   : > { %v8645_v40 = vpop.f32.mrf.mxu0 }
 0x1b0   : > { %v8647_v54 = vpop.f32.mrf.mxu1 }
 0x1b1   : > { %v8649_v10 = vpop.f32.mrf.mxu0 }
 0x1b2   : > { %v8651_v25 = vpop.f32.mrf.mxu1 }
 0x1b3   : > { %v8653_v46 = vpop.f32.mrf.mxu0 }
 0x1b4   : > { %v8655_v4 = vpop.f32.mrf.mxu1 }
 0x1b5   : > { %v8657_v50 = vpop.f32.mrf.mxu0 }
 0x1b6   : > { %v8659_v7 = vpop.f32.mrf.mxu1 }
 0x1b7   : > { %v8661_v1 = vpop.f32.mrf.mxu0 }
 0x1b8   : > { %v8663_v17 = vpop.f32.mrf.mxu1 }
 0x1b9   : > { %v8665_v51 = vpop.f32.mrf.mxu0 }
 0x1ba   : > { %v8667_v23 = vpop.f32.mrf.mxu1 }
 0x1bb   : > { %v8669_v19 = vpop.f32.mrf.mxu0 }
 0x1bc   : > { %v8671_v33 = vpop.f32.mrf.mxu1 }
 0x1bd   : > { %v8673_v57 = vpop.f32.mrf.mxu0 }
 0x1be   : > { %v8675_v41 = vpop.f32.mrf.mxu1 }
 0x1bf   : > { %v8677_v47 = vpop.f32.mrf.mxu0 }
 0x1c0   : > { %v8679_v52 = vpop.f32.mrf.mxu1 }
 0x1c1   : > { %v8681_v49 = vpop.f32.mrf.mxu0 }
 0x1c2   : > { %v8683_v14 = vpop.f32.mrf.mxu1 }
 0x1c3   : > { %v8685_v20 = vpop.f32.mrf.mxu0 }
 0x1c4   : > { %v8687_v32 = vpop.f32.mrf.mxu1 }
 0x1c5   : > { %v8689_v35 = vpop.f32.mrf.mxu0 }
 0x1c6   : > { %9178 = vst [vmem:[#allocation13_spill] sm:$0xff] %v8689_v35  ;;  %v8691_v44 = vpop.f32.mrf.mxu1 }
 0x1c7   : > { %v8693_v42 = vpop.f32.mrf.mxu0 }
 0x1c8   : > { %9179 = vst [vmem:[#allocation15_spill] sm:$0xff] %v8693_v42  ;;  %v8695_v3 = vpop.f32.mrf.mxu1 }
 0x1c9   : > { %v8697_v30 = vpop.f32.mrf.mxu0 }
 0x1ca   : > { %9180 = vst [vmem:[#allocation17_spill] sm:$0xff] %v8697_v30  ;;  %v8699_v15 = vpop.f32.mrf.mxu1 }
 0x1cb   : > { %9181 = vst [vmem:[#allocation20_spill] sm:$0xff] %v8699_v15  ;;  %v8701_v22 = vpop.f32.mrf.mxu0 }
 0x1cc   : > { %9182 = vst [vmem:[#allocation22_spill] sm:$0xff] %v8701_v22  ;;  %v8703_v24 = vpop.f32.mrf.mxu1 }
 0x1cd   : > { %9183 = vst [vmem:[#allocation24_spill] sm:$0xff] %v8703_v24  ;;  %v8705_v56 = vpop.f32.mrf.mxu0 }
 0x1ce   : > { %9184 = vst [vmem:[#allocation11_spill] sm:$0xff] %v8705_v56  ;;  %v8707_v55 = vpop.f32.mrf.mxu1 }
 0x1cf   : > { %9185 = vst [vmem:[#allocation8_spill] sm:$0xff] %v8707_v55  ;;  %v8709_v58 = vpop.f32.mrf.mxu0 }
 0x1d0   : > { %9186 = vst [vmem:[#allocation16_spill] sm:$0xff] %v8709_v58  ;;  %v8711_v59 = vpop.f32.mrf.mxu1 }
 0x1d1   : > { %9187 = vst [vmem:[#allocation12_spill] sm:$0xff] %v8711_v59  ;;  %v8713_v35 = vpop.f32.mrf.mxu0 }
 0x1d2   : > { %9188 = vst [vmem:[#allocation26_spill] sm:$0xff] %v8713_v35  ;;  %v8715_v42 = vpop.f32.mrf.mxu1 }
 0x1d3   : > { %9189 = vst [vmem:[#allocation27_spill] sm:$0xff] %v8715_v42  ;;  %v8717_v30 = vpop.f32.mrf.mxu0 }
 0x1d4   : > { %9190 = vst [vmem:[#allocation28_spill] sm:$0xff] %v8717_v30  ;;  %v8719_v15 = vpop.f32.mrf.mxu1 }
 0x1d5   : > { %9191 = vst [vmem:[#allocation29_spill] sm:$0xff] %v8719_v15  ;;  %v8721_v22 = vpop.f32.mrf.mxu0 }
 0x1d6   : > { %9192 = vst [vmem:[#allocation30_spill] sm:$0xff] %v8721_v22  ;;  %v8723_v24 = vpop.f32.mrf.mxu1 }
 0x1d7   : > { %9193 = vst [vmem:[#allocation31_spill] sm:$0xff] %v8723_v24  ;;  %v8725_v56 = vpop.f32.mrf.mxu0 }
 0x1d8   : > { %9194 = vst [vmem:[#allocation32_spill] sm:$0xff] %v8725_v56  ;;  %v8727_v55 = vpop.f32.mrf.mxu1  ;;  %v3258_v56 = vadd.f32 %v5996_v36, %v8532_v62  ;;  %v3257_v62 = vadd.f32 %v8639_v37, %v8541_v60  ;;  %v3260_v60 = vadd.f32 %v8647_v54, %v8547_v31 }
 0x1d9   : > { %9195 = vst [vmem:[#allocation33_spill] sm:$0xff] %v8727_v55  ;;  %v8729_v58 = vpop.f32.mrf.mxu0 }
 0x1da   : > { %9196 = vst [vmem:[#allocation34_spill] sm:$0xff] %v8729_v58  ;;  %v8731_v59 = vpop.f32.mrf.mxu1 }
 0x1db   : > { %9197 = vst [vmem:[#allocation35_spill] sm:$0xff] %v8731_v59  ;;  %v8733_v35 = vpop.f32.mrf.mxu0  ;;  %v3256_v59 = vadd.f32 %v3129_v45, %v8535_v0  ;;  %v8765_v45 = vld [vmem:[%s8971_s2] ss:$0 sm:$0xff] }
 0x1dc   : > { %9198 = vst [vmem:[#allocation36_spill] sm:$0xff] %v8733_v35  ;;  %v8735_v34 = vpop.f32.mrf.mxu1 }
 0x1dd   : > { %9199 = vst [vmem:[#allocation37_spill] sm:$0xff] %v8735_v34  ;;  %v8737_v42 = vpop.f32.mrf.mxu0  ;;  %v3618_v24 = vadd.f32 %v8627_v39, %v3256_v59  ;;  %v3262_v59 = vadd.f32 %v8643_v63, %v8544_v48  ;;  %v3619_v39 = vadd.f32 %v8633_v28, %v3257_v62  ;;  %v3263_v48 = vadd.f32 %v8651_v25, %v8550_v38 }
 0x1de   : > { %9200 = vst [vmem:[#allocation38_spill] sm:$0xff] %v8737_v42  ;;  %v8739_v30 = vpop.f32.mrf.mxu1  ;;  %v3620_v42 = vadd.f32 %v8622_v6, %v3258_v56  ;;  %v3622_v28 = vadd.f32 %v8641_v21, %v3260_v60 }
 0x1df   : > { %9201 = vst [vmem:[#allocation39_spill] sm:$0xff] %v8739_v30  ;;  %v8741_v15 = vpop.f32.mrf.mxu0  ;;  %v3625_v21 = vadd.f32 %v8645_v40, %v3263_v48 }
 0x1e0   : > { %9202 = vst [vmem:[#allocation40_spill] sm:$0xff] %v8741_v15  ;;  %v8743_v22 = vpop.f32.mrf.mxu1  ;;  %v3259_v15 = vadd.f32 %v8635_v43, %v8538_v26 }
 0x1e1   : > { %9203 = vst [vmem:[#allocation41_spill] sm:$0xff] %v8743_v22  ;;  %v8747_v55 = vpop.f32.mrf.mxu0 }
 0x1e2   : > { %9204 = vst [vmem:[#allocation42_spill] sm:$0xff] %v8747_v55  ;;  %v8749_v58 = vpop.f32.mrf.mxu1  ;;  %v3621_v26 = vadd.f32 %v8631_v5, %v3259_v15 }
 0x1e3   : > { %v6098_v35 = vpop.f32.mrf.mxu0 }
 0x1e4   : > { %v8752_v34 = vpop.f32.mrf.mxu1 }
 0x1e5   : > { %9205 = vst [vmem:[#allocation43_spill] sm:$0xff] %v8752_v34  ;;  %v4687_v30 = vpop.f32.mrf.mxu0  ;;  %v3624_v34 = vadd.f32 %v8637_v61, %v3262_v59 }
 0x1e6   : > { %v6064_v22 = vpop.f32.mrf.mxu1 }
 0x1e7   : > { %v4346_v36 = vadd.f32 %v6064_v22, %v3620_v42  ;;  %v6099_v0 = vpop.f32.mrf.mxu0  ;;  %v8775_v22 = vld [vmem:[%s8972_s3] ss:$0 sm:$0xff] }
 0x1e8   : > { %v4217_v56 = vpop.f32.mrf.mxu1 }
 0x1e9   : > { %v4816_v6 = vadd.f32 %v6098_v35, %v4346_v36  ;;  %v4344_v43 = vadd.f32 %v4217_v56, %v3618_v24  ;;  %v4690_v55 = vpop.f32.mrf.mxu0 }
 0x1ea   : > { %v6065_v42 = vpop.f32.mrf.mxu1 }
 0x1eb   : > { %v4855_v15 = vmul.f32 %v8765_v45, %v4816_v6  ;;  %v4814_v35 = vadd.f32 %v4687_v30, %v4344_v43  ;;  %v4347_v24 = vadd.f32 %v6065_v42, %v3621_v26  ;;  %v6102_v5 = vpop.f32.mrf.mxu0  ;;  %v3261_v30 = vadd.f32 %v8655_v4, %v8553_v2 }
 0x1ec   : > { %v4220_v37 = vpop.f32.mrf.mxu1  ;;  %v3266_v2 = vadd.f32 %v8659_v7, %v8556_v27 }
 0x1ed   : > { %v4894_v31 = vadd.f32 %v8775_v22, %v4855_v15  ;;  %v4853_v63 = vmul.f32 %v8765_v45, %v4814_v35  ;;  %v4817_v54 = vadd.f32 %v6099_v0, %v4347_v24  ;;  %v4345_v36 = vadd.f32 %v4220_v37, %v3619_v39  ;;  %v4703_v56 = vpop.f32.mrf.mxu0 }
 0x1ee   : > { %v6068_v38 = vpop.f32.mrf.mxu1  ;;  %v3623_v15 = vadd.f32 %v8649_v10, %v3261_v30  ;;  %v3628_v48 = vadd.f32 %v8653_v46, %v3266_v2  ;;  %v3264_v37 = vadd.f32 %v8663_v17, %v8559_v18  ;;  %v3265_v30 = vadd.f32 %v8671_v33, %v8565_v8 }
 0x1ef   : > { %v4926_v25 = vmax.f32 %v4894_v31, 0.0  ;;  %v4892_v62 = vadd.f32 %v8775_v22, %v4853_v63  ;;  %v4856_v0 = vmul.f32 %v8765_v45, %v4817_v54  ;;  %v4815_v26 = vadd.f32 %v4690_v55, %v4345_v36  ;;  %v6103_v61 = vpop.f32.mrf.mxu0 }
 0x1f0   : > { %v4350_v4 = vadd.f32 %v6068_v38, %v3624_v34  ;;  %v4233_v6 = vpop.f32.mrf.mxu1  ;;  %v3267_v31 = vadd.f32 %v8667_v23, %v8562_v13  ;;  %v3270_v8 = vadd.f32 %v8675_v41, %v8568_v53 }
 0x1f1   : > { %4958 = vst [vmem:[%s8791_s27 + $0x10] sm:$0xff] %v4926_v25  ;;  %v4924_v43 = vmax.f32 %v4892_v62, 0.0  ;;  %v4895_v59 = vadd.f32 %v8775_v22, %v4856_v0  ;;  %v4854_v60 = vmul.f32 %v8765_v45, %v4815_v26  ;;  %v4348_v42 = vadd.f32 %v4233_v6, %v3622_v28  ;;  %v4706_v39 = vpop.f32.mrf.mxu0 }
 0x1f2   : > { %v4820_v55 = vadd.f32 %v6102_v5, %v4350_v4  ;;  %v6069_v35 = vpop.f32.mrf.mxu1  ;;  %v3626_v62 = vadd.f32 %v8657_v50, %v3264_v37  ;;  %v3629_v0 = vadd.f32 %v8661_v1, %v3267_v31  ;;  %v3268_v50 = vadd.f32 %v8679_v52, %v8571_v12 }
 0x1f3   : > { %4956 = vst [vmem:[%s8791_s27] sm:$0xff] %v4924_v43  ;;  %v4927_v40 = vmax.f32 %v4895_v59, 0.0  ;;  %v4893_v24 = vadd.f32 %v8775_v22, %v4854_v60  ;;  %v4818_v27 = vadd.f32 %v4703_v56, %v4348_v42  ;;  %v4351_v34 = vadd.f32 %v6069_v35, %v3625_v21  ;;  %v6106_v7 = vpop.f32.mrf.mxu0 }
 0x1f4   : > { %v4859_v10 = vmul.f32 %v8765_v45, %v4820_v55  ;;  %v4236_v5 = vpop.f32.mrf.mxu1  ;;  %v3627_v43 = vadd.f32 %v8665_v51, %v3265_v30 }
 0x1f5   : > { %4959 = vst [vmem:[%s8791_s27 + $0x18] sm:$0xff] %v4927_v40  ;;  %v4925_v63 = vmax.f32 %v4893_v24, 0.0  ;;  %v4857_v54 = vmul.f32 %v8765_v45, %v4818_v27  ;;  %v4821_v36 = vadd.f32 %v6103_v61, %v4351_v34  ;;  %v4349_v56 = vadd.f32 %v4236_v5, %v3623_v15  ;;  %v4719_v28 = vpop.f32.mrf.mxu0 }
 0x1f6   : > { %v4898_v46 = vadd.f32 %v8775_v22, %v4859_v10  ;;  %v6072_v38 = vpop.f32.mrf.mxu1  ;;  %v3632_v15 = vadd.f32 %v8669_v19, %v3270_v8  ;;  %v3630_v27 = vadd.f32 %v8673_v57, %v3268_v50  ;;  %v3271_v34 = vadd.f32 %v8683_v14, %v8574_v16 }
 0x1f7   : > { %4957 = vst [vmem:[%s8791_s27 + $0x8] sm:$0xff] %v4925_v63  ;;  %v4896_v18 = vadd.f32 %v8775_v22, %v4857_v54  ;;  %v4860_v13 = vmul.f32 %v8765_v45, %v4821_v36  ;;  %v4819_v17 = vadd.f32 %v4706_v39, %v4349_v56  ;;  %v4354_v23 = vadd.f32 %v6072_v38, %v3628_v48  ;;  %v6107_v25 = vpop.f32.mrf.mxu0 }
 0x1f8   : > { %v4930_v33 = vmax.f32 %v4898_v46, 0.0  ;;  %v4249_v26 = vpop.f32.mrf.mxu1  ;;  %v3274_v54 = vadd.f32 %v8691_v44, %v8580_v29  ;;  %v3272_v29 = vadd.f32 %v8695_v3, %v8583_v9 }
 0x1f9   : > { %v4928_v61 = vmax.f32 %v4896_v18, 0.0  ;;  %v4899_v21 = vadd.f32 %v8775_v22, %v4860_v13  ;;  %v4858_v2 = vmul.f32 %v8765_v45, %v4819_v17  ;;  %v4824_v4 = vadd.f32 %v6106_v7, %v4354_v23  ;;  %v4722_v6 = vpop.f32.mrf.mxu0 }
 0x1fa   : > { %4962 = vst [vmem:[%s8791_s27 + $0x30] sm:$0xff] %v4930_v33  ;;  %v4352_v1 = vadd.f32 %v4249_v26, %v3626_v62  ;;  %v6073_v59 = vpop.f32.mrf.mxu1  ;;  %v3269_v7 = vadd.f32 %v8687_v32, %v8577_v11  ;;  %v9206_v62 = vld [vmem:[#allocation2_spill] sm:$0xff] }
 0x1fb   : > { %4960 = vst [vmem:[%s8791_s27 + $0x20] sm:$0xff] %v4928_v61  ;;  %v4931_v53 = vmax.f32 %v4899_v21, 0.0  ;;  %v4897_v41 = vadd.f32 %v8775_v22, %v4858_v2  ;;  %v4863_v60 = vmul.f32 %v8765_v45, %v4824_v4  ;;  %v4355_v42 = vadd.f32 %v6073_v59, %v3629_v0  ;;  %v6110_v39 = vpop.f32.mrf.mxu0  ;;  %v9207_v0 = vld [vmem:[#allocation20_spill] sm:$0xff]  ;;  %v9208_v21 = vld [vmem:[#allocation13_spill] sm:$0xff] }
 0x1fc   : > { %v4822_v55 = vadd.f32 %v4719_v28, %v4352_v1  ;;  %v4252_v35 = vpop.f32.mrf.mxu1  ;;  %v3633_v28 = vadd.f32 %v8677_v47, %v3271_v34  ;;  %v3631_v30 = vadd.f32 %v8681_v49, %v3269_v7  ;;  %v3275_v47 = vadd.f32 %v9207_v0, %v9206_v62  ;;  %v9214_v7 = vld [vmem:[#allocation9_spill] sm:$0xff] }
 0x1fd   : > { %4963 = vst [vmem:[%s8791_s27 + $0x38] sm:$0xff] %v4931_v53  ;;  %v4929_v51 = vmax.f32 %v4897_v41, 0.0  ;;  %v4902_v12 = vadd.f32 %v8775_v22, %v4863_v60  ;;  %v4825_v52 = vadd.f32 %v6107_v25, %v4355_v42  ;;  %v4353_v40 = vadd.f32 %v4252_v35, %v3627_v43  ;;  %v4735_v24 = vpop.f32.mrf.mxu0  ;;  %v9209_v53 = vld [vmem:[#allocation15_spill] sm:$0xff]  ;;  %v9210_v60 = vld [vmem:[#allocation14_spill] sm:$0xff]  ;;  %v9211_v42 = vld [vmem:[#allocation24_spill] sm:$0xff] }
 0x1fe   : > { %v4861_v19 = vmul.f32 %v8765_v45, %v4822_v55  ;;  %v6076_v48 = vpop.f32.mrf.mxu1  ;;  %v3636_v25 = vadd.f32 %v8685_v20, %v3274_v54  ;;  %v3634_v2 = vadd.f32 %v9208_v21, %v3272_v29  ;;  %v3637_v41 = vadd.f32 %v9209_v53, %v3275_v47  ;;  %v9213_v55 = vld [vmem:[#allocation8_spill] sm:$0xff]  ;;  %v9222_v62 = vld [vmem:[#allocation29_spill] sm:$0xff] }
 0x1ff   : > { %4961 = vst [vmem:[%s8791_s27 + $0x28] sm:$0xff] %v4929_v51  ;;  %v4934_v37 = vmax.f32 %v4902_v12, 0.0  ;;  %v4864_v31 = vmul.f32 %v8765_v45, %v4825_v52  ;;  %v4823_v10 = vadd.f32 %v4722_v6, %v4353_v40  ;;  %v4358_v5 = vadd.f32 %v6076_v48, %v3632_v15  ;;  %v6111_v63 = vpop.f32.mrf.mxu0  ;;  %v9212_v15 = vld [vmem:[#allocation19_spill] sm:$0xff] }
 0x200   : > { %v4900_v57 = vadd.f32 %v8775_v22, %v4861_v19  ;;  %v4265_v36 = vpop.f32.mrf.mxu1  ;;  %v3278_v35 = vadd.f32 %v9213_v55, %v9212_v15  ;;  %v9215_v19 = vld [vmem:[#allocation12_spill] sm:$0xff]  ;;  %v9228_v15 = vld [vmem:[#allocation33_spill] sm:$0xff] }
 0x201   : > { %4966 = vst [vmem:[%s8791_s27 + $0x50] sm:$0xff] %v4934_v37  ;;  %v4903_v16 = vadd.f32 %v8775_v22, %v4864_v31  ;;  %v4862_v11 = vmul.f32 %v8765_v45, %v4823_v10  ;;  %v4828_v32 = vadd.f32 %v6110_v39, %v4358_v5  ;;  %v4356_v14 = vadd.f32 %v4265_v36, %v3630_v27  ;;  %v4738_v56 = vpop.f32.mrf.mxu0  ;;  %v9216_v36 = vld [vmem:[#allocation17_spill] sm:$0xff] }
 0x202   : > { %v4932_v44 = vmax.f32 %v4900_v57, 0.0  ;;  %v6077_v46 = vpop.f32.mrf.mxu1  ;;  %v3273_v39 = vadd.f32 %v9211_v42, %v9210_v60  ;;  %v3276_v48 = vadd.f32 %v9215_v19, %v9214_v7  ;;  %v9226_v60 = vld [vmem:[#allocation31_spill] sm:$0xff] }
 0x203   : > { %v4935_v38 = vmax.f32 %v4903_v16, 0.0  ;;  %v4901_v18 = vadd.f32 %v8775_v22, %v4862_v11  ;;  %v4867_v13 = vmul.f32 %v8765_v45, %v4828_v32  ;;  %v4826_v17 = vadd.f32 %v4735_v24, %v4356_v14  ;;  %v6114_v23 = vpop.f32.mrf.mxu0  ;;  %v9217_v11 = vld [vmem:[#allocation22_spill] sm:$0xff]  ;;  %v9230_v7 = vld [vmem:[#allocation35_spill] sm:$0xff] }
 0x204   : > { %4964 = vst [vmem:[%s8791_s27 + $0x40] sm:$0xff] %v4932_v44  ;;  %v4359_v49 = vadd.f32 %v6077_v46, %v3633_v28  ;;  %v4268_v8 = vpop.f32.mrf.mxu1  ;;  %v3635_v16 = vadd.f32 %v9216_v36, %v3273_v39  ;;  %v3640_v32 = vadd.f32 %v9217_v11, %v3278_v35  ;;  %v9218_v14 = vld [vmem:[#allocation18_spill] sm:$0xff]  ;;  %v9227_v39 = vld [vmem:[#allocation25_spill] sm:$0xff] }
 0x205   : > { %4967 = vst [vmem:[%s8791_s27 + $0x58] sm:$0xff] %v4935_v38  ;;  %v4933_v9 = vmax.f32 %v4901_v18, 0.0  ;;  %v4906_v3 = vadd.f32 %v8775_v22, %v4867_v13  ;;  %v4865_v33 = vmul.f32 %v8765_v45, %v4826_v17  ;;  %v4357_v26 = vadd.f32 %v4268_v8, %v3631_v30  ;;  %v4751_v61 = vpop.f32.mrf.mxu0  ;;  %v9220_v17 = vld [vmem:[#allocation11_spill] sm:$0xff] }
 0x206   : > { %v4829_v4 = vadd.f32 %v6111_v63, %v4359_v49  ;;  %v6080_v6 = vpop.f32.mrf.mxu1  ;;  %v3280_v55 = vadd.f32 %v9228_v15, %v9227_v39 }
 0x207   : > { %4965 = vst [vmem:[%s8791_s27 + $0x48] sm:$0xff] %v4933_v9  ;;  %v4938_v20 = vmax.f32 %v4906_v3, 0.0  ;;  %v4904_v43 = vadd.f32 %v8775_v22, %v4865_v33  ;;  %v4827_v50 = vadd.f32 %v4738_v56, %v4357_v26  ;;  %v4362_v1 = vadd.f32 %v6080_v6, %v3636_v25  ;;  %v6115_v59 = vpop.f32.mrf.mxu0  ;;  %v9219_v56 = vld [vmem:[#allocation27_spill] sm:$0xff]  ;;  %v9221_v25 = vld [vmem:[#allocation21_spill] sm:$0xff] }
 0x208   : > { %v4868_v51 = vmul.f32 %v8765_v45, %v4829_v4  ;;  %v4281_v12 = vpop.f32.mrf.mxu1  ;;  %v3279_v28 = vadd.f32 %v9219_v56, %v9218_v14  ;;  %v3277_v0 = vadd.f32 %v9222_v62, %v9221_v25  ;;  %v9234_v14 = vld [vmem:[#allocation37_spill] sm:$0xff]  ;;  %v9237_v25 = vld [vmem:[#allocation39_spill] sm:$0xff] }
 0x209   : > { %4970 = vst [vmem:[%s8791_s27 + $0x70] sm:$0xff] %v4938_v20  ;;  %v4936_v52 = vmax.f32 %v4904_v43, 0.0  ;;  %v4866_v40 = vmul.f32 %v8765_v45, %v4827_v50  ;;  %v4832_v24 = vadd.f32 %v6114_v23, %v4362_v1  ;;  %v4360_v27 = vadd.f32 %v4281_v12, %v3634_v2  ;;  %v4754_v34 = vpop.f32.mrf.mxu0 }
 0x20a   : > { %v4907_v37 = vadd.f32 %v8775_v22, %v4868_v51  ;;  %v6081_v31 = vpop.f32.mrf.mxu1  ;;  %v3638_v23 = vadd.f32 %v9220_v17, %v3276_v48 }
 0x20b   : > { %4968 = vst [vmem:[%s8791_s27 + $0x60] sm:$0xff] %v4936_v52  ;;  %v4905_v10 = vadd.f32 %v8775_v22, %v4866_v40  ;;  %v4871_v5 = vmul.f32 %v8765_v45, %v4832_v24  ;;  %v4830_v63 = vadd.f32 %v4751_v61, %v4360_v27  ;;  %v4363_v54 = vadd.f32 %v6081_v31, %v3637_v41  ;;  %v9223_v61 = vld [vmem:[#allocation16_spill] sm:$0xff]  ;;  %v9225_v41 = vld [vmem:[#allocation23_spill] sm:$0xff] }
 0x20c   : > { %v6118_v57 = vpop.f32.mrf.mxu0  ;;  %v4939_v30 = vmax.f32 %v4907_v37, 0.0  ;;  %v4284_v29 = vpop.f32.mrf.mxu1  ;;  %v3641_v21 = vadd.f32 %v9223_v61, %v3279_v28  ;;  %v3282_v42 = vadd.f32 %v9226_v60, %v9225_v41  ;;  %v9241_v41 = vld [vmem:[#allocation41_spill] sm:$0xff] }
 0x20d   : > { %v4937_v44 = vmax.f32 %v4905_v10, 0.0  ;;  %v4910_v46 = vadd.f32 %v8775_v22, %v4871_v5  ;;  %v4869_v38 = vmul.f32 %v8765_v45, %v4830_v63  ;;  %v4833_v18 = vadd.f32 %v6115_v59, %v4363_v54  ;;  %v9224_v59 = vld [vmem:[#allocation26_spill] sm:$0xff] }
 0x20e   : > { %v4767_v13 = vpop.f32.mrf.mxu0  ;;  %4971 = vst [vmem:[%s8791_s27 + $0x78] sm:$0xff] %v4939_v30  ;;  %v4361_v47 = vadd.f32 %v4284_v29, %v3635_v16  ;;  %v6084_v49 = vpop.f32.mrf.mxu1  ;;  %v3639_v53 = vadd.f32 %v9224_v59, %v3277_v0  ;;  %v9232_v16 = vld [vmem:[#allocation30_spill] sm:$0xff] }
 0x20f   : > { %4969 = vst [vmem:[%s8791_s27 + $0x68] sm:$0xff] %v4937_v44  ;;  %v4942_v8 = vmax.f32 %v4910_v46, 0.0  ;;  %v4908_v9 = vadd.f32 %v8775_v22, %v4869_v38  ;;  %v4872_v3 = vmul.f32 %v8765_v45, %v4833_v18  ;;  %v4366_v33 = vadd.f32 %v6084_v49, %v3640_v32  ;;  %v9233_v32 = vld [vmem:[#allocation3_spill] sm:$0xff] }
 0x210   : > { %v6119_v26 = vpop.f32.mrf.mxu0  ;;  %v4831_v2 = vadd.f32 %v4754_v34, %v4361_v47  ;;  %v4297_v4 = vpop.f32.mrf.mxu1  ;;  %v9229_v34 = vld [vmem:[#allocation4_spill] sm:$0xff]  ;;  %v3642_v11 = vadd.f32 %v9232_v16, %v3280_v55  ;;  %v3281_v56 = vadd.f32 %v9234_v14, %v9233_v32 }
 0x211   : > { %4974 = vst [vmem:[%s8791_s27 + $0x90] sm:$0xff] %v4942_v8  ;;  %v4940_v6 = vmax.f32 %v4908_v9, 0.0  ;;  %v4911_v20 = vadd.f32 %v8775_v22, %v4872_v3  ;;  %v4836_v43 = vadd.f32 %v6118_v57, %v4366_v33  ;;  %v4364_v50 = vadd.f32 %v4297_v4, %v3638_v23  ;;  %v9231_v57 = vld [vmem:[#allocation28_spill] sm:$0xff]  ;;  %v9236_v23 = vld [vmem:[#allocation6_spill] sm:$0xff] }
 0x212   : > { %v4770_v1 = vpop.f32.mrf.mxu0  ;;  %v4870_v35 = vmul.f32 %v8765_v45, %v4831_v2  ;;  %v6085_v51 = vpop.f32.mrf.mxu1  ;;  %v3283_v19 = vadd.f32 %v9230_v7, %v9229_v34  ;;  %v3644_v36 = vadd.f32 %v9231_v57, %v3282_v42  ;;  %v3286_v62 = vadd.f32 %v9237_v25, %v9236_v23  ;;  %v9242_v42 = vld [vmem:[#allocation7_spill] sm:$0xff] }
 0x213   : > { %4972 = vst [vmem:[%s8791_s27 + $0x80] sm:$0xff] %v4940_v6  ;;  %v4943_v12 = vmax.f32 %v4911_v20, 0.0  ;;  %v4875_v52 = vmul.f32 %v8765_v45, %v4836_v43  ;;  %v4834_v40 = vadd.f32 %v4767_v13, %v4364_v50  ;;  %v4367_v24 = vadd.f32 %v6085_v51, %v3641_v21  ;;  %v9235_v13 = vld [vmem:[#allocation32_spill] sm:$0xff] }
 0x214   : > { %v6122_v27 = vpop.f32.mrf.mxu0  ;;  %v4909_v48 = vadd.f32 %v8775_v22, %v4870_v35  ;;  %v4300_v37 = vpop.f32.mrf.mxu1  ;;  %v3645_v17 = vadd.f32 %v9235_v13, %v3283_v19  ;;  %v3287_v39 = vadd.f32 %v8749_v58, %v9242_v42 }
 0x215   : > { %4975 = vst [vmem:[%s8791_s27 + $0x98] sm:$0xff] %v4943_v12  ;;  %v4914_v31 = vadd.f32 %v8775_v22, %v4875_v52  ;;  %v4873_v10 = vmul.f32 %v8765_v45, %v4834_v40  ;;  %v4837_v5 = vadd.f32 %v6119_v26, %v4367_v24  ;;  %v4365_v63 = vadd.f32 %v4300_v37, %v3639_v53  ;;  %v9238_v26 = vld [vmem:[#allocation34_spill] sm:$0xff]  ;;  %v9240_v53 = vld [vmem:[#allocation5_spill] sm:$0xff]  ;;  %v9244_v24 = vld [vmem:[#allocation43_spill] sm:$0xff] }
 0x216   : > { %v4783_v54 = vpop.f32.mrf.mxu0  ;;  %v4941_v28 = vmax.f32 %v4909_v48, 0.0  ;;  %v6088_v30 = vpop.f32.mrf.mxu1  ;;  %v3643_v61 = vadd.f32 %v9238_v26, %v3281_v56  ;;  %v3284_v60 = vadd.f32 %v9241_v41, %v9240_v53  ;;  %v9243_v40 = vld [vmem:[#allocation10_spill] sm:$0xff] }
 0x217   : > { %v4946_v29 = vmax.f32 %v4914_v31, 0.0  ;;  %v4912_v44 = vadd.f32 %v8775_v22, %v4873_v10  ;;  %v4876_v46 = vmul.f32 %v8765_v45, %v4837_v5  ;;  %v4835_v38 = vadd.f32 %v4770_v1, %v4365_v63  ;;  %v9239_v1 = vld [vmem:[#allocation36_spill] sm:$0xff]  ;;  %v9245_v10 = vld [vmem:[#allocation38_spill] sm:$0xff] }
 0x218   : > { %v6123_v18 = vpop.f32.mrf.mxu0  ;;  %4973 = vst [vmem:[%s8791_s27 + $0x88] sm:$0xff] %v4941_v28  ;;  %v4370_v0 = vadd.f32 %v6088_v30, %v3644_v36  ;;  %v4313_v47 = vpop.f32.mrf.mxu1  ;;  %v3648_v59 = vadd.f32 %v9239_v1, %v3286_v62  ;;  %v3646_v5 = vadd.f32 %v9245_v10, %v3284_v60  ;;  %v9246_v63 = vld [vmem:[#allocation40_spill] sm:$0xff]  ;;  %v9247_v56 = vld [vmem:[#allocation42_spill] sm:$0xff] }
 0x219   : > { %4978 = vst [vmem:[%s8791_s27 + $0xb0] sm:$0xff] %v4946_v29  ;;  %v4944_v49 = vmax.f32 %v4912_v44, 0.0  ;;  %v4915_v8 = vadd.f32 %v8775_v22, %v4876_v46  ;;  %v4874_v9 = vmul.f32 %v8765_v45, %v4835_v38  ;;  %v4368_v3 = vadd.f32 %v4313_v47, %v3642_v11 }
 0x21a   : > { %v4786_v33 = vpop.f32.mrf.mxu0  ;;  %v4840_v21 = vadd.f32 %v6122_v27, %v4370_v0  ;;  %v6089_v2 = vpop.f32.mrf.mxu1  ;;  %v3285_v27 = vadd.f32 %v9244_v24, %v9243_v40 }
 0x21b   : > { %4976 = vst [vmem:[%s8791_s27 + $0xa0] sm:$0xff] %v4944_v49  ;;  %v4947_v4 = vmax.f32 %v4915_v8, 0.0  ;;  %v4913_v6 = vadd.f32 %v8775_v22, %v4874_v9  ;;  %v4838_v20 = vadd.f32 %v4783_v54, %v4368_v3  ;;  %v4371_v43 = vadd.f32 %v6089_v2, %v3645_v17 }
 0x21c   : > { %v6126_v50 = vpop.f32.mrf.mxu0  ;;  %v4879_v15 = vmul.f32 %v8765_v45, %v4840_v21  ;;  %v4316_v55 = vpop.f32.mrf.mxu1  ;;  %v3649_v54 = vadd.f32 %v9246_v63, %v3287_v39  ;;  %v3647_v28 = vadd.f32 %v9247_v56, %v3285_v27 }
 0x21d   : > { %4979 = vst [vmem:[%s8791_s27 + $0xb8] sm:$0xff] %v4947_v4  ;;  %v4945_v35 = vmax.f32 %v4913_v6, 0.0  ;;  %v4877_v51 = vmul.f32 %v8765_v45, %v4838_v20  ;;  %v4841_v12 = vadd.f32 %v6123_v18, %v4371_v43  ;;  %v4369_v52 = vadd.f32 %v4316_v55, %v3643_v61 }
 0x21e   : > { %v4918_v34 = vadd.f32 %v8775_v22, %v4879_v15  ;;  %v6092_v7 = vpop.f32.mrf.mxu1  ;;  %v4799_v19 = vpop.f32.mrf.mxu0 }
 0x21f   : > { %4977 = vst [vmem:[%s8791_s27 + $0xa8] sm:$0xff] %v4945_v35  ;;  %v4916_v58 = vadd.f32 %v8775_v22, %v4877_v51  ;;  %v4880_v48 = vmul.f32 %v8765_v45, %v4841_v12  ;;  %v4839_v37 = vadd.f32 %v4786_v33, %v4369_v52  ;;  %v4374_v31 = vadd.f32 %v6092_v7, %v3648_v59 }
 0x220   : > { %v4950_v57 = vmax.f32 %v4918_v34, 0.0  ;;  %v4329_v36 = vpop.f32.mrf.mxu1  ;;  %v6127_v44 = vpop.f32.mrf.mxu0 }
 0x221   : > { %v4948_v16 = vmax.f32 %v4916_v58, 0.0  ;;  %v4919_v11 = vadd.f32 %v8775_v22, %v4880_v48  ;;  %v4878_v32 = vmul.f32 %v8765_v45, %v4839_v37  ;;  %v4844_v14 = vadd.f32 %v6126_v50, %v4374_v31 }
 0x222   : > { %4982 = vst [vmem:[%s8791_s27 + $0xd0] sm:$0xff] %v4950_v57  ;;  %v4372_v30 = vadd.f32 %v4329_v36, %v3646_v5  ;;  %v6093_v29 = vpop.f32.mrf.mxu1  ;;  %v4802_v8 = vpop.f32.mrf.mxu0 }
 0x223   : > { %4980 = vst [vmem:[%s8791_s27 + $0xc0] sm:$0xff] %v4948_v16  ;;  %v4951_v46 = vmax.f32 %v4919_v11, 0.0  ;;  %v4917_v38 = vadd.f32 %v8775_v22, %v4878_v32  ;;  %v4883_v18 = vmul.f32 %v8765_v45, %v4844_v14  ;;  %v4375_v13 = vadd.f32 %v6093_v29, %v3649_v54 }
 0x224   : > { %v4842_v17 = vadd.f32 %v4799_v19, %v4372_v30  ;;  %v4332_v23 = vpop.f32.mrf.mxu1 }
 0x225   : > { %4983 = vst [vmem:[%s8791_s27 + $0xd8] sm:$0xff] %v4951_v46  ;;  %v4949_v25 = vmax.f32 %v4917_v38, 0.0  ;;  %v4922_v62 = vadd.f32 %v8775_v22, %v4883_v18  ;;  %v4845_v0 = vadd.f32 %v6127_v44, %v4375_v13  ;;  %v4373_v47 = vadd.f32 %v4332_v23, %v3647_v28 }
 0x226   : > { %v4881_v49 = vmul.f32 %v8765_v45, %v4842_v17 }
 0x227   : > { %4981 = vst [vmem:[%s8791_s27 + $0xc8] sm:$0xff] %v4949_v25  ;;  %v4954_v9 = vmax.f32 %v4922_v62, 0.0  ;;  %v4884_v3 = vmul.f32 %v8765_v45, %v4845_v0  ;;  %v4843_v33 = vadd.f32 %v4802_v8, %v4373_v47 }
 0x228   : > { %v4920_v26 = vadd.f32 %v8775_v22, %v4881_v49 }
 0x229   : > { %4986 = vst [vmem:[%s8791_s27 + $0xf0] sm:$0xff] %v4954_v9  ;;  %v4923_v61 = vadd.f32 %v8775_v22, %v4884_v3  ;;  %v4882_v21 = vmul.f32 %v8765_v45, %v4843_v33 }
 0x22a   : > { %v4952_v2 = vmax.f32 %v4920_v26, 0.0 }
 0x22b   : > { %v4955_v4 = vmax.f32 %v4923_v61, 0.0  ;;  %v4921_v6 = vadd.f32 %v8775_v22, %v4882_v21 }
 0x22c   : > { %4984 = vst [vmem:[%s8791_s27 + $0xe0] sm:$0xff] %v4952_v2 }
 0x22d   : > { %4987 = vst [vmem:[%s8791_s27 + $0xf8] sm:$0xff] %v4955_v4  ;;  %v4953_v20 = vmax.f32 %v4921_v6, 0.0 }
 0x22f   : > { %4985 = vst [vmem:[%s8791_s27 + $0xe8] sm:$0xff] %v4953_v20 }
 0x230 PF: > { %s14_s17 = sadd.s32 1, %s6237_s17   ;;  %s9248_s15 = smov %s6233_s16 }
 0x231   : > { %p11_p6 = scmp.ge.s32.totalorder %s14_s17, 4   ;;  %s9249_s16 = smov %s9251_s18 }
 0x233   :  { %13 = sbr.rel (!%p11_p6) target bundleno = 2 (0x2), region = 86 }

</bundles_post_ra>
